<compile_context>
chip_gen: v7x
topology: tpu7x:2x2x1
jax: 0.10.0
libtpu: 0.0.40
codegen_flags: <defaults>
</compile_context>

<pallas_src>
import jax
import jax.numpy as jnp
from jax import lax
from jax.experimental import pallas as pl
from jax.experimental.pallas import tpu as pltpu


# ----------------------------------------------------------------------------
# Pallas kernel: the entire CriticX forward, fully resident in VMEM
# ----------------------------------------------------------------------------
def _criticx_kernel(x_ref,
                    w1_ref, b1_ref, w2_ref, b2_ref,
                    w3_ref, b3_ref, w4_ref, b4_ref,
                    wfc_ref, bfc_ref, o_ref):
    """x_ref: (B, L, C_in); w*_ref: (K, C_in_l, 64); b*_ref: (1, 64);
    wfc_ref: (84, 64) Linear weight in (pos, chan) layout; bfc_ref: (1, 1);
    o_ref: (B, 1)."""
    B = x_ref.shape[0]
    NEG_SLOPE = 0.2

    # Hoist all weight/bias loads out of the (unrolled) batch loop.
    conv_params = [(w1_ref[...], b1_ref[...]),
                   (w2_ref[...], b2_ref[...]),
                   (w3_ref[...], b3_ref[...]),
                   (w4_ref[...], b4_ref[...])]
    wfc = wfc_ref[...]          # (84, 64)
    bfc = bfc_ref[...]          # (1, 1)

    def conv_lrelu(a, w, b):
        # a: (L_in, C_in) channels-last; w: (K, C_in, C_out); b: (1, C_out)
        k_sz = w.shape[0]
        c_out = w.shape[2]
        l_out = a.shape[0] - k_sz + 1
        acc = jnp.broadcast_to(b, (l_out, c_out)).astype(jnp.float32)
        for k in range(k_sz):                         # static unroll (K = 5)
            acc = acc + jnp.dot(a[k:k + l_out, :], w[k],
                                preferred_element_type=jnp.float32)
        return jnp.where(acc > 0, acc, NEG_SLOPE * acc)   # LeakyReLU(0.2)

    rows = []
    for b in range(B):                                # static unroll (B small)
        a = x_ref[b]                                  # (L, C_in)
        for w, bb in conv_params:                     # 100->96->92->88->84
            a = conv_lrelu(a, w, bb)                  # (L', 64)
        # Linear(64*84, 1): sum_{t,c} a[t,c] * wfc[t,c]; keep per-channel partials.
        rows.append(jnp.sum(a * wfc, axis=0, keepdims=True))   # (1, 64)
    v = jnp.concatenate(rows, axis=0)                 # (B, 64)
    o_ref[...] = jnp.sum(v, axis=1, keepdims=True) + bfc       # (B, 1)


# ----------------------------------------------------------------------------
# Wrapper
# ----------------------------------------------------------------------------
_VMEM = pl.BlockSpec(memory_space=pltpu.MemorySpace.VMEM)


@jax.jit
def criticx_forward(x, params):
    """Equivalent of CriticX.forward (eval mode).  x: (B, L, in_size) -> (B, 1)."""
    B = x.shape[0]

    # One-time weight-layout transforms (folded under jit, weights only):
    #   Conv1d weight (C_out, C_in, K) -> (K, C_in, C_out)  (channels-last matmul)
    #   Linear weight (1, 64*84)       -> (84, 64)          (pos, chan) layout
    def cw(w):
        return jnp.transpose(w, (2, 1, 0))

    n_ch = params["w4"].shape[0]               # 64
    l_fin = params["w_fc"].shape[1] // n_ch    # 84

    args = (x,
            cw(params["w1"]), params["b1"].reshape(1, -1),
            cw(params["w2"]), params["b2"].reshape(1, -1),
            cw(params["w3"]), params["b3"].reshape(1, -1),
            cw(params["w4"]), params["b4"].reshape(1, -1),
            params["w_fc"].reshape(n_ch, l_fin).T,
            params["b_fc"].reshape(1, 1))

    return pl.pallas_call(
        _criticx_kernel,
        out_shape=jax.ShapeDtypeStruct((B, 1), jnp.float32),
        in_specs=[_VMEM] * len(args),
        out_specs=_VMEM,
    )(*args)


# ----------------------------------------------------------------------------
# Deterministic PyTorch-style parameter init (uniform(-1/sqrt(fan_in), ...))
# ----------------------------------------------------------------------------
def init_params(key, in_size):
    keys = jax.random.split(key, 10)

    def u(k_, shape, fan_in):
        bound = 1.0 / jnp.sqrt(float(fan_in))
        return jax.random.uniform(k_, shape, jnp.float32, -bound, bound)

    p = {
        "w1": u(keys[0], (64, in_size, 5), in_size * 5),
        "b1": u(keys[1], (64,), in_size * 5),
        "w2": u(keys[2], (64, 64, 5), 64 * 5),
        "b2": u(keys[3], (64,), 64 * 5),
        "w3": u(keys[4], (64, 64, 5), 64 * 5),
        "b3": u(keys[5], (64,), 64 * 5),
        "w4": u(keys[6], (64, 64, 5), 64 * 5),
        "b4": u(keys[7], (64,), 64 * 5),
        "w_fc": u(keys[8], (1, 64 * 84), 64 * 84),
        "b_fc": u(keys[9], (1,), 64 * 84),
    }
    return p


# ----------------------------------------------------------------------------
# Pure-JAX reference (implements the PyTorch module semantics exactly)
# ----------------------------------------------------------------------------
def _ref_forward(x, params):
    h = jnp.transpose(x, (0, 2, 1))                 # x.permute(0, 2, 1) -> (B, C_in, L)
    for i in range(1, 5):
        w, b = params[f"w{i}"], params[f"b{i}"]
        h = lax.conv_general_dilated(h, w, window_strides=(1,), padding="VALID",
                                     dimension_numbers=("NCH", "OIH", "NCH"))
        h = h + b[None, :, None]
        h = jnp.where(h > 0, h, 0.2 * h)            # LeakyReLU(0.2)
    h = h.reshape(h.shape[0], -1)                   # Flatten -> (B, 64*84) (channel-major)
    return h @ params["w_fc"].T + params["b_fc"]    # Linear(64*84, 1)


# ----------------------------------------------------------------------------
if __name__ == "__main__":
    # Shapes consistent with the module: Linear(64*84, 1) => L = 84 + 4*4 = 100.
    B, L, IN = 2, 100, 4

    key = jax.random.PRNGKey(0)
    kx, kp = jax.random.split(key)
    x = jax.random.normal(kx, (B, L, IN), jnp.float32)    # (batch, seq, in_size)
    params = init_params(kp, IN)

    out = jax.block_until_ready(criticx_forward(x, params))
    ref = jax.block_until_ready(_ref_forward(x, params))

    assert out.shape == (B, 1), out.shape
    assert jnp.allclose(out, ref, atol=5e-4, rtol=5e-4), (
        float(jnp.max(jnp.abs(out - ref))))
    print("KERNEL_OK")
</pallas_src>

<mosaic_0001>
module attributes {stable_mosaic.version = 11 : i64} {
  func.func @_criticx_kernel(%arg0: memref<2x100x4xf32, #tpu.memory_space<vmem>>, %arg1: memref<5x4x64xf32, #tpu.memory_space<vmem>>, %arg2: memref<1x64xf32, #tpu.memory_space<vmem>>, %arg3: memref<5x64x64xf32, #tpu.memory_space<vmem>>, %arg4: memref<1x64xf32, #tpu.memory_space<vmem>>, %arg5: memref<5x64x64xf32, #tpu.memory_space<vmem>>, %arg6: memref<1x64xf32, #tpu.memory_space<vmem>>, %arg7: memref<5x64x64xf32, #tpu.memory_space<vmem>>, %arg8: memref<1x64xf32, #tpu.memory_space<vmem>>, %arg9: memref<84x64xf32, #tpu.memory_space<vmem>>, %arg10: memref<1x1xf32, #tpu.memory_space<vmem>>, %arg11: memref<2x1xf32, #tpu.memory_space<vmem>>) attributes {dimension_semantics = [], scalar_prefetch = 0 : i64, scratch_operands = 0 : i64, tpu.core_type = #tpu.core_type<tc>} {
    %c0 = arith.constant 0 : index
    %c0_0 = arith.constant 0 : index
    %c0_1 = arith.constant 0 : index
    %0 = vector.load %arg1[%c0, %c0_0, %c0_1] : memref<5x4x64xf32, #tpu.memory_space<vmem>>, vector<5x4x64xf32>
    %c0_2 = arith.constant 0 : index
    %c0_3 = arith.constant 0 : index
    %1 = vector.load %arg2[%c0_2, %c0_3] : memref<1x64xf32, #tpu.memory_space<vmem>>, vector<1x64xf32>
    %c0_4 = arith.constant 0 : index
    %c0_5 = arith.constant 0 : index
    %c0_6 = arith.constant 0 : index
    %2 = vector.load %arg3[%c0_4, %c0_5, %c0_6] : memref<5x64x64xf32, #tpu.memory_space<vmem>>, vector<5x64x64xf32>
    %c0_7 = arith.constant 0 : index
    %c0_8 = arith.constant 0 : index
    %3 = vector.load %arg4[%c0_7, %c0_8] : memref<1x64xf32, #tpu.memory_space<vmem>>, vector<1x64xf32>
    %c0_9 = arith.constant 0 : index
    %c0_10 = arith.constant 0 : index
    %c0_11 = arith.constant 0 : index
    %4 = vector.load %arg5[%c0_9, %c0_10, %c0_11] : memref<5x64x64xf32, #tpu.memory_space<vmem>>, vector<5x64x64xf32>
    %c0_12 = arith.constant 0 : index
    %c0_13 = arith.constant 0 : index
    %5 = vector.load %arg6[%c0_12, %c0_13] : memref<1x64xf32, #tpu.memory_space<vmem>>, vector<1x64xf32>
    %c0_14 = arith.constant 0 : index
    %c0_15 = arith.constant 0 : index
    %c0_16 = arith.constant 0 : index
    %6 = vector.load %arg7[%c0_14, %c0_15, %c0_16] : memref<5x64x64xf32, #tpu.memory_space<vmem>>, vector<5x64x64xf32>
    %c0_17 = arith.constant 0 : index
    %c0_18 = arith.constant 0 : index
    %7 = vector.load %arg8[%c0_17, %c0_18] : memref<1x64xf32, #tpu.memory_space<vmem>>, vector<1x64xf32>
    %c0_19 = arith.constant 0 : index
    %c0_20 = arith.constant 0 : index
    %8 = vector.load %arg9[%c0_19, %c0_20] : memref<84x64xf32, #tpu.memory_space<vmem>>, vector<84x64xf32>
    %c0_21 = arith.constant 0 : index
    %c0_22 = arith.constant 0 : index
    %9 = vector.load %arg10[%c0_21, %c0_22] : memref<1x1xf32, #tpu.memory_space<vmem>>, vector<1x1xf32>
    %c0_23 = arith.constant 0 : index
    %c0_24 = arith.constant 0 : index
    %c0_25 = arith.constant 0 : index
    %10 = vector.load %arg0[%c0_23, %c0_24, %c0_25] : memref<2x100x4xf32, #tpu.memory_space<vmem>>, vector<1x100x4xf32>
    %11 = vector.shape_cast %10 : vector<1x100x4xf32> to vector<100x4xf32>
    %12 = vector.shape_cast %1 : vector<1x64xf32> to vector<1x64xf32>
    %13 = vector.broadcast %12 : vector<1x64xf32> to vector<96x64xf32>
    %14 = vector.extract_strided_slice %11 {offsets = [0, 0], sizes = [96, 4], strides = [1, 1]} : vector<100x4xf32> to vector<96x4xf32>
    %15 = vector.extract_strided_slice %0 {offsets = [0, 0, 0], sizes = [1, 4, 64], strides = [1, 1, 1]} : vector<5x4x64xf32> to vector<1x4x64xf32>
    %16 = vector.shape_cast %15 : vector<1x4x64xf32> to vector<4x64xf32>
    %cst = arith.constant dense<0.000000e+00> : vector<96x64xf32>
    %17 = tpu.matmul %14, %16, %cst {dimension_numbers = #tpu.dot_dimension_numbers<[1], [0], [0], [1], [0, 0, 1, 1], [], []>} : vector<96x4xf32>, vector<4x64xf32>, vector<96x64xf32> -> vector<96x64xf32>
    %18 = arith.addf %13, %17 : vector<96x64xf32>
    %19 = vector.extract_strided_slice %11 {offsets = [1, 0], sizes = [96, 4], strides = [1, 1]} : vector<100x4xf32> to vector<96x4xf32>
    %20 = vector.extract_strided_slice %0 {offsets = [1, 0, 0], sizes = [1, 4, 64], strides = [1, 1, 1]} : vector<5x4x64xf32> to vector<1x4x64xf32>
    %21 = vector.shape_cast %20 : vector<1x4x64xf32> to vector<4x64xf32>
    %cst_26 = arith.constant dense<0.000000e+00> : vector<96x64xf32>
    %22 = tpu.matmul %19, %21, %cst_26 {dimension_numbers = #tpu.dot_dimension_numbers<[1], [0], [0], [1], [0, 0, 1, 1], [], []>} : vector<96x4xf32>, vector<4x64xf32>, vector<96x64xf32> -> vector<96x64xf32>
    %23 = arith.addf %18, %22 : vector<96x64xf32>
    %24 = vector.extract_strided_slice %11 {offsets = [2, 0], sizes = [96, 4], strides = [1, 1]} : vector<100x4xf32> to vector<96x4xf32>
    %25 = vector.extract_strided_slice %0 {offsets = [2, 0, 0], sizes = [1, 4, 64], strides = [1, 1, 1]} : vector<5x4x64xf32> to vector<1x4x64xf32>
    %26 = vector.shape_cast %25 : vector<1x4x64xf32> to vector<4x64xf32>
    %cst_27 = arith.constant dense<0.000000e+00> : vector<96x64xf32>
    %27 = tpu.matmul %24, %26, %cst_27 {dimension_numbers = #tpu.dot_dimension_numbers<[1], [0], [0], [1], [0, 0, 1, 1], [], []>} : vector<96x4xf32>, vector<4x64xf32>, vector<96x64xf32> -> vector<96x64xf32>
    %28 = arith.addf %23, %27 : vector<96x64xf32>
    %29 = vector.extract_strided_slice %11 {offsets = [3, 0], sizes = [96, 4], strides = [1, 1]} : vector<100x4xf32> to vector<96x4xf32>
    %30 = vector.extract_strided_slice %0 {offsets = [3, 0, 0], sizes = [1, 4, 64], strides = [1, 1, 1]} : vector<5x4x64xf32> to vector<1x4x64xf32>
    %31 = vector.shape_cast %30 : vector<1x4x64xf32> to vector<4x64xf32>
    %cst_28 = arith.constant dense<0.000000e+00> : vector<96x64xf32>
    %32 = tpu.matmul %29, %31, %cst_28 {dimension_numbers = #tpu.dot_dimension_numbers<[1], [0], [0], [1], [0, 0, 1, 1], [], []>} : vector<96x4xf32>, vector<4x64xf32>, vector<96x64xf32> -> vector<96x64xf32>
    %33 = arith.addf %28, %32 : vector<96x64xf32>
    %34 = vector.extract_strided_slice %11 {offsets = [4, 0], sizes = [96, 4], strides = [1, 1]} : vector<100x4xf32> to vector<96x4xf32>
    %35 = vector.extract_strided_slice %0 {offsets = [4, 0, 0], sizes = [1, 4, 64], strides = [1, 1, 1]} : vector<5x4x64xf32> to vector<1x4x64xf32>
    %36 = vector.shape_cast %35 : vector<1x4x64xf32> to vector<4x64xf32>
    %cst_29 = arith.constant dense<0.000000e+00> : vector<96x64xf32>
    %37 = tpu.matmul %34, %36, %cst_29 {dimension_numbers = #tpu.dot_dimension_numbers<[1], [0], [0], [1], [0, 0, 1, 1], [], []>} : vector<96x4xf32>, vector<4x64xf32>, vector<96x64xf32> -> vector<96x64xf32>
    %38 = arith.addf %33, %37 : vector<96x64xf32>
    %cst_30 = arith.constant 0.000000e+00 : f32
    %39 = vector.broadcast %cst_30 : f32 to vector<96x64xf32>
    %40 = arith.cmpf ogt, %38, %39 : vector<96x64xf32>
    %cst_31 = arith.constant 2.000000e-01 : f32
    %41 = vector.broadcast %cst_31 : f32 to vector<96x64xf32>
    %42 = arith.mulf %41, %38 : vector<96x64xf32>
    %43 = arith.select %40, %38, %42 : vector<96x64xi1>, vector<96x64xf32>
    %44 = vector.shape_cast %3 : vector<1x64xf32> to vector<1x64xf32>
    %45 = vector.broadcast %44 : vector<1x64xf32> to vector<92x64xf32>
    %46 = vector.extract_strided_slice %43 {offsets = [0, 0], sizes = [92, 64], strides = [1, 1]} : vector<96x64xf32> to vector<92x64xf32>
    %47 = vector.extract_strided_slice %2 {offsets = [0, 0, 0], sizes = [1, 64, 64], strides = [1, 1, 1]} : vector<5x64x64xf32> to vector<1x64x64xf32>
    %48 = vector.shape_cast %47 : vector<1x64x64xf32> to vector<64x64xf32>
    %cst_32 = arith.constant dense<0.000000e+00> : vector<92x64xf32>
    %49 = tpu.matmul %46, %48, %cst_32 {dimension_numbers = #tpu.dot_dimension_numbers<[1], [0], [0], [1], [0, 0, 1, 1], [], []>} : vector<92x64xf32>, vector<64x64xf32>, vector<92x64xf32> -> vector<92x64xf32>
    %50 = arith.addf %45, %49 : vector<92x64xf32>
    %51 = vector.extract_strided_slice %43 {offsets = [1, 0], sizes = [92, 64], strides = [1, 1]} : vector<96x64xf32> to vector<92x64xf32>
    %52 = vector.extract_strided_slice %2 {offsets = [1, 0, 0], sizes = [1, 64, 64], strides = [1, 1, 1]} : vector<5x64x64xf32> to vector<1x64x64xf32>
    %53 = vector.shape_cast %52 : vector<1x64x64xf32> to vector<64x64xf32>
    %cst_33 = arith.constant dense<0.000000e+00> : vector<92x64xf32>
    %54 = tpu.matmul %51, %53, %cst_33 {dimension_numbers = #tpu.dot_dimension_numbers<[1], [0], [0], [1], [0, 0, 1, 1], [], []>} : vector<92x64xf32>, vector<64x64xf32>, vector<92x64xf32> -> vector<92x64xf32>
    %55 = arith.addf %50, %54 : vector<92x64xf32>
    %56 = vector.extract_strided_slice %43 {offsets = [2, 0], sizes = [92, 64], strides = [1, 1]} : vector<96x64xf32> to vector<92x64xf32>
    %57 = vector.extract_strided_slice %2 {offsets = [2, 0, 0], sizes = [1, 64, 64], strides = [1, 1, 1]} : vector<5x64x64xf32> to vector<1x64x64xf32>
    %58 = vector.shape_cast %57 : vector<1x64x64xf32> to vector<64x64xf32>
    %cst_34 = arith.constant dense<0.000000e+00> : vector<92x64xf32>
    %59 = tpu.matmul %56, %58, %cst_34 {dimension_numbers = #tpu.dot_dimension_numbers<[1], [0], [0], [1], [0, 0, 1, 1], [], []>} : vector<92x64xf32>, vector<64x64xf32>, vector<92x64xf32> -> vector<92x64xf32>
    %60 = arith.addf %55, %59 : vector<92x64xf32>
    %61 = vector.extract_strided_slice %43 {offsets = [3, 0], sizes = [92, 64], strides = [1, 1]} : vector<96x64xf32> to vector<92x64xf32>
    %62 = vector.extract_strided_slice %2 {offsets = [3, 0, 0], sizes = [1, 64, 64], strides = [1, 1, 1]} : vector<5x64x64xf32> to vector<1x64x64xf32>
    %63 = vector.shape_cast %62 : vector<1x64x64xf32> to vector<64x64xf32>
    %cst_35 = arith.constant dense<0.000000e+00> : vector<92x64xf32>
    %64 = tpu.matmul %61, %63, %cst_35 {dimension_numbers = #tpu.dot_dimension_numbers<[1], [0], [0], [1], [0, 0, 1, 1], [], []>} : vector<92x64xf32>, vector<64x64xf32>, vector<92x64xf32> -> vector<92x64xf32>
    %65 = arith.addf %60, %64 : vector<92x64xf32>
    %66 = vector.extract_strided_slice %43 {offsets = [4, 0], sizes = [92, 64], strides = [1, 1]} : vector<96x64xf32> to vector<92x64xf32>
    %67 = vector.extract_strided_slice %2 {offsets = [4, 0, 0], sizes = [1, 64, 64], strides = [1, 1, 1]} : vector<5x64x64xf32> to vector<1x64x64xf32>
    %68 = vector.shape_cast %67 : vector<1x64x64xf32> to vector<64x64xf32>
    %cst_36 = arith.constant dense<0.000000e+00> : vector<92x64xf32>
    %69 = tpu.matmul %66, %68, %cst_36 {dimension_numbers = #tpu.dot_dimension_numbers<[1], [0], [0], [1], [0, 0, 1, 1], [], []>} : vector<92x64xf32>, vector<64x64xf32>, vector<92x64xf32> -> vector<92x64xf32>
    %70 = arith.addf %65, %69 : vector<92x64xf32>
    %cst_37 = arith.constant 0.000000e+00 : f32
    %71 = vector.broadcast %cst_37 : f32 to vector<92x64xf32>
    %72 = arith.cmpf ogt, %70, %71 : vector<92x64xf32>
    %cst_38 = arith.constant 2.000000e-01 : f32
    %73 = vector.broadcast %cst_38 : f32 to vector<92x64xf32>
    %74 = arith.mulf %73, %70 : vector<92x64xf32>
    %75 = arith.select %72, %70, %74 : vector<92x64xi1>, vector<92x64xf32>
    %76 = vector.shape_cast %5 : vector<1x64xf32> to vector<1x64xf32>
    %77 = vector.broadcast %76 : vector<1x64xf32> to vector<88x64xf32>
    %78 = vector.extract_strided_slice %75 {offsets = [0, 0], sizes = [88, 64], strides = [1, 1]} : vector<92x64xf32> to vector<88x64xf32>
    %79 = vector.extract_strided_slice %4 {offsets = [0, 0, 0], sizes = [1, 64, 64], strides = [1, 1, 1]} : vector<5x64x64xf32> to vector<1x64x64xf32>
    %80 = vector.shape_cast %79 : vector<1x64x64xf32> to vector<64x64xf32>
    %cst_39 = arith.constant dense<0.000000e+00> : vector<88x64xf32>
    %81 = tpu.matmul %78, %80, %cst_39 {dimension_numbers = #tpu.dot_dimension_numbers<[1], [0], [0], [1], [0, 0, 1, 1], [], []>} : vector<88x64xf32>, vector<64x64xf32>, vector<88x64xf32> -> vector<88x64xf32>
    %82 = arith.addf %77, %81 : vector<88x64xf32>
    %83 = vector.extract_strided_slice %75 {offsets = [1, 0], sizes = [88, 64], strides = [1, 1]} : vector<92x64xf32> to vector<88x64xf32>
    %84 = vector.extract_strided_slice %4 {offsets = [1, 0, 0], sizes = [1, 64, 64], strides = [1, 1, 1]} : vector<5x64x64xf32> to vector<1x64x64xf32>
    %85 = vector.shape_cast %84 : vector<1x64x64xf32> to vector<64x64xf32>
    %cst_40 = arith.constant dense<0.000000e+00> : vector<88x64xf32>
    %86 = tpu.matmul %83, %85, %cst_40 {dimension_numbers = #tpu.dot_dimension_numbers<[1], [0], [0], [1], [0, 0, 1, 1], [], []>} : vector<88x64xf32>, vector<64x64xf32>, vector<88x64xf32> -> vector<88x64xf32>
    %87 = arith.addf %82, %86 : vector<88x64xf32>
    %88 = vector.extract_strided_slice %75 {offsets = [2, 0], sizes = [88, 64], strides = [1, 1]} : vector<92x64xf32> to vector<88x64xf32>
    %89 = vector.extract_strided_slice %4 {offsets = [2, 0, 0], sizes = [1, 64, 64], strides = [1, 1, 1]} : vector<5x64x64xf32> to vector<1x64x64xf32>
    %90 = vector.shape_cast %89 : vector<1x64x64xf32> to vector<64x64xf32>
    %cst_41 = arith.constant dense<0.000000e+00> : vector<88x64xf32>
    %91 = tpu.matmul %88, %90, %cst_41 {dimension_numbers = #tpu.dot_dimension_numbers<[1], [0], [0], [1], [0, 0, 1, 1], [], []>} : vector<88x64xf32>, vector<64x64xf32>, vector<88x64xf32> -> vector<88x64xf32>
    %92 = arith.addf %87, %91 : vector<88x64xf32>
    %93 = vector.extract_strided_slice %75 {offsets = [3, 0], sizes = [88, 64], strides = [1, 1]} : vector<92x64xf32> to vector<88x64xf32>
    %94 = vector.extract_strided_slice %4 {offsets = [3, 0, 0], sizes = [1, 64, 64], strides = [1, 1, 1]} : vector<5x64x64xf32> to vector<1x64x64xf32>
    %95 = vector.shape_cast %94 : vector<1x64x64xf32> to vector<64x64xf32>
    %cst_42 = arith.constant dense<0.000000e+00> : vector<88x64xf32>
    %96 = tpu.matmul %93, %95, %cst_42 {dimension_numbers = #tpu.dot_dimension_numbers<[1], [0], [0], [1], [0, 0, 1, 1], [], []>} : vector<88x64xf32>, vector<64x64xf32>, vector<88x64xf32> -> vector<88x64xf32>
    %97 = arith.addf %92, %96 : vector<88x64xf32>
    %98 = vector.extract_strided_slice %75 {offsets = [4, 0], sizes = [88, 64], strides = [1, 1]} : vector<92x64xf32> to vector<88x64xf32>
    %99 = vector.extract_strided_slice %4 {offsets = [4, 0, 0], sizes = [1, 64, 64], strides = [1, 1, 1]} : vector<5x64x64xf32> to vector<1x64x64xf32>
    %100 = vector.shape_cast %99 : vector<1x64x64xf32> to vector<64x64xf32>
    %cst_43 = arith.constant dense<0.000000e+00> : vector<88x64xf32>
    %101 = tpu.matmul %98, %100, %cst_43 {dimension_numbers = #tpu.dot_dimension_numbers<[1], [0], [0], [1], [0, 0, 1, 1], [], []>} : vector<88x64xf32>, vector<64x64xf32>, vector<88x64xf32> -> vector<88x64xf32>
    %102 = arith.addf %97, %101 : vector<88x64xf32>
    %cst_44 = arith.constant 0.000000e+00 : f32
    %103 = vector.broadcast %cst_44 : f32 to vector<88x64xf32>
    %104 = arith.cmpf ogt, %102, %103 : vector<88x64xf32>
    %cst_45 = arith.constant 2.000000e-01 : f32
    %105 = vector.broadcast %cst_45 : f32 to vector<88x64xf32>
    %106 = arith.mulf %105, %102 : vector<88x64xf32>
    %107 = arith.select %104, %102, %106 : vector<88x64xi1>, vector<88x64xf32>
    %108 = vector.shape_cast %7 : vector<1x64xf32> to vector<1x64xf32>
    %109 = vector.broadcast %108 : vector<1x64xf32> to vector<84x64xf32>
    %110 = vector.extract_strided_slice %107 {offsets = [0, 0], sizes = [84, 64], strides = [1, 1]} : vector<88x64xf32> to vector<84x64xf32>
    %111 = vector.extract_strided_slice %6 {offsets = [0, 0, 0], sizes = [1, 64, 64], strides = [1, 1, 1]} : vector<5x64x64xf32> to vector<1x64x64xf32>
    %112 = vector.shape_cast %111 : vector<1x64x64xf32> to vector<64x64xf32>
    %cst_46 = arith.constant dense<0.000000e+00> : vector<84x64xf32>
    %113 = tpu.matmul %110, %112, %cst_46 {dimension_numbers = #tpu.dot_dimension_numbers<[1], [0], [0], [1], [0, 0, 1, 1], [], []>} : vector<84x64xf32>, vector<64x64xf32>, vector<84x64xf32> -> vector<84x64xf32>
    %114 = arith.addf %109, %113 : vector<84x64xf32>
    %115 = vector.extract_strided_slice %107 {offsets = [1, 0], sizes = [84, 64], strides = [1, 1]} : vector<88x64xf32> to vector<84x64xf32>
    %116 = vector.extract_strided_slice %6 {offsets = [1, 0, 0], sizes = [1, 64, 64], strides = [1, 1, 1]} : vector<5x64x64xf32> to vector<1x64x64xf32>
    %117 = vector.shape_cast %116 : vector<1x64x64xf32> to vector<64x64xf32>
    %cst_47 = arith.constant dense<0.000000e+00> : vector<84x64xf32>
    %118 = tpu.matmul %115, %117, %cst_47 {dimension_numbers = #tpu.dot_dimension_numbers<[1], [0], [0], [1], [0, 0, 1, 1], [], []>} : vector<84x64xf32>, vector<64x64xf32>, vector<84x64xf32> -> vector<84x64xf32>
    %119 = arith.addf %114, %118 : vector<84x64xf32>
    %120 = vector.extract_strided_slice %107 {offsets = [2, 0], sizes = [84, 64], strides = [1, 1]} : vector<88x64xf32> to vector<84x64xf32>
    %121 = vector.extract_strided_slice %6 {offsets = [2, 0, 0], sizes = [1, 64, 64], strides = [1, 1, 1]} : vector<5x64x64xf32> to vector<1x64x64xf32>
    %122 = vector.shape_cast %121 : vector<1x64x64xf32> to vector<64x64xf32>
    %cst_48 = arith.constant dense<0.000000e+00> : vector<84x64xf32>
    %123 = tpu.matmul %120, %122, %cst_48 {dimension_numbers = #tpu.dot_dimension_numbers<[1], [0], [0], [1], [0, 0, 1, 1], [], []>} : vector<84x64xf32>, vector<64x64xf32>, vector<84x64xf32> -> vector<84x64xf32>
    %124 = arith.addf %119, %123 : vector<84x64xf32>
    %125 = vector.extract_strided_slice %107 {offsets = [3, 0], sizes = [84, 64], strides = [1, 1]} : vector<88x64xf32> to vector<84x64xf32>
    %126 = vector.extract_strided_slice %6 {offsets = [3, 0, 0], sizes = [1, 64, 64], strides = [1, 1, 1]} : vector<5x64x64xf32> to vector<1x64x64xf32>
    %127 = vector.shape_cast %126 : vector<1x64x64xf32> to vector<64x64xf32>
    %cst_49 = arith.constant dense<0.000000e+00> : vector<84x64xf32>
    %128 = tpu.matmul %125, %127, %cst_49 {dimension_numbers = #tpu.dot_dimension_numbers<[1], [0], [0], [1], [0, 0, 1, 1], [], []>} : vector<84x64xf32>, vector<64x64xf32>, vector<84x64xf32> -> vector<84x64xf32>
    %129 = arith.addf %124, %128 : vector<84x64xf32>
    %130 = vector.extract_strided_slice %107 {offsets = [4, 0], sizes = [84, 64], strides = [1, 1]} : vector<88x64xf32> to vector<84x64xf32>
    %131 = vector.extract_strided_slice %6 {offsets = [4, 0, 0], sizes = [1, 64, 64], strides = [1, 1, 1]} : vector<5x64x64xf32> to vector<1x64x64xf32>
    %132 = vector.shape_cast %131 : vector<1x64x64xf32> to vector<64x64xf32>
    %cst_50 = arith.constant dense<0.000000e+00> : vector<84x64xf32>
    %133 = tpu.matmul %130, %132, %cst_50 {dimension_numbers = #tpu.dot_dimension_numbers<[1], [0], [0], [1], [0, 0, 1, 1], [], []>} : vector<84x64xf32>, vector<64x64xf32>, vector<84x64xf32> -> vector<84x64xf32>
    %134 = arith.addf %129, %133 : vector<84x64xf32>
    %cst_51 = arith.constant 0.000000e+00 : f32
    %135 = vector.broadcast %cst_51 : f32 to vector<84x64xf32>
    %136 = arith.cmpf ogt, %134, %135 : vector<84x64xf32>
    %cst_52 = arith.constant 2.000000e-01 : f32
    %137 = vector.broadcast %cst_52 : f32 to vector<84x64xf32>
    %138 = arith.mulf %137, %134 : vector<84x64xf32>
    %139 = arith.select %136, %134, %138 : vector<84x64xi1>, vector<84x64xf32>
    %140 = arith.mulf %139, %8 : vector<84x64xf32>
    %cst_53 = arith.constant dense<0.000000e+00> : vector<64xf32>
    %141 = vector.multi_reduction <add>, %140, %cst_53 [0] : vector<84x64xf32> to vector<64xf32>
    %142 = vector.shape_cast %141 : vector<64xf32> to vector<1x64xf32>
    %c1 = arith.constant 1 : index
    %c0_54 = arith.constant 0 : index
    %c0_55 = arith.constant 0 : index
    %143 = vector.load %arg0[%c1, %c0_54, %c0_55] : memref<2x100x4xf32, #tpu.memory_space<vmem>>, vector<1x100x4xf32>
    %144 = vector.shape_cast %143 : vector<1x100x4xf32> to vector<100x4xf32>
    %145 = vector.shape_cast %1 : vector<1x64xf32> to vector<1x64xf32>
    %146 = vector.broadcast %145 : vector<1x64xf32> to vector<96x64xf32>
    %147 = vector.extract_strided_slice %144 {offsets = [0, 0], sizes = [96, 4], strides = [1, 1]} : vector<100x4xf32> to vector<96x4xf32>
    %148 = vector.extract_strided_slice %0 {offsets = [0, 0, 0], sizes = [1, 4, 64], strides = [1, 1, 1]} : vector<5x4x64xf32> to vector<1x4x64xf32>
    %149 = vector.shape_cast %148 : vector<1x4x64xf32> to vector<4x64xf32>
    %cst_56 = arith.constant dense<0.000000e+00> : vector<96x64xf32>
    %150 = tpu.matmul %147, %149, %cst_56 {dimension_numbers = #tpu.dot_dimension_numbers<[1], [0], [0], [1], [0, 0, 1, 1], [], []>} : vector<96x4xf32>, vector<4x64xf32>, vector<96x64xf32> -> vector<96x64xf32>
    %151 = arith.addf %146, %150 : vector<96x64xf32>
    %152 = vector.extract_strided_slice %144 {offsets = [1, 0], sizes = [96, 4], strides = [1, 1]} : vector<100x4xf32> to vector<96x4xf32>
    %153 = vector.extract_strided_slice %0 {offsets = [1, 0, 0], sizes = [1, 4, 64], strides = [1, 1, 1]} : vector<5x4x64xf32> to vector<1x4x64xf32>
    %154 = vector.shape_cast %153 : vector<1x4x64xf32> to vector<4x64xf32>
    %cst_57 = arith.constant dense<0.000000e+00> : vector<96x64xf32>
    %155 = tpu.matmul %152, %154, %cst_57 {dimension_numbers = #tpu.dot_dimension_numbers<[1], [0], [0], [1], [0, 0, 1, 1], [], []>} : vector<96x4xf32>, vector<4x64xf32>, vector<96x64xf32> -> vector<96x64xf32>
    %156 = arith.addf %151, %155 : vector<96x64xf32>
    %157 = vector.extract_strided_slice %144 {offsets = [2, 0], sizes = [96, 4], strides = [1, 1]} : vector<100x4xf32> to vector<96x4xf32>
    %158 = vector.extract_strided_slice %0 {offsets = [2, 0, 0], sizes = [1, 4, 64], strides = [1, 1, 1]} : vector<5x4x64xf32> to vector<1x4x64xf32>
    %159 = vector.shape_cast %158 : vector<1x4x64xf32> to vector<4x64xf32>
    %cst_58 = arith.constant dense<0.000000e+00> : vector<96x64xf32>
    %160 = tpu.matmul %157, %159, %cst_58 {dimension_numbers = #tpu.dot_dimension_numbers<[1], [0], [0], [1], [0, 0, 1, 1], [], []>} : vector<96x4xf32>, vector<4x64xf32>, vector<96x64xf32> -> vector<96x64xf32>
    %161 = arith.addf %156, %160 : vector<96x64xf32>
    %162 = vector.extract_strided_slice %144 {offsets = [3, 0], sizes = [96, 4], strides = [1, 1]} : vector<100x4xf32> to vector<96x4xf32>
    %163 = vector.extract_strided_slice %0 {offsets = [3, 0, 0], sizes = [1, 4, 64], strides = [1, 1, 1]} : vector<5x4x64xf32> to vector<1x4x64xf32>
    %164 = vector.shape_cast %163 : vector<1x4x64xf32> to vector<4x64xf32>
    %cst_59 = arith.constant dense<0.000000e+00> : vector<96x64xf32>
    %165 = tpu.matmul %162, %164, %cst_59 {dimension_numbers = #tpu.dot_dimension_numbers<[1], [0], [0], [1], [0, 0, 1, 1], [], []>} : vector<96x4xf32>, vector<4x64xf32>, vector<96x64xf32> -> vector<96x64xf32>
    %166 = arith.addf %161, %165 : vector<96x64xf32>
    %167 = vector.extract_strided_slice %144 {offsets = [4, 0], sizes = [96, 4], strides = [1, 1]} : vector<100x4xf32> to vector<96x4xf32>
    %168 = vector.extract_strided_slice %0 {offsets = [4, 0, 0], sizes = [1, 4, 64], strides = [1, 1, 1]} : vector<5x4x64xf32> to vector<1x4x64xf32>
    %169 = vector.shape_cast %168 : vector<1x4x64xf32> to vector<4x64xf32>
    %cst_60 = arith.constant dense<0.000000e+00> : vector<96x64xf32>
    %170 = tpu.matmul %167, %169, %cst_60 {dimension_numbers = #tpu.dot_dimension_numbers<[1], [0], [0], [1], [0, 0, 1, 1], [], []>} : vector<96x4xf32>, vector<4x64xf32>, vector<96x64xf32> -> vector<96x64xf32>
    %171 = arith.addf %166, %170 : vector<96x64xf32>
    %cst_61 = arith.constant 0.000000e+00 : f32
    %172 = vector.broadcast %cst_61 : f32 to vector<96x64xf32>
    %173 = arith.cmpf ogt, %171, %172 : vector<96x64xf32>
    %cst_62 = arith.constant 2.000000e-01 : f32
    %174 = vector.broadcast %cst_62 : f32 to vector<96x64xf32>
    %175 = arith.mulf %174, %171 : vector<96x64xf32>
    %176 = arith.select %173, %171, %175 : vector<96x64xi1>, vector<96x64xf32>
    %177 = vector.shape_cast %3 : vector<1x64xf32> to vector<1x64xf32>
    %178 = vector.broadcast %177 : vector<1x64xf32> to vector<92x64xf32>
    %179 = vector.extract_strided_slice %176 {offsets = [0, 0], sizes = [92, 64], strides = [1, 1]} : vector<96x64xf32> to vector<92x64xf32>
    %180 = vector.extract_strided_slice %2 {offsets = [0, 0, 0], sizes = [1, 64, 64], strides = [1, 1, 1]} : vector<5x64x64xf32> to vector<1x64x64xf32>
    %181 = vector.shape_cast %180 : vector<1x64x64xf32> to vector<64x64xf32>
    %cst_63 = arith.constant dense<0.000000e+00> : vector<92x64xf32>
    %182 = tpu.matmul %179, %181, %cst_63 {dimension_numbers = #tpu.dot_dimension_numbers<[1], [0], [0], [1], [0, 0, 1, 1], [], []>} : vector<92x64xf32>, vector<64x64xf32>, vector<92x64xf32> -> vector<92x64xf32>
    %183 = arith.addf %178, %182 : vector<92x64xf32>
    %184 = vector.extract_strided_slice %176 {offsets = [1, 0], sizes = [92, 64], strides = [1, 1]} : vector<96x64xf32> to vector<92x64xf32>
    %185 = vector.extract_strided_slice %2 {offsets = [1, 0, 0], sizes = [1, 64, 64], strides = [1, 1, 1]} : vector<5x64x64xf32> to vector<1x64x64xf32>
    %186 = vector.shape_cast %185 : vector<1x64x64xf32> to vector<64x64xf32>
    %cst_64 = arith.constant dense<0.000000e+00> : vector<92x64xf32>
    %187 = tpu.matmul %184, %186, %cst_64 {dimension_numbers = #tpu.dot_dimension_numbers<[1], [0], [0], [1], [0, 0, 1, 1], [], []>} : vector<92x64xf32>, vector<64x64xf32>, vector<92x64xf32> -> vector<92x64xf32>
    %188 = arith.addf %183, %187 : vector<92x64xf32>
    %189 = vector.extract_strided_slice %176 {offsets = [2, 0], sizes = [92, 64], strides = [1, 1]} : vector<96x64xf32> to vector<92x64xf32>
    %190 = vector.extract_strided_slice %2 {offsets = [2, 0, 0], sizes = [1, 64, 64], strides = [1, 1, 1]} : vector<5x64x64xf32> to vector<1x64x64xf32>
    %191 = vector.shape_cast %190 : vector<1x64x64xf32> to vector<64x64xf32>
    %cst_65 = arith.constant dense<0.000000e+00> : vector<92x64xf32>
    %192 = tpu.matmul %189, %191, %cst_65 {dimension_numbers = #tpu.dot_dimension_numbers<[1], [0], [0], [1], [0, 0, 1, 1], [], []>} : vector<92x64xf32>, vector<64x64xf32>, vector<92x64xf32> -> vector<92x64xf32>
    %193 = arith.addf %188, %192 : vector<92x64xf32>
    %194 = vector.extract_strided_slice %176 {offsets = [3, 0], sizes = [92, 64], strides = [1, 1]} : vector<96x64xf32> to vector<92x64xf32>
    %195 = vector.extract_strided_slice %2 {offsets = [3, 0, 0], sizes = [1, 64, 64], strides = [1, 1, 1]} : vector<5x64x64xf32> to vector<1x64x64xf32>
    %196 = vector.shape_cast %195 : vector<1x64x64xf32> to vector<64x64xf32>
    %cst_66 = arith.constant dense<0.000000e+00> : vector<92x64xf32>
    %197 = tpu.matmul %194, %196, %cst_66 {dimension_numbers = #tpu.dot_dimension_numbers<[1], [0], [0], [1], [0, 0, 1, 1], [], []>} : vector<92x64xf32>, vector<64x64xf32>, vector<92x64xf32> -> vector<92x64xf32>
    %198 = arith.addf %193, %197 : vector<92x64xf32>
    %199 = vector.extract_strided_slice %176 {offsets = [4, 0], sizes = [92, 64], strides = [1, 1]} : vector<96x64xf32> to vector<92x64xf32>
    %200 = vector.extract_strided_slice %2 {offsets = [4, 0, 0], sizes = [1, 64, 64], strides = [1, 1, 1]} : vector<5x64x64xf32> to vector<1x64x64xf32>
    %201 = vector.shape_cast %200 : vector<1x64x64xf32> to vector<64x64xf32>
    %cst_67 = arith.constant dense<0.000000e+00> : vector<92x64xf32>
    %202 = tpu.matmul %199, %201, %cst_67 {dimension_numbers = #tpu.dot_dimension_numbers<[1], [0], [0], [1], [0, 0, 1, 1], [], []>} : vector<92x64xf32>, vector<64x64xf32>, vector<92x64xf32> -> vector<92x64xf32>
    %203 = arith.addf %198, %202 : vector<92x64xf32>
    %cst_68 = arith.constant 0.000000e+00 : f32
    %204 = vector.broadcast %cst_68 : f32 to vector<92x64xf32>
    %205 = arith.cmpf ogt, %203, %204 : vector<92x64xf32>
    %cst_69 = arith.constant 2.000000e-01 : f32
    %206 = vector.broadcast %cst_69 : f32 to vector<92x64xf32>
    %207 = arith.mulf %206, %203 : vector<92x64xf32>
    %208 = arith.select %205, %203, %207 : vector<92x64xi1>, vector<92x64xf32>
    %209 = vector.shape_cast %5 : vector<1x64xf32> to vector<1x64xf32>
    %210 = vector.broadcast %209 : vector<1x64xf32> to vector<88x64xf32>
    %211 = vector.extract_strided_slice %208 {offsets = [0, 0], sizes = [88, 64], strides = [1, 1]} : vector<92x64xf32> to vector<88x64xf32>
    %212 = vector.extract_strided_slice %4 {offsets = [0, 0, 0], sizes = [1, 64, 64], strides = [1, 1, 1]} : vector<5x64x64xf32> to vector<1x64x64xf32>
    %213 = vector.shape_cast %212 : vector<1x64x64xf32> to vector<64x64xf32>
    %cst_70 = arith.constant dense<0.000000e+00> : vector<88x64xf32>
    %214 = tpu.matmul %211, %213, %cst_70 {dimension_numbers = #tpu.dot_dimension_numbers<[1], [0], [0], [1], [0, 0, 1, 1], [], []>} : vector<88x64xf32>, vector<64x64xf32>, vector<88x64xf32> -> vector<88x64xf32>
    %215 = arith.addf %210, %214 : vector<88x64xf32>
    %216 = vector.extract_strided_slice %208 {offsets = [1, 0], sizes = [88, 64], strides = [1, 1]} : vector<92x64xf32> to vector<88x64xf32>
    %217 = vector.extract_strided_slice %4 {offsets = [1, 0, 0], sizes = [1, 64, 64], strides = [1, 1, 1]} : vector<5x64x64xf32> to vector<1x64x64xf32>
    %218 = vector.shape_cast %217 : vector<1x64x64xf32> to vector<64x64xf32>
    %cst_71 = arith.constant dense<0.000000e+00> : vector<88x64xf32>
    %219 = tpu.matmul %216, %218, %cst_71 {dimension_numbers = #tpu.dot_dimension_numbers<[1], [0], [0], [1], [0, 0, 1, 1], [], []>} : vector<88x64xf32>, vector<64x64xf32>, vector<88x64xf32> -> vector<88x64xf32>
    %220 = arith.addf %215, %219 : vector<88x64xf32>
    %221 = vector.extract_strided_slice %208 {offsets = [2, 0], sizes = [88, 64], strides = [1, 1]} : vector<92x64xf32> to vector<88x64xf32>
    %222 = vector.extract_strided_slice %4 {offsets = [2, 0, 0], sizes = [1, 64, 64], strides = [1, 1, 1]} : vector<5x64x64xf32> to vector<1x64x64xf32>
    %223 = vector.shape_cast %222 : vector<1x64x64xf32> to vector<64x64xf32>
    %cst_72 = arith.constant dense<0.000000e+00> : vector<88x64xf32>
    %224 = tpu.matmul %221, %223, %cst_72 {dimension_numbers = #tpu.dot_dimension_numbers<[1], [0], [0], [1], [0, 0, 1, 1], [], []>} : vector<88x64xf32>, vector<64x64xf32>, vector<88x64xf32> -> vector<88x64xf32>
    %225 = arith.addf %220, %224 : vector<88x64xf32>
    %226 = vector.extract_strided_slice %208 {offsets = [3, 0], sizes = [88, 64], strides = [1, 1]} : vector<92x64xf32> to vector<88x64xf32>
    %227 = vector.extract_strided_slice %4 {offsets = [3, 0, 0], sizes = [1, 64, 64], strides = [1, 1, 1]} : vector<5x64x64xf32> to vector<1x64x64xf32>
    %228 = vector.shape_cast %227 : vector<1x64x64xf32> to vector<64x64xf32>
    %cst_73 = arith.constant dense<0.000000e+00> : vector<88x64xf32>
    %229 = tpu.matmul %226, %228, %cst_73 {dimension_numbers = #tpu.dot_dimension_numbers<[1], [0], [0], [1], [0, 0, 1, 1], [], []>} : vector<88x64xf32>, vector<64x64xf32>, vector<88x64xf32> -> vector<88x64xf32>
    %230 = arith.addf %225, %229 : vector<88x64xf32>
    %231 = vector.extract_strided_slice %208 {offsets = [4, 0], sizes = [88, 64], strides = [1, 1]} : vector<92x64xf32> to vector<88x64xf32>
    %232 = vector.extract_strided_slice %4 {offsets = [4, 0, 0], sizes = [1, 64, 64], strides = [1, 1, 1]} : vector<5x64x64xf32> to vector<1x64x64xf32>
    %233 = vector.shape_cast %232 : vector<1x64x64xf32> to vector<64x64xf32>
    %cst_74 = arith.constant dense<0.000000e+00> : vector<88x64xf32>
    %234 = tpu.matmul %231, %233, %cst_74 {dimension_numbers = #tpu.dot_dimension_numbers<[1], [0], [0], [1], [0, 0, 1, 1], [], []>} : vector<88x64xf32>, vector<64x64xf32>, vector<88x64xf32> -> vector<88x64xf32>
    %235 = arith.addf %230, %234 : vector<88x64xf32>
    %cst_75 = arith.constant 0.000000e+00 : f32
    %236 = vector.broadcast %cst_75 : f32 to vector<88x64xf32>
    %237 = arith.cmpf ogt, %235, %236 : vector<88x64xf32>
    %cst_76 = arith.constant 2.000000e-01 : f32
    %238 = vector.broadcast %cst_76 : f32 to vector<88x64xf32>
    %239 = arith.mulf %238, %235 : vector<88x64xf32>
    %240 = arith.select %237, %235, %239 : vector<88x64xi1>, vector<88x64xf32>
    %241 = vector.shape_cast %7 : vector<1x64xf32> to vector<1x64xf32>
    %242 = vector.broadcast %241 : vector<1x64xf32> to vector<84x64xf32>
    %243 = vector.extract_strided_slice %240 {offsets = [0, 0], sizes = [84, 64], strides = [1, 1]} : vector<88x64xf32> to vector<84x64xf32>
    %244 = vector.extract_strided_slice %6 {offsets = [0, 0, 0], sizes = [1, 64, 64], strides = [1, 1, 1]} : vector<5x64x64xf32> to vector<1x64x64xf32>
    %245 = vector.shape_cast %244 : vector<1x64x64xf32> to vector<64x64xf32>
    %cst_77 = arith.constant dense<0.000000e+00> : vector<84x64xf32>
    %246 = tpu.matmul %243, %245, %cst_77 {dimension_numbers = #tpu.dot_dimension_numbers<[1], [0], [0], [1], [0, 0, 1, 1], [], []>} : vector<84x64xf32>, vector<64x64xf32>, vector<84x64xf32> -> vector<84x64xf32>
    %247 = arith.addf %242, %246 : vector<84x64xf32>
    %248 = vector.extract_strided_slice %240 {offsets = [1, 0], sizes = [84, 64], strides = [1, 1]} : vector<88x64xf32> to vector<84x64xf32>
    %249 = vector.extract_strided_slice %6 {offsets = [1, 0, 0], sizes = [1, 64, 64], strides = [1, 1, 1]} : vector<5x64x64xf32> to vector<1x64x64xf32>
    %250 = vector.shape_cast %249 : vector<1x64x64xf32> to vector<64x64xf32>
    %cst_78 = arith.constant dense<0.000000e+00> : vector<84x64xf32>
    %251 = tpu.matmul %248, %250, %cst_78 {dimension_numbers = #tpu.dot_dimension_numbers<[1], [0], [0], [1], [0, 0, 1, 1], [], []>} : vector<84x64xf32>, vector<64x64xf32>, vector<84x64xf32> -> vector<84x64xf32>
    %252 = arith.addf %247, %251 : vector<84x64xf32>
    %253 = vector.extract_strided_slice %240 {offsets = [2, 0], sizes = [84, 64], strides = [1, 1]} : vector<88x64xf32> to vector<84x64xf32>
    %254 = vector.extract_strided_slice %6 {offsets = [2, 0, 0], sizes = [1, 64, 64], strides = [1, 1, 1]} : vector<5x64x64xf32> to vector<1x64x64xf32>
    %255 = vector.shape_cast %254 : vector<1x64x64xf32> to vector<64x64xf32>
    %cst_79 = arith.constant dense<0.000000e+00> : vector<84x64xf32>
    %256 = tpu.matmul %253, %255, %cst_79 {dimension_numbers = #tpu.dot_dimension_numbers<[1], [0], [0], [1], [0, 0, 1, 1], [], []>} : vector<84x64xf32>, vector<64x64xf32>, vector<84x64xf32> -> vector<84x64xf32>
    %257 = arith.addf %252, %256 : vector<84x64xf32>
    %258 = vector.extract_strided_slice %240 {offsets = [3, 0], sizes = [84, 64], strides = [1, 1]} : vector<88x64xf32> to vector<84x64xf32>
    %259 = vector.extract_strided_slice %6 {offsets = [3, 0, 0], sizes = [1, 64, 64], strides = [1, 1, 1]} : vector<5x64x64xf32> to vector<1x64x64xf32>
    %260 = vector.shape_cast %259 : vector<1x64x64xf32> to vector<64x64xf32>
    %cst_80 = arith.constant dense<0.000000e+00> : vector<84x64xf32>
    %261 = tpu.matmul %258, %260, %cst_80 {dimension_numbers = #tpu.dot_dimension_numbers<[1], [0], [0], [1], [0, 0, 1, 1], [], []>} : vector<84x64xf32>, vector<64x64xf32>, vector<84x64xf32> -> vector<84x64xf32>
    %262 = arith.addf %257, %261 : vector<84x64xf32>
    %263 = vector.extract_strided_slice %240 {offsets = [4, 0], sizes = [84, 64], strides = [1, 1]} : vector<88x64xf32> to vector<84x64xf32>
    %264 = vector.extract_strided_slice %6 {offsets = [4, 0, 0], sizes = [1, 64, 64], strides = [1, 1, 1]} : vector<5x64x64xf32> to vector<1x64x64xf32>
    %265 = vector.shape_cast %264 : vector<1x64x64xf32> to vector<64x64xf32>
    %cst_81 = arith.constant dense<0.000000e+00> : vector<84x64xf32>
    %266 = tpu.matmul %263, %265, %cst_81 {dimension_numbers = #tpu.dot_dimension_numbers<[1], [0], [0], [1], [0, 0, 1, 1], [], []>} : vector<84x64xf32>, vector<64x64xf32>, vector<84x64xf32> -> vector<84x64xf32>
    %267 = arith.addf %262, %266 : vector<84x64xf32>
    %cst_82 = arith.constant 0.000000e+00 : f32
    %268 = vector.broadcast %cst_82 : f32 to vector<84x64xf32>
    %269 = arith.cmpf ogt, %267, %268 : vector<84x64xf32>
    %cst_83 = arith.constant 2.000000e-01 : f32
    %270 = vector.broadcast %cst_83 : f32 to vector<84x64xf32>
    %271 = arith.mulf %270, %267 : vector<84x64xf32>
    %272 = arith.select %269, %267, %271 : vector<84x64xi1>, vector<84x64xf32>
    %273 = arith.mulf %272, %8 : vector<84x64xf32>
    %cst_84 = arith.constant dense<0.000000e+00> : vector<64xf32>
    %274 = vector.multi_reduction <add>, %273, %cst_84 [0] : vector<84x64xf32> to vector<64xf32>
    %275 = vector.shape_cast %274 : vector<64xf32> to vector<1x64xf32>
    %276 = tpu.concatenate %142, %275 in 0 : vector<1x64xf32>, vector<1x64xf32> -> vector<2x64xf32>
    %cst_85 = arith.constant dense<0.000000e+00> : vector<2xf32>
    %277 = vector.multi_reduction <add>, %276, %cst_85 [1] : vector<2x64xf32> to vector<2xf32>
    %278 = vector.shape_cast %277 : vector<2xf32> to vector<2x1xf32>
    %279 = vector.broadcast %9 : vector<1x1xf32> to vector<2x1xf32>
    %280 = arith.addf %278, %279 : vector<2x1xf32>
    %c0_86 = arith.constant 0 : index
    %c0_87 = arith.constant 0 : index
    %281 = vector.load %arg11[%c0_86, %c0_87] : memref<2x1xf32, #tpu.memory_space<vmem>>, vector<2x1xf32>
    tpu.vector_store %arg11[%c0_86, %c0_87], %280 {strides = array<i32>} : memref<2x1xf32, #tpu.memory_space<vmem>>, vector<2x1xf32>,
    return
  }
}

</mosaic_0001>

<bundles_post_ra>
// kernel: criticx_forward.1
= control target key start
LH: loop header
LB: loop body
LE: loop exit
PB: predicated region body
PF: predicated region fallthrough
CT: control target
= control target key end

     0   :  { %vm237_vm0 = vcmask 1043456   ;;  %vm200_vm1 = vcmask 31744   ;;  %vm379_vm2 = vcmask 1046528   ;;  %vm759_vm3 = vcmask 1044480   ;;  %s15395_s1 = inlined_call_operand.vmem [shape: f32[5,4,64], index: 1, kind: input, shape index: {}]   ;;  %s15396_s0 = inlined_call_operand.vmem [shape: f32[2,100,4], index: 0, kind: input, shape index: {}]   ;;  %s15397_s3 = inlined_call_operand.vmem [shape: f32[5,64,64], index: 3, kind: input, shape index: {}]   ;;  %s15398_s2 = inlined_call_operand.vmem [shape: f32[1,64], index: 2, kind: input, shape index: {}]   ;;  %s15399_s5 = inlined_call_operand.vmem [shape: f32[5,64,64], index: 5, kind: input, shape index: {}]   ;;  %s15400_s4 = inlined_call_operand.vmem [shape: f32[1,64], index: 4, kind: input, shape index: {}]   ;;  %s15401_s7 = inlined_call_operand.vmem [shape: f32[5,64,64], index: 7, kind: input, shape index: {}]   ;;  %s15402_s6 = inlined_call_operand.vmem [shape: f32[1,64], index: 6, kind: input, shape index: {}]   ;;  %s15403_s8 = inlined_call_operand.vmem [shape: f32[1,64], index: 8, kind: input, shape index: {}]   ;;  %s15404_s9 = inlined_call_operand.vmem [shape: f32[84,64], index: 9, kind: input, shape index: {}]   ;;  %s15405_s10 = inlined_call_operand.<no memory space> [shape: f32[1,1], index: 10, kind: input, shape index: {}]   ;;  %s15406_s11 = inlined_call_operand.vmem [shape: f32[2,1], index: 11, kind: output, shape index: {}]  }
   0x1   :  { %v40_v0 = vld [vmem:[%s15395_s1] sm:$0xf]  ;;  %v11595_v2 = vld [vmem:[%s15396_s0 + $0x8] sm:$0xff]  ;;  %v41_v3 = vld [vmem:[%s15395_s1 + $0x4] sm:$0xf]  ;;  %vm569_vm4 = vcmask 1045504  }
   0x2   :  { %v11590_v1 = vld [vmem:[%s15396_s0] sm:$0xff]  ;;  %8935 = vmatprep.subr.msk.mxu0 %vm237_vm0, %v40_v0  ;;  %v11606_v4 = vld [vmem:[%s15396_s0 + $0x10] sm:$0xff]  ;;  %v11618_v5 = vld [vmem:[%s15396_s0 + $0x18] sm:$0xff]  ;;  %v381_v11 = vrot.slane %v11595_v2, 1  ;;  %v761_v18 = vrot.slane %v11595_v2, 3  ;;  %v950_v47 = vrot.slane %v11595_v2, 4 }
   0x3   :  { %8937 = vmatprep.mubr.msk.f32.mxu0 %vm200_vm1, %v11590_v1  ;;  %8936 = vmatpush3.msk.msra.mxu0 %vm237_vm0, %v40_v0  ;;  %v11623_v6 = vld [vmem:[%s15396_s0 + $0x20] sm:$0xff]  ;;  %v11628_v7 = vld [vmem:[%s15395_s1 + $0x8] sm:$0xf]  ;;  %v11644_v9 = vld [vmem:[%s15396_s0 + $0x30] sm:$0xff]  ;;  %v380_v10 = vrot.slane %v11590_v1, 1  ;;  %v763_v12 = vrot.slane %v11606_v4, 3 }
   0x4   :  { %8938 = vmatmul.mubr.msk.f32.vlgmr.msra.gmra.mrb[0].mxu0 %vm200_vm1, %v11595_v2  ;;  %8955 = vmatprep.subr.msk.mxu0 %vm237_vm0, %v41_v3  ;;  %v11639_v8 = vld [vmem:[%s15396_s0 + $0x28] sm:$0xff]  ;;  %v11656_v13 = vld [vmem:[%s15396_s0 + $0x38] sm:$0xff]  ;;  %v383_v14 = vrot.slane %v11606_v4, 1  ;;  %v952_v15 = vrot.slane %v11606_v4, 4  ;;  %v11663_v16 = vld [vmem:[%s15396_s0 + $0x40] sm:$0xff]  ;;  %v760_v17 = vrot.slane %v11590_v1, 3 }
   0x5   :  { %8956 = vmatpush3.msk.msra.mxu0 %vm237_vm0, %v41_v3  ;;  %8940 = vmatprep.mubr.msk.f32.mxu0 %vm200_vm1, %v11606_v4  ;;  %v382_v19 = vsel %vm379_vm2, %v380_v10, %v381_v11  ;;  %v385_v20 = vrot.slane %v11618_v5, 1  ;;  %v387_v21 = vrot.slane %v11623_v6, 1  ;;  %v389_v22 = vrot.slane %v11639_v8, 1  ;;  %v11686_v27 = vld [vmem:[%s15396_s0 + $0x48] sm:$0xff]  ;;  %v11691_v28 = vld [vmem:[%s15396_s0 + $0x50] sm:$0xff]  ;;  %v11708_v37 = vld [vmem:[%s15396_s0 + $0x58] sm:$0xff] }
   0x6   :  { %8975 = vmatprep.subr.msk.mxu0 %vm237_vm0, %v11628_v7  ;;  %v11674_v23 = vsel %vm759_vm3, %v760_v17, %v761_v18  ;;  %v11677_v24 = vsel %vm759_vm3, %v761_v18, %v763_v12  ;;  %v765_v25 = vrot.slane %v11618_v5, 3  ;;  %v767_v26 = vrot.slane %v11623_v6, 3  ;;  %v46_v54 = vld [vmem:[%s15397_s3] sm:$0xff]  ;;  %v47_v59 = vld [vmem:[%s15397_s3 + $0x8] sm:$0xff]  ;;  %v48_v60 = vld [vmem:[%s15397_s3 + $0x10] sm:$0xff] }
   0x7   :  { %v769_v29 = vrot.slane %v11639_v8, 3  ;;  %v771_v30 = vrot.slane %v11644_v9, 3  ;;  %v773_v31 = vrot.slane %v11656_v13, 3  ;;  %v775_v32 = vrot.slane %v11663_v16, 3  ;;  %v49_v61 = vld [vmem:[%s15397_s3 + $0x18] sm:$0xff] }
   0x8   :  { %8941 = vmatmul.mubr.msk.f32.gmra.mrb[2].mxu0 %vm200_vm1, %v11618_v5  ;;  %v11698_v33 = vsel %vm759_vm3, %v763_v12, %v765_v25  ;;  %v11701_v34 = vsel %vm759_vm3, %v765_v25, %v767_v26  ;;  %v777_v35 = vrot.slane %v11686_v27, 3  ;;  %v779_v36 = vrot.slane %v11691_v28, 3  ;;  %v11777_v62 = vld [vmem:[%s15396_s0 + $0x60] sm:$0xf] }
   0x9   :  { %8943 = vmatprep.mubr.msk.f32.mxu0 %vm200_vm1, %v11623_v6  ;;  %v11711_v38 = vsel %vm759_vm3, %v767_v26, %v769_v29  ;;  %v11714_v39 = vsel %vm759_vm3, %v769_v29, %v771_v30  ;;  %v11717_v40 = vsel %vm759_vm3, %v771_v30, %v773_v31  ;;  %v11720_v41 = vsel %vm759_vm3, %v773_v31, %v775_v32 }
   0xa   :  { %v384_v42 = vsel %vm379_vm2, %v381_v11, %v383_v14  ;;  %v11726_v43 = vsel %vm759_vm3, %v775_v32, %v777_v35  ;;  %v11729_v44 = vsel %vm759_vm3, %v777_v35, %v779_v36  ;;  %v781_v45 = vrot.slane %v11708_v37, 3 }
   0xb   :  { %v949_v46 = vrot.slane %v11590_v1, 4  ;;  %v954_v48 = vrot.slane %v11618_v5, 4  ;;  %v956_v49 = vrot.slane %v11623_v6, 4  ;;  %v386_v50 = vsel %vm379_vm2, %v383_v14, %v385_v20 }
   0xc   :  { %8944 = vmatmul.mubr.msk.f32.gmra.mrb[4].mxu0 %vm200_vm1, %v11639_v8  ;;  %v11744_v51 = vsel %vm759_vm3, %v779_v36, %v781_v45  ;;  %v958_v52 = vrot.slane %v11639_v8, 4  ;;  %v960_v53 = vrot.slane %v11644_v9, 4  ;;  %v11755_v56 = vsel %vm237_vm0, %v950_v47, %v952_v15 }
   0xd   :  { %8946 = vmatprep.mubr.msk.f32.mxu0 %vm200_vm1, %v11644_v9  ;;  %v11752_v55 = vsel %vm237_vm0, %v949_v46, %v950_v47  ;;  %v11758_v57 = vsel %vm237_vm0, %v952_v15, %v954_v48  ;;  %v11761_v58 = vsel %vm237_vm0, %v954_v48, %v956_v49  ;;  %v962_v3 = vrot.slane %v11656_v13, 4 }
   0xe   :  { %v11780_v63 = vsel %vm237_vm0, %v956_v49, %v958_v52  ;;  %v11783_v0 = vsel %vm237_vm0, %v958_v52, %v960_v53  ;;  %v964_v10 = vrot.slane %v11663_v16, 4  ;;  %v966_v11 = vrot.slane %v11686_v27, 4 }
   0xf   :  { %v968_v12 = vrot.slane %v11691_v28, 4  ;;  %v970_v14 = vrot.slane %v11708_v37, 4  ;;  %v972_v15 = vrot.slane %v11777_v62, 4  ;;  %v11793_v17 = vsel %vm237_vm0, %v960_v53, %v962_v3 }
  0x10   :  { %8947 = vmatmul.mubr.msk.f32.gmra.mrb[6].mxu0 %vm200_vm1, %v11656_v13  ;;  %v11796_v18 = vsel %vm237_vm0, %v962_v3, %v964_v10  ;;  %v11798_v25 = vpack.c.bf16 %v47_v59, %v46_v54  ;;  %v11800_v26 = vpack.c.bf16 %v49_v61, %v48_v60  ;;  %v11806_v29 = vsel %vm237_vm0, %v964_v10, %v966_v11 }
  0x11   :  { %8949 = vmatprep.mubr.msk.f32.mxu0 %vm200_vm1, %v11663_v16  ;;  %v11809_v30 = vsel %vm237_vm0, %v966_v11, %v968_v12  ;;  %v11812_v31 = vsel %vm237_vm0, %v968_v12, %v970_v14  ;;  %v11815_v32 = vsel %vm237_vm0, %v970_v14, %v972_v15  ;;  %v388_v35 = vsel %vm379_vm2, %v385_v20, %v387_v21  ;;  %v44_v14 = vld [vmem:[%s15395_s1 + $0x10] sm:$0xf] }
  0x12   :  { %15487 = vst [vmem:[#allocation3_spill] sm:$0xff] %v11798_v25  ;;  %15488 = vst [vmem:[#allocation4_spill] sm:$0xff] %v11800_v26  ;;  %10456 = vmatprep.subr.bf16.mxu1 %v11798_v25  ;;  %v391_v36 = vrot.slane %v11644_v9, 1  ;;  %v393_v46 = vrot.slane %v11656_v13, 1  ;;  %v395_v20 = vrot.slane %v11663_v16, 1  ;;  %v397_v47 = vrot.slane %v11686_v27, 1 }
  0x13   :  { %10458 = vmatpush3.bf16.msra.mxu1 %v11798_v25  ;;  %v399_v49 = vrot.slane %v11691_v28, 1  ;;  %v403_v53 = vrot.slane %v11777_v62, 1  ;;  %v570_v59 = vrot.slane %v11590_v1, 2  ;;  %v571_v60 = vrot.slane %v11595_v2, 2 }
  0x14   :  { %8950 = vmatmul.mubr.msk.f32.gmra.mrb[8].mxu0 %vm200_vm1, %v11686_v27  ;;  %10460 = vmatprep.subr.bf16.mxu1 %v11800_v26  ;;  %v396_v48 = vsel %vm379_vm2, %v393_v46, %v395_v20  ;;  %v573_v61 = vrot.slane %v11606_v4, 2  ;;  %v575_v11 = vrot.slane %v11618_v5, 2  ;;  %v577_v2 = vrot.slane %v11623_v6, 2 }
  0x15   :  { %8952 = vmatprep.mubr.msk.f32.mxu0 %vm200_vm1, %v11691_v28  ;;  %v400_v52 = vsel %vm379_vm2, %v397_v47, %v399_v49  ;;  %v572_v10 = vsel %vm569_vm4, %v570_v59, %v571_v60  ;;  %v579_v4 = vrot.slane %v11639_v8, 2  ;;  %v581_v15 = vrot.slane %v11644_v9, 2  ;;  %v67_v59 = vld [vmem:[%s15397_s3 + $0xa8] sm:$0xff] }
  0x16   :  { %v574_v1 = vsel %vm569_vm4, %v571_v60, %v573_v61  ;;  %v576_v12 = vsel %vm569_vm4, %v573_v61, %v575_v11  ;;  %v578_v5 = vsel %vm569_vm4, %v575_v11, %v577_v2  ;;  %vm1180_vm5 = vcmask 523264   ;;  %v91_v60 = vld [vmem:[%s15399_s5 + $0x20] sm:$0xff]  ;;  %v92_v61 = vld [vmem:[%s15399_s5 + $0x28] sm:$0xff] }
  0x17   :  { %10462 = vmatpush3.bf16.msra.mxu1 %v11800_v26  ;;  %v580_v6 = vsel %vm569_vm4, %v577_v2, %v579_v4  ;;  %v582_v8 = vsel %vm569_vm4, %v579_v4, %v581_v15 }
  0x18   :  { %8953 = vmatmul.mubr.msk.f32.gmra.mrb[10].mxu0 %vm200_vm1, %v11708_v37 }
  0x19   :  { %8957 = vmatprep.mubr.msk.f32.mxu0 %vm200_vm1, %v382_v19  ;;  %v43_v19 = vld [vmem:[%s15395_s1 + $0xc] sm:$0xf] }
  0x1c   :  { %8958 = vmatmul.mubr.msk.f32.vlgmr.msra.gmra.mrb[0].mxu0 %vm200_vm1, %v384_v42  ;;  %v390_v42 = vsel %vm379_vm2, %v387_v21, %v389_v22  ;;  %v394_v21 = vsel %vm379_vm2, %v391_v36, %v393_v46 }
  0x1d   :  { %8976 = vmatpush3.msk.msra.mxu0 %vm237_vm0, %v11628_v7  ;;  %8960 = vmatprep.mubr.msk.f32.mxu0 %vm200_vm1, %v386_v50  ;;  %v392_v7 = vsel %vm379_vm2, %v389_v22, %v391_v36  ;;  %v398_v50 = vsel %vm379_vm2, %v395_v20, %v397_v47  ;;  %v401_v22 = vrot.slane %v11708_v37, 1 }
  0x1e   :  { %8995 = vmatprep.subr.msk.mxu0 %vm237_vm0, %v43_v19 }
  0x1f   :  { %v402_v54 = vsel %vm379_vm2, %v399_v49, %v401_v22  ;;  %v404_v3 = vsel %vm379_vm2, %v401_v22, %v403_v53  ;;  %v64_v49 = vld [vmem:[%s15397_s3 + $0x90] sm:$0xff]  ;;  %v66_v22 = vld [vmem:[%s15397_s3 + $0xa0] sm:$0xff] }
  0x20   :  { %8961 = vmatmul.mubr.msk.f32.gmra.mrb[2].mxu0 %vm200_vm1, %v388_v35  ;;  %v583_v35 = vrot.slane %v11656_v13, 2  ;;  %v589_v13 = vrot.slane %v11691_v28, 2 }
  0x21   :  { %8963 = vmatprep.mubr.msk.f32.mxu0 %vm200_vm1, %v390_v42  ;;  %v587_v42 = vrot.slane %v11686_v27, 2  ;;  %v593_v27 = vrot.slane %v11777_v62, 2 }
  0x22   :  { %v584_v36 = vsel %vm569_vm4, %v581_v15, %v583_v35 }
  0x24   :  { %8964 = vmatmul.mubr.msk.f32.gmra.mrb[4].mxu0 %vm200_vm1, %v392_v7  ;;  %v591_v7 = vrot.slane %v11708_v37, 2 }
  0x25   :  { %8966 = vmatprep.mubr.msk.f32.mxu0 %vm200_vm1, %v394_v21  ;;  %v63_v21 = vld [vmem:[%s15397_s3 + $0x88] sm:$0xff] }
  0x26   :  { %v592_v20 = vsel %vm569_vm4, %v589_v13, %v591_v7  ;;  %v594_v28 = vsel %vm569_vm4, %v591_v7, %v593_v27 }
  0x28   :  { %8967 = vmatmul.mubr.msk.f32.gmra.mrb[6].mxu0 %vm200_vm1, %v396_v48 }
  0x29   :  { %8969 = vmatprep.mubr.msk.f32.mxu0 %vm200_vm1, %v398_v50  ;;  %v65_v50 = vld [vmem:[%s15397_s3 + $0x98] sm:$0xff] }
  0x2a   :  { %v12060_v4 = vpack.c.bf16 %v65_v50, %v64_v49 }
  0x2c   :  { %8970 = vmatmul.mubr.msk.f32.gmra.mrb[8].mxu0 %vm200_vm1, %v400_v52  ;;  %15496 = vst [vmem:[#allocation12_spill] sm:$0xff] %v12060_v4 }
  0x2d   :  { %8972 = vmatprep.mubr.msk.f32.mxu0 %vm200_vm1, %v402_v54 }
  0x30   :  { %8973 = vmatmul.mubr.msk.f32.gmra.mrb[10].mxu0 %vm200_vm1, %v404_v3 }
  0x31   :  { %8977 = vmatprep.mubr.msk.f32.mxu0 %vm200_vm1, %v572_v10 }
  0x34   :  { %8978 = vmatmul.mubr.msk.f32.vlgmr.msra.gmra.mrb[0].mxu0 %vm200_vm1, %v574_v1 }
  0x35   :  { %8996 = vmatpush3.msk.msra.mxu0 %vm237_vm0, %v43_v19  ;;  %8980 = vmatprep.mubr.msk.f32.mxu0 %vm200_vm1, %v576_v12  ;;  %v585_v19 = vrot.slane %v11663_v16, 2  ;;  %v590_v16 = vsel %vm569_vm4, %v587_v42, %v589_v13 }
  0x36   :  { %9015 = vmatprep.subr.msk.mxu0 %vm237_vm0, %v44_v14 }
  0x37   :  { %v586_v9 = vsel %vm569_vm4, %v583_v35, %v585_v19  ;;  %v588_v46 = vsel %vm569_vm4, %v585_v19, %v587_v42  ;;  %v12068_v35 = vpack.c.bf16 %v92_v61, %v91_v60 }
  0x38   :  { %8981 = vmatmul.mubr.msk.f32.gmra.mrb[2].mxu0 %vm200_vm1, %v578_v5 }
  0x39   :  { %8983 = vmatprep.mubr.msk.f32.mxu0 %vm200_vm1, %v580_v6  ;;  %v12065_v6 = vpack.c.bf16 %v67_v59, %v66_v22 }
  0x3b   :  { %15497 = vst [vmem:[#allocation13_spill] sm:$0xff] %v12065_v6 }
  0x3c   :  { %8984 = vmatmul.mubr.msk.f32.gmra.mrb[4].mxu0 %vm200_vm1, %v582_v8 }
  0x3d   :  { %8986 = vmatprep.mubr.msk.f32.mxu0 %vm200_vm1, %v584_v36 }
  0x40   :  { %8987 = vmatmul.mubr.msk.f32.gmra.mrb[6].mxu0 %vm200_vm1, %v586_v9 }
  0x41   :  { %8989 = vmatprep.mubr.msk.f32.mxu0 %vm200_vm1, %v588_v46 }
  0x44   :  { %8990 = vmatmul.mubr.msk.f32.gmra.mrb[8].mxu0 %vm200_vm1, %v590_v16 }
  0x45   :  { %8992 = vmatprep.mubr.msk.f32.mxu0 %vm200_vm1, %v592_v20 }
  0x48   :  { %8993 = vmatmul.mubr.msk.f32.gmra.mrb[10].mxu0 %vm200_vm1, %v594_v28 }
  0x49   :  { %8997 = vmatprep.mubr.msk.f32.mxu0 %vm200_vm1, %v11674_v23  ;;  %v783_v23 = vrot.slane %v11777_v62, 3  ;;  %v88_v62 = vld [vmem:[%s15399_s5 + $0x8] sm:$0xff] }
  0x4c   :  { %8998 = vmatmul.mubr.msk.f32.vlgmr.msra.gmra.mrb[0].mxu0 %vm200_vm1, %v11677_v24  ;;  %v784_v24 = vsel %vm759_vm3, %v781_v45, %v783_v23  ;;  %v11987_v45 = vld [vmem:[%s15398_s2] ss:$0 sm:$0xff] }
  0x4d   :  { %9016 = vmatpush3.msk.msra.mxu0 %vm237_vm0, %v44_v14  ;;  %9000 = vmatprep.mubr.msk.f32.mxu0 %vm200_vm1, %v11698_v33  ;;  %v50_v33 = vld [vmem:[%s15397_s3 + $0x20] sm:$0xff] }
  0x50   :  { %9001 = vmatmul.mubr.msk.f32.gmra.mrb[2].mxu0 %vm200_vm1, %v11701_v34  ;;  %v51_v34 = vld [vmem:[%s15397_s3 + $0x28] sm:$0xff] }
  0x51   :  { %9003 = vmatprep.mubr.msk.f32.mxu0 %vm200_vm1, %v11711_v38  ;;  %v11961_v37 = vpack.c.bf16 %v51_v34, %v50_v33  ;;  %v52_v38 = vld [vmem:[%s15397_s3 + $0x30] sm:$0xff] }
  0x53   :  { %15489 = vst [vmem:[#allocation5_spill] sm:$0xff] %v11961_v37  ;;  %10464 = vmatprep.subr.bf16.mxu1 %v11961_v37 }
  0x54   :  { %9004 = vmatmul.mubr.msk.f32.gmra.mrb[4].mxu0 %vm200_vm1, %v11714_v39  ;;  %10466 = vmatpush3.bf16.msra.mxu1 %v11961_v37  ;;  %v53_v39 = vld [vmem:[%s15397_s3 + $0x38] sm:$0xff] }
  0x55   :  { %9006 = vmatprep.mubr.msk.f32.mxu0 %vm200_vm1, %v11717_v40  ;;  %v11971_v40 = vpack.c.bf16 %v53_v39, %v52_v38 }
  0x57   :  { %15490 = vst [vmem:[#allocation6_spill] sm:$0xff] %v11971_v40  ;;  %10468 = vmatprep.subr.bf16.mxu1 %v11971_v40 }
  0x58   :  { %9007 = vmatmul.mubr.msk.f32.gmra.mrb[6].mxu0 %vm200_vm1, %v11720_v41  ;;  %10470 = vmatpush3.bf16.msra.mxu1 %v11971_v40  ;;  %v54_v41 = vld [vmem:[%s15397_s3 + $0x40] sm:$0xff] }
  0x59   :  { %9009 = vmatprep.mubr.msk.f32.mxu0 %vm200_vm1, %v11726_v43  ;;  %v55_v43 = vld [vmem:[%s15397_s3 + $0x48] sm:$0xff] }
  0x5c   :  { %9010 = vmatmul.mubr.msk.f32.gmra.mrb[8].mxu0 %vm200_vm1, %v11729_v44  ;;  %v11981_v44 = vpack.c.bf16 %v55_v43, %v54_v41 }
  0x5d   :  { %9012 = vmatprep.mubr.msk.f32.mxu0 %vm200_vm1, %v11744_v51  ;;  %v56_v51 = vld [vmem:[%s15397_s3 + $0x50] sm:$0xff] }
  0x5e   :  { %15491 = vst [vmem:[#allocation7_spill] sm:$0xff] %v11981_v44  ;;  %10472 = vmatprep.subr.bf16.mxu1 %v11981_v44 }
  0x60   :  { %9013 = vmatmul.mubr.msk.f32.gmra.mrb[10].mxu0 %vm200_vm1, %v784_v24 }
  0x61   :  { %9017 = vmatprep.mubr.msk.f32.mxu0 %vm200_vm1, %v11752_v55  ;;  %v57_v55 = vld [vmem:[%s15397_s3 + $0x58] sm:$0xff] }
  0x62   :  { %v12042_v54 = vpack.c.bf16 %v57_v55, %v56_v51 }
  0x64   :  { %9018 = vmatmul.mubr.msk.f32.vlgmr.msra.gmra.mrb[0].mxu0 %vm200_vm1, %v11755_v56  ;;  %v58_v56 = vld [vmem:[%s15397_s3 + $0x60] sm:$0xff]  ;;  %15492 = vst [vmem:[#allocation8_spill] sm:$0xff] %v12042_v54 }
  0x65   :  { %9020 = vmatprep.mubr.msk.f32.mxu0 %vm200_vm1, %v11758_v57  ;;  %v15407_v57 = vmov 0.0|0.0  }
  0x66   :  { %10535 = vmatprep.subr.bf16.mxu0 %v15407_v57 }
  0x68   :  { %9021 = vmatmul.mubr.msk.f32.gmra.mrb[2].mxu0 %vm200_vm1, %v11761_v58  ;;  %v87_v58 = vld [vmem:[%s15399_s5] sm:$0xff] }
  0x69   :  { %9023 = vmatprep.mubr.msk.f32.mxu0 %vm200_vm1, %v11780_v63  ;;  %v89_v63 = vld [vmem:[%s15399_s5 + $0x10] sm:$0xff] }
  0x6c   :  { %9024 = vmatmul.mubr.msk.f32.gmra.mrb[4].mxu0 %vm200_vm1, %v11783_v0  ;;  %v59_v0 = vld [vmem:[%s15397_s3 + $0x68] sm:$0xff] }
  0x6d   :  { %9026 = vmatprep.mubr.msk.f32.mxu0 %vm200_vm1, %v11793_v17  ;;  %v60_v17 = vld [vmem:[%s15397_s3 + $0x70] sm:$0xff]  ;;  %v12054_v10 = vpack.c.bf16 %v59_v0, %v58_v56 }
  0x6f   :  { %15493 = vst [vmem:[#allocation9_spill] sm:$0xff] %v12054_v10 }
  0x70   :  { %9027 = vmatmul.mubr.msk.f32.gmra.mrb[6].mxu0 %vm200_vm1, %v11796_v18  ;;  %v12014_v18 = vpack.c.bf16 %v88_v62, %v87_v58 }
  0x71   :  { %9029 = vmatprep.mubr.msk.f32.mxu0 %vm200_vm1, %v11806_v29  ;;  %v90_v29 = vld [vmem:[%s15399_s5 + $0x18] sm:$0xff] }
  0x72   :  { %10537 = vmatpush3.bf16.msra.mxu0 %v12014_v18  ;;  %v12039_v52 = vpack.c.bf16 %v90_v29, %v89_v63 }
  0x73   :  { %10538 = vmatprep.subr.bf16.mxu0 %v15407_v57 }
  0x74   :  { %9030 = vmatmul.mubr.msk.f32.gmra.mrb[8].mxu0 %vm200_vm1, %v11809_v30 }
  0x75   :  { %9032 = vmatprep.mubr.msk.f32.mxu0 %vm200_vm1, %v11812_v31  ;;  %v61_v31 = vld [vmem:[%s15397_s3 + $0x78] sm:$0xff] }
  0x76   :  { %v12056_v11 = vpack.c.bf16 %v61_v31, %v60_v17  ;;  %10540 = vmatpush3.bf16.msra.mxu0 %v12039_v52 }
  0x77   :  { %10541 = vmatprep.subr.bf16.mxu0 %v15407_v57 }
  0x78   :  { %9033 = vmatmul.mubr.msk.f32.gmra.mrb[10].mxu0 %vm200_vm1, %v11815_v32  ;;  %v62_v32 = vld [vmem:[%s15397_s3 + $0x80] sm:$0xff]  ;;  %15494 = vst [vmem:[#allocation10_spill] sm:$0xff] %v12056_v11 }
  0x79   :  { %v12058_v12 = vpack.c.bf16 %v63_v21, %v62_v32 }
  0x7a   :  { %10543 = vmatpush3.bf16.msra.mxu0 %v12068_v35 }
  0x7b   :  { %15495 = vst [vmem:[#allocation11_spill] sm:$0xff] %v12058_v12  ;;  %10544 = vmatprep.subr.bf16.mxu0 %v15407_v57 }
 0x137   :  { %v9019_v30 = vpop.f32.mrb[0].mxu0 }
 0x138   :  { %v10863_v47 = vadd.f32 %v9019_v30, %v11987_v45  ;;  %v1067_v48 = vpop.f32.mrb[1].mxu0 }
 0x139   :  { %v10864_v53 = vadd.f32 %v11987_v45, %v1067_v48 }
 0x13a   :  { %vm1139_vm6 = vcmp.gt.f32.partialorder %v10863_v47, 0.0  ;;  %v1151_v3 = vmul.f32 0.2, %v10863_v47 }
 0x13b   :  { %vm1138_vm7 = vcmp.gt.f32.partialorder %v10864_v53, 0.0  ;;  %v1150_v1 = vmul.f32 0.2, %v10864_v53  ;;  %v9022_v2 = vpop.f32.mrb[2].mxu0 }
 0x13c   :  { %v12062_v14 = vsel %vm1139_vm6, %v10863_v47, %v1151_v3  ;;  %v10865_v5 = vadd.f32 %v9022_v2, %v11987_v45  ;;  %v1077_v15 = vpop.f32.mrb[3].mxu0 }
 0x13d   :  { %v12070_v8 = vsel %vm1138_vm7, %v10864_v53, %v1150_v1  ;;  %v10866_v19 = vadd.f32 %v11987_v45, %v1077_v15  ;;  %v1355_v36 = vrot.slane %v12062_v14, 1  ;;  %v1539_v42 = vrot.slane %v12062_v14, 2 }
 0x13e   :  { %vm1141_vm8 = vcmp.gt.f32.partialorder %v10865_v5, 0.0  ;;  %v1153_v9 = vmul.f32 0.2, %v10865_v5  ;;  %9051 = vmatprep.mubr.msk.f32.mxu1 %vm1180_vm5, %v12070_v8  ;;  %v1354_v13 = vrot.slane %v12070_v8, 1  ;;  %v1538_v46 = vrot.slane %v12070_v8, 2 }
 0x13f   :  { %vm1140_vm9 = vcmp.gt.f32.partialorder %v10866_v19, 0.0  ;;  %v1152_v7 = vmul.f32 0.2, %v10866_v19  ;;  %v9025_v16 = vpop.f32.mrb[4].mxu0  ;;  %9052 = vmatmul.mubr.msk.f32.vlgmr.msra.gmra.mrb[0].mxu1 %vm1180_vm5, %v12062_v14  ;;  %v1722_v27 = vrot.slane %v12070_v8, 3  ;;  %v1723_v20 = vrot.slane %v12062_v14, 3 }
 0x140   :  { %v12084_v28 = vsel %vm1141_vm8, %v10865_v5, %v1153_v9  ;;  %v10867_v23 = vadd.f32 %v9025_v16, %v11987_v45  ;;  %v1087_v24 = vpop.f32.mrb[5].mxu0  ;;  %10474 = vmatpush3.bf16.msra.mxu1 %v11981_v44  ;;  %v12089_v33 = vsel %vm379_vm2, %v1354_v13, %v1355_v36  ;;  %v12092_v34 = vsel %vm569_vm4, %v1538_v46, %v1539_v42 }
 0x141   :  { %v12094_v38 = vsel %vm1140_vm9, %v10866_v19, %v1152_v7  ;;  %v10868_v39 = vadd.f32 %v11987_v45, %v1087_v24  ;;  %10476 = vmatprep.subr.bf16.mxu1 %v12042_v54  ;;  %v1359_v41 = vrot.slane %v12084_v28, 1  ;;  %v1543_v43 = vrot.slane %v12084_v28, 2 }
 0x142   :  { %v1357_v51 = vrot.slane %v12094_v38, 1  ;;  %v1541_v55 = vrot.slane %v12094_v38, 2  ;;  %v1725_v56 = vrot.slane %v12094_v38, 3  ;;  %9054 = vmatprep.mubr.msk.f32.mxu1 %vm1180_vm5, %v12094_v38  ;;  %vm1143_vm10 = vcmp.gt.f32.partialorder %v10867_v23, 0.0 }
 0x143   :  { %v1155_v62 = vmul.f32 0.2, %v10867_v23  ;;  %vm1142_vm11 = vcmp.gt.f32.partialorder %v10868_v39, 0.0  ;;  %v1154_v63 = vmul.f32 0.2, %v10868_v39  ;;  %9055 = vmatmul.mubr.msk.f32.gmra.mrb[2].mxu1 %vm1180_vm5, %v12084_v28  ;;  %v9028_v0 = vpop.f32.mrb[6].mxu0  ;;  %v12130_v49 = vsel %vm759_vm3, %v1722_v27, %v1723_v20 }
 0x144   :  { %10478 = vmatpush3.bf16.msra.mxu1 %v12042_v54  ;;  %v12112_v17 = vsel %vm379_vm2, %v1355_v36, %v1357_v51  ;;  %v12115_v29 = vsel %vm379_vm2, %v1357_v51, %v1359_v41  ;;  %v12118_v30 = vsel %vm569_vm4, %v1539_v42, %v1541_v55  ;;  %v12121_v31 = vsel %vm569_vm4, %v1541_v55, %v1543_v43  ;;  %v1097_v48 = vpop.f32.mrb[7].mxu0 }
 0x145   :  { %v12123_v32 = vsel %vm1143_vm10, %v10867_v23, %v1155_v62  ;;  %v12125_v21 = vsel %vm1142_vm11, %v10868_v39, %v1154_v63  ;;  %v10869_v47 = vadd.f32 %v9028_v0, %v11987_v45  ;;  %10480 = vmatprep.subr.bf16.mxu1 %v12054_v10  ;;  %v10870_v50 = vadd.f32 %v11987_v45, %v1097_v48 }
 0x146   :  { %9057 = vmatprep.mubr.msk.f32.mxu1 %vm1180_vm5, %v12125_v21  ;;  %v1361_v22 = vrot.slane %v12125_v21, 1  ;;  %v1363_v53 = vrot.slane %v12123_v32, 1  ;;  %v1545_v59 = vrot.slane %v12125_v21, 2  ;;  %v1547_v3 = vrot.slane %v12123_v32, 2 }
 0x147   :  { %vm1145_vm12 = vcmp.gt.f32.partialorder %v10869_v47, 0.0  ;;  %v1157_v60 = vmul.f32 0.2, %v10869_v47  ;;  %v9031_v61 = vpop.f32.mrb[8].mxu0  ;;  %9058 = vmatmul.mubr.msk.f32.gmra.mrb[4].mxu1 %vm1180_vm5, %v12123_v32  ;;  %v12144_v1 = vsel %vm759_vm3, %v1723_v20, %v1725_v56  ;;  %vm1144_vm13 = vcmp.gt.f32.partialorder %v10870_v50, 0.0 }
 0x148   :  { %v1156_v2 = vmul.f32 0.2, %v10870_v50  ;;  %v10871_v5 = vadd.f32 %v9031_v61, %v11987_v45  ;;  %v1107_v15 = vpop.f32.mrb[9].mxu0  ;;  %10482 = vmatpush3.bf16.msra.mxu1 %v12054_v10  ;;  %v12149_v19 = vsel %vm379_vm2, %v1359_v41, %v1361_v22  ;;  %v12156_v9 = vsel %vm379_vm2, %v1361_v22, %v1363_v53 }
 0x149   :  { %v12151_v36 = vsel %vm1145_vm12, %v10869_v47, %v1157_v60  ;;  %v10872_v42 = vadd.f32 %v11987_v45, %v1107_v15  ;;  %10484 = vmatprep.subr.bf16.mxu1 %v12056_v11  ;;  %v12159_v13 = vsel %vm569_vm4, %v1543_v43, %v1545_v59  ;;  %v12168_v24 = vsel %vm569_vm4, %v1545_v59, %v1547_v3 }
 0x14a   :  { %v12161_v46 = vsel %vm1144_vm13, %v10870_v50, %v1156_v2  ;;  %vm1147_vm14 = vcmp.gt.f32.partialorder %v10871_v5, 0.0  ;;  %v1159_v7 = vmul.f32 0.2, %v10871_v5  ;;  %v1367_v16 = vrot.slane %v12151_v36, 1 }
 0x14b   :  { %vm1146_vm15 = vcmp.gt.f32.partialorder %v10872_v42, 0.0  ;;  %v1158_v27 = vmul.f32 0.2, %v10872_v42  ;;  %9060 = vmatprep.mubr.msk.f32.mxu1 %vm1180_vm5, %v12161_v46  ;;  %v9034_v20 = vpop.f32.mrb[10].mxu0  ;;  %v1365_v23 = vrot.slane %v12161_v46, 1  ;;  %v1549_v51 = vrot.slane %v12161_v46, 2 }
 0x14c   :  { %v12170_v39 = vsel %vm1147_vm14, %v10871_v5, %v1159_v7  ;;  %v10873_v41 = vadd.f32 %v9034_v20, %v11987_v45  ;;  %9061 = vmatmul.mubr.msk.f32.gmra.mrb[6].mxu1 %vm1180_vm5, %v12151_v36  ;;  %v1117_v43 = vpop.f32.mrb[11].mxu0  ;;  %v1551_v55 = vrot.slane %v12151_v36, 2  ;;  %vm11522_vm8 = vmmov 0  }
 0x14d   :  { %v12177_v62 = vsel %vm1146_vm15, %v10872_v42, %v1158_v27  ;;  %v10874_v63 = vadd.f32 %v11987_v45, %v1117_v43  ;;  %10486 = vmatpush3.bf16.msra.mxu1 %v12056_v11  ;;  %v12182_v0 = vsel %vm379_vm2, %v1363_v53, %v1365_v23  ;;  %v12185_v47 = vsel %vm379_vm2, %v1365_v23, %v1367_v16 }
 0x14e   :  { %vm1149_vm6 = vcmp.gt.f32.partialorder %v10873_v41, 0.0  ;;  %v1161_v48 = vmul.f32 0.2, %v10873_v41  ;;  %9063 = vmatprep.mubr.msk.f32.mxu1 %vm1180_vm5, %v12177_v62  ;;  %10488 = vmatprep.subr.bf16.mxu1 %v12058_v12  ;;  %v1369_v50 = vrot.slane %v12177_v62, 1  ;;  %v1371_v22 = vrot.slane %v12170_v39, 1 }
 0x14f   :  { %vm1148_vm7 = vcmp.gt.f32.partialorder %v10874_v63, 0.0  ;;  %v1160_v45 = vmul.f32 0.2, %v10874_v63  ;;  %v12193_v59 = vsel %vm569_vm4, %v1547_v3, %v1549_v51  ;;  %v12196_v53 = vsel %vm569_vm4, %v1549_v51, %v1551_v55 }
 0x150   :  { %v12198_v60 = vsel %vm1149_vm6, %v10873_v41, %v1161_v48  ;;  %9064 = vmatmul.mubr.msk.f32.gmra.mrb[8].mxu1 %vm1180_vm5, %v12170_v39  ;;  %v12203_v61 = vsel %vm379_vm2, %v1367_v16, %v1369_v50  ;;  %v12206_v2 = vsel %vm379_vm2, %v1369_v50, %v1371_v22  ;;  %v1553_v5 = vrot.slane %v12177_v62, 2 }
 0x151   :  { %v12209_v15 = vsel %vm1148_vm7, %v10874_v63, %v1160_v45  ;;  %v15410_v3 = vrot.slane %v12198_v60, 1  ;;  %v1555_v42 = vrot.slane %v12170_v39, 2  ;;  %v15409_v7 = vrot.slane %v12198_v60, 2 }
 0x152   :  { %9066 = vmatprep.mubr.msk.f32.mxu1 %vm1180_vm5, %v12209_v15  ;;  %v1373_v27 = vrot.slane %v12209_v15, 1  ;;  %v12218_v16 = vsel %vm569_vm4, %v1551_v55, %v1553_v5  ;;  %v1557_v20 = vrot.slane %v12209_v15, 2  ;;  %v1727_v23 = vrot.slane %v12084_v28, 3 }
 0x153   :  { %v12223_v41 = vsel %vm569_vm4, %v1553_v5, %v1555_v42  ;;  %v1729_v43 = vrot.slane %v12125_v21, 3  ;;  %v1731_v51 = vrot.slane %v12123_v32, 3  ;;  %v1733_v63 = vrot.slane %v12161_v46, 3 }
 0x154   :  { %9067 = vmatmul.mubr.msk.f32.gmra.mrb[10].mxu1 %vm1180_vm5, %v12198_v60  ;;  %v12231_v48 = vsel %vm379_vm2, %v1371_v22, %v1373_v27  ;;  %v12236_v55 = vsel %vm379_vm2, %v1373_v27, %v15410_v3  ;;  %v12239_v50 = vsel %vm569_vm4, %v1555_v42, %v1557_v20  ;;  %v12244_v45 = vsel %vm569_vm4, %v1557_v20, %v15409_v7 }
 0x155   :  { %9085 = vmatprep.mubr.msk.f32.mxu1 %vm1180_vm5, %v12089_v33  ;;  %v12251_v22 = vsel %vm759_vm3, %v1725_v56, %v1727_v23  ;;  %v12254_v5 = vsel %vm759_vm3, %v1727_v23, %v1729_v43  ;;  %v12257_v27 = vsel %vm759_vm3, %v1729_v43, %v1731_v51  ;;  %v12260_v42 = vsel %vm759_vm3, %v1731_v51, %v1733_v63 }
 0x156   :  { %v1735_v20 = vrot.slane %v12151_v36, 3  ;;  %v1737_v57 = vrot.slane %v12177_v62, 3  ;;  %v1739_v33 = vrot.slane %v12170_v39, 3  ;;  %v1741_v7 = vrot.slane %v12209_v15, 3 }
 0x157   :  { %v1906_v3 = vrot.slane %v12070_v8, 4  ;;  %v1907_v23 = vrot.slane %v12062_v14, 4  ;;  %v1911_v43 = vrot.slane %v12084_v28, 4  ;;  %v15498_v14 = vrot.slane %v12198_v60, 3 }
 0x158   :  { %9086 = vmatmul.mubr.msk.f32.vlgmr.msra.gmra.mrb[0].mxu1 %vm1180_vm5, %v12112_v17  ;;  %v12273_v51 = vsel %vm759_vm3, %v1733_v63, %v1735_v20  ;;  %v12276_v58 = vsel %vm759_vm3, %v1735_v20, %v1737_v57  ;;  %v12279_v11 = vsel %vm759_vm3, %v1737_v57, %v1739_v33  ;;  %v12282_v56 = vsel %vm759_vm3, %v1739_v33, %v1741_v7 }
 0x159   :  { %9088 = vmatprep.mubr.msk.f32.mxu1 %vm1180_vm5, %v12115_v29  ;;  %10490 = vmatpush3.bf16.msra.mxu1 %v12058_v12  ;;  %v12290_v8 = vsel %vm759_vm3, %v1741_v7, %v15498_v14  ;;  %v12293_v28 = vsel %vm237_vm0, %v1906_v3, %v1907_v23  ;;  %v15499_v17 = vrot.slane %v12094_v38, 4  ;;  %v1913_v63 = vrot.slane %v12125_v21, 4  ;;  %v69_v21 = vld [vmem:[%s15397_s3 + $0xb8] sm:$0xff] }
 0x15a   :  { %10492 = vmatprep.subr.bf16.mxu1 %v12060_v4  ;;  %v1915_v7 = vrot.slane %v12123_v32, 4  ;;  %v1917_v33 = vrot.slane %v12161_v46, 4  ;;  %v1919_v3 = vrot.slane %v12151_v36, 4  ;;  %v1921_v38 = vrot.slane %v12177_v62, 4 }
 0x15b   :  { %v12298_v57 = vsel %vm237_vm0, %v1907_v23, %v15499_v17  ;;  %v15500_v29 = vmov %v15499_v17  ;;  %v68_v23 = vld [vmem:[%s15397_s3 + $0xb0] sm:$0xff]  ;;  %v12317_v14 = vsel %vm237_vm0, %v1911_v43, %v1913_v63  ;;  %v1923_v17 = vrot.slane %v12170_v39, 4 }
 0x15c   :  { %v12305_v20 = vsel %vm237_vm0, %v15500_v29, %v1911_v43  ;;  %v1925_v32 = vrot.slane %v12209_v15, 4  ;;  %9089 = vmatmul.mubr.msk.f32.gmra.mrb[2].mxu1 %vm1180_vm5, %v12149_v19  ;;  %v12325_v36 = vsel %vm237_vm0, %v1913_v63, %v1915_v7  ;;  %v12328_v46 = vsel %vm237_vm0, %v1915_v7, %v1917_v33  ;;  %v71_v7 = vld [vmem:[%s15397_s3 + $0xc8] sm:$0xff] }
 0x15d   :  { %v12331_v29 = vsel %vm237_vm0, %v1917_v33, %v1919_v3  ;;  %v1927_v43 = vrot.slane %v12198_v60, 4  ;;  %9091 = vmatprep.mubr.msk.f32.mxu1 %vm1180_vm5, %v12156_v9  ;;  %10494 = vmatpush3.bf16.msra.mxu1 %v12060_v4  ;;  %v12338_v39 = vsel %vm237_vm0, %v1919_v3, %v1921_v38  ;;  %v12341_v19 = vsel %vm237_vm0, %v1921_v38, %v1923_v17  ;;  %v70_v9 = vld [vmem:[%s15397_s3 + $0xc0] sm:$0xff]  ;;  %v76_v3 = vld [vmem:[%s15397_s3 + $0xf0] sm:$0xff]  ;;  %v85_v38 = vld [vmem:[%s15397_s3 + $0x138] sm:$0xff] }
 0x15e   :  { %v12344_v62 = vsel %vm237_vm0, %v1923_v17, %v1925_v32  ;;  %10496 = vmatprep.subr.bf16.mxu1 %v12065_v6  ;;  %v12347_v15 = vpack.c.bf16 %v69_v21, %v68_v23  ;;  %v12366_v33 = vpack.c.bf16 %v71_v7, %v70_v9  ;;  %v77_v23 = vld [vmem:[%s15397_s3 + $0xf8] sm:$0xff]  ;;  %v79_v21 = vld [vmem:[%s15397_s3 + $0x108] sm:$0xff] }
 0x15f   :  { %v12352_v63 = vsel %vm237_vm0, %v1925_v32, %v1927_v43  ;;  %v98_v17 = vld [vmem:[%s15399_s5 + $0x58] sm:$0xff]  ;;  %v99_v32 = vld [vmem:[%s15399_s5 + $0x60] sm:$0xff] }
 0x160   :  { %15501 = vst [vmem:[#allocation14_spill] sm:$0xff] %v12347_v15  ;;  %9092 = vmatmul.mubr.msk.f32.gmra.mrb[4].mxu1 %vm1180_vm5, %v12182_v0  ;;  %15502 = vst [vmem:[#allocation15_spill] sm:$0xff] %v12366_v33  ;;  %v72_v0 = vld [vmem:[%s15397_s3 + $0xd0] sm:$0xff] }
 0x161   :  { %9094 = vmatprep.mubr.msk.f32.mxu1 %vm1180_vm5, %v12185_v47  ;;  %10498 = vmatpush3.bf16.msra.mxu1 %v12065_v6  ;;  %v73_v47 = vld [vmem:[%s15397_s3 + $0xd8] sm:$0xff] }
 0x162   :  { %10500 = vmatprep.subr.bf16.mxu1 %v12347_v15 }
 0x164   :  { %9095 = vmatmul.mubr.msk.f32.gmra.mrb[6].mxu1 %vm1180_vm5, %v12203_v61  ;;  %v15503_v61 = vrot.slane %v12198_v60, 1 }
 0x165   :  { %9097 = vmatprep.mubr.msk.f32.mxu1 %vm1180_vm5, %v12206_v2  ;;  %10502 = vmatpush3.bf16.msra.mxu1 %v12347_v15  ;;  %v12389_v2 = vpack.c.bf16 %v73_v47, %v72_v0 }
 0x166   :  { %10504 = vmatprep.subr.bf16.mxu1 %v12366_v33 }
 0x167   :  { %15504 = vst [vmem:[#allocation16_spill] sm:$0xff] %v12389_v2 }
 0x168   :  { %9098 = vmatmul.mubr.msk.f32.gmra.mrb[8].mxu1 %vm1180_vm5, %v12231_v48  ;;  %v74_v48 = vld [vmem:[%s15397_s3 + $0xe0] sm:$0xff] }
 0x169   :  { %9100 = vmatprep.mubr.msk.f32.mxu1 %vm1180_vm5, %v12236_v55  ;;  %v75_v55 = vld [vmem:[%s15397_s3 + $0xe8] sm:$0xff] }
 0x16c   :  { %9101 = vmatmul.mubr.msk.f32.gmra.mrb[10].mxu1 %vm1180_vm5, %v15503_v61 }
 0x16d   :  { %9119 = vmatprep.mubr.msk.f32.mxu1 %vm1180_vm5, %v12092_v34  ;;  %v12403_v34 = vpack.c.bf16 %v75_v55, %v74_v48 }
 0x16f   :  { %15505 = vst [vmem:[#allocation17_spill] sm:$0xff] %v12403_v34 }
 0x170   :  { %9120 = vmatmul.mubr.msk.f32.vlgmr.msra.gmra.mrb[0].mxu1 %vm1180_vm5, %v12118_v30  ;;  %v12417_v30 = vpack.c.bf16 %v77_v23, %v76_v3 }
 0x171   :  { %9122 = vmatprep.mubr.msk.f32.mxu1 %vm1180_vm5, %v12121_v31  ;;  %10506 = vmatpush3.bf16.msra.mxu1 %v12366_v33  ;;  %v78_v31 = vld [vmem:[%s15397_s3 + $0x100] sm:$0xff] }
 0x172   :  { %10508 = vmatprep.subr.bf16.mxu1 %v12389_v2  ;;  %15506 = vst [vmem:[#allocation18_spill] sm:$0xff] %v12417_v30 }
 0x174   :  { %9123 = vmatmul.mubr.msk.f32.gmra.mrb[2].mxu1 %vm1180_vm5, %v12159_v13  ;;  %v12431_v13 = vpack.c.bf16 %v79_v21, %v78_v31 }
 0x175   :  { %9125 = vmatprep.mubr.msk.f32.mxu1 %vm1180_vm5, %v12168_v24  ;;  %10510 = vmatpush3.bf16.msra.mxu1 %v12389_v2  ;;  %v80_v24 = vld [vmem:[%s15397_s3 + $0x110] sm:$0xff] }
 0x176   :  { %10512 = vmatprep.subr.bf16.mxu1 %v12403_v34  ;;  %15507 = vst [vmem:[#allocation19_spill] sm:$0xff] %v12431_v13 }
 0x178   :  { %9126 = vmatmul.mubr.msk.f32.gmra.mrb[4].mxu1 %vm1180_vm5, %v12193_v59  ;;  %v81_v59 = vld [vmem:[%s15397_s3 + $0x118] sm:$0xff] }
 0x179   :  { %9128 = vmatprep.mubr.msk.f32.mxu1 %vm1180_vm5, %v12196_v53  ;;  %10514 = vmatpush3.bf16.msra.mxu1 %v12403_v34  ;;  %v15508_v53 = vrot.slane %v12198_v60, 2 }
 0x17a   :  { %10516 = vmatprep.subr.bf16.mxu1 %v12417_v30 }
 0x17c   :  { %9129 = vmatmul.mubr.msk.f32.gmra.mrb[6].mxu1 %vm1180_vm5, %v12218_v16  ;;  %v12454_v16 = vpack.c.bf16 %v81_v59, %v80_v24 }
 0x17d   :  { %9131 = vmatprep.mubr.msk.f32.mxu1 %vm1180_vm5, %v12223_v41  ;;  %10518 = vmatpush3.bf16.msra.mxu1 %v12417_v30  ;;  %v82_v41 = vld [vmem:[%s15397_s3 + $0x120] sm:$0xff] }
 0x17e   :  { %10520 = vmatprep.subr.bf16.mxu1 %v12431_v13  ;;  %15509 = vst [vmem:[#allocation20_spill] sm:$0xff] %v12454_v16 }
 0x180   :  { %9132 = vmatmul.mubr.msk.f32.gmra.mrb[8].mxu1 %vm1180_vm5, %v12239_v50  ;;  %v83_v50 = vld [vmem:[%s15397_s3 + $0x128] sm:$0xff] }
 0x181   :  { %9134 = vmatprep.mubr.msk.f32.mxu1 %vm1180_vm5, %v12244_v45  ;;  %v84_v45 = vld [vmem:[%s15397_s3 + $0x130] sm:$0xff] }
 0x184   :  { %9135 = vmatmul.mubr.msk.f32.gmra.mrb[10].mxu1 %vm1180_vm5, %v15508_v53 }
 0x185   :  { %9153 = vmatprep.mubr.msk.f32.mxu1 %vm1180_vm5, %v12130_v49  ;;  %v12468_v49 = vpack.c.bf16 %v83_v50, %v82_v41 }
 0x187   :  { %15510 = vst [vmem:[#allocation21_spill] sm:$0xff] %v12468_v49 }
 0x188   :  { %9154 = vmatmul.mubr.msk.f32.vlgmr.msra.gmra.mrb[0].mxu1 %vm1180_vm5, %v12144_v1  ;;  %v12482_v1 = vpack.c.bf16 %v85_v38, %v84_v45 }
 0x189   :  { %9156 = vmatprep.mubr.msk.f32.mxu1 %vm1180_vm5, %v12251_v22  ;;  %10522 = vmatpush3.bf16.msra.mxu1 %v12431_v13  ;;  %v15512_v22 = vmov 0.0|0.0  }
 0x18a   :  { %10524 = vmatprep.subr.bf16.mxu1 %v12454_v16  ;;  %15511 = vst [vmem:[#allocation22_spill] sm:$0xff] %v12482_v1 }
 0x18c   :  { %9157 = vmatmul.mubr.msk.f32.gmra.mrb[2].mxu1 %vm1180_vm5, %v12254_v5  ;;  %v15513_v5 = vrot.slane %v12198_v60, 3  ;;  %v12545_v60 = vld [vmem:[%s15400_s4] ss:$0 sm:$0xff] }
 0x18d   :  { %9159 = vmatprep.mubr.msk.f32.mxu1 %vm1180_vm5, %v12257_v27  ;;  %10526 = vmatpush3.bf16.msra.mxu1 %v12454_v16 }
 0x18e   :  { %10528 = vmatprep.subr.bf16.mxu1 %v12468_v49 }
 0x190   :  { %9160 = vmatmul.mubr.msk.f32.gmra.mrb[4].mxu1 %vm1180_vm5, %v12260_v42  ;;  %v15416_v42 = vmov 0.0  }
 0x191   :  { %9162 = vmatprep.mubr.msk.f32.mxu1 %vm1180_vm5, %v12273_v51  ;;  %10530 = vmatpush3.bf16.msra.mxu1 %v12468_v49 }
 0x192   :  { %10532 = vmatprep.subr.bf16.mxu1 %v12482_v1  ;;  %9221 = vmatprep.mubr.msk.f32.mxu0 %vm11522_vm8, %v15416_v42 }
 0x194   :  { %9163 = vmatmul.mubr.msk.f32.gmra.mrb[6].mxu1 %vm1180_vm5, %v12276_v58  ;;  %v94_v58 = vld [vmem:[%s15399_s5 + $0x38] sm:$0xff] }
 0x195   :  { %9165 = vmatprep.mubr.msk.f32.mxu1 %vm1180_vm5, %v12279_v11  ;;  %10534 = vmatpush3.bf16.msra.mxu1 %v12482_v1  ;;  %v93_v11 = vld [vmem:[%s15399_s5 + $0x30] sm:$0xff] }
 0x196   :  { %10855 = vmatprep.subr.bf16.mxu1 %v15512_v22  ;;  %v12534_v27 = vpack.c.bf16 %v94_v58, %v93_v11 }
 0x198   :  { %9166 = vmatmul.mubr.msk.f32.gmra.mrb[8].mxu1 %vm1180_vm5, %v12282_v56  ;;  %10546 = vmatpush3.bf16.msra.mxu0 %v12534_v27 }
 0x199   :  { %9168 = vmatprep.mubr.msk.f32.mxu1 %vm1180_vm5, %v12290_v8  ;;  %10547 = vmatprep.subr.bf16.mxu0 %v15512_v22 }
 0x19c   :  { %9169 = vmatmul.mubr.msk.f32.gmra.mrb[10].mxu1 %vm1180_vm5, %v15513_v5 }
 0x19d   :  { %9187 = vmatprep.mubr.msk.f32.mxu1 %vm1180_vm5, %v12293_v28  ;;  %v95_v28 = vld [vmem:[%s15399_s5 + $0x40] sm:$0xff] }
 0x1a0   :  { %9188 = vmatmul.mubr.msk.f32.vlgmr.msra.gmra.mrb[0].mxu1 %vm1180_vm5, %v12298_v57  ;;  %v96_v57 = vld [vmem:[%s15399_s5 + $0x48] sm:$0xff] }
 0x1a1   :  { %9190 = vmatprep.mubr.msk.f32.mxu1 %vm1180_vm5, %v12305_v20  ;;  %v97_v20 = vld [vmem:[%s15399_s5 + $0x50] sm:$0xff] }
 0x1a2   :  { %v12578_v0 = vpack.c.bf16 %v98_v17, %v97_v20 }
 0x1a4   :  { %9191 = vmatmul.mubr.msk.f32.gmra.mrb[2].mxu1 %vm1180_vm5, %v12317_v14  ;;  %15515 = vst [vmem:[#allocation24_spill] sm:$0xff] %v12578_v0 }
 0x1a5   :  { %9193 = vmatprep.mubr.msk.f32.mxu1 %vm1180_vm5, %v12325_v36  ;;  %v100_v36 = vld [vmem:[%s15399_s5 + $0x68] sm:$0xff] }
 0x1a6   :  { %v12580_v47 = vpack.c.bf16 %v100_v36, %v99_v32 }
 0x1a8   :  { %9194 = vmatmul.mubr.msk.f32.gmra.mrb[4].mxu1 %vm1180_vm5, %v12328_v46  ;;  %15516 = vst [vmem:[#allocation25_spill] sm:$0xff] %v12580_v47 }
 0x1a9   :  { %9196 = vmatprep.mubr.msk.f32.mxu1 %vm1180_vm5, %v12331_v29  ;;  %v101_v29 = vld [vmem:[%s15399_s5 + $0x70] sm:$0xff] }
 0x1ac   :  { %9197 = vmatmul.mubr.msk.f32.gmra.mrb[6].mxu1 %vm1180_vm5, %v12338_v39 }
 0x1ad   :  { %9199 = vmatprep.mubr.msk.f32.mxu1 %vm1180_vm5, %v12341_v19 }
 0x1b0   :  { %9200 = vmatmul.mubr.msk.f32.gmra.mrb[8].mxu1 %vm1180_vm5, %v12344_v62  ;;  %v12573_v62 = vpack.c.bf16 %v96_v57, %v95_v28 }
 0x1b1   :  { %9202 = vmatprep.mubr.msk.f32.mxu1 %vm1180_vm5, %v12352_v63 }
 0x1b2   :  { %15514 = vst [vmem:[#allocation23_spill] sm:$0xff] %v12573_v62 }
 0x1b4   :  { %9203 = vmatmul.mubr.msk.f32.gmra.mrb[10].mxu1 %vm1180_vm5, %v1927_v43  ;;  %v102_v43 = vld [vmem:[%s15399_s5 + $0x78] sm:$0xff] }
 0x1b5   :  { %9469 = vmatprep.mubr.msk.f32.mxu1 %vm11522_vm8, %v15416_v42  ;;  %v12585_v3 = vpack.c.bf16 %v102_v43, %v101_v29 }
 0x1b7   :  { %15517 = vst [vmem:[#allocation26_spill] sm:$0xff] %v12585_v3 }
 0x273   :  { %v9189_v56 = vpop.f32.mrb[0].mxu1 }
 0x274   :  { %v10875_v51 = vadd.f32 %v9189_v56, %v12545_v60  ;;  %v2019_v8 = vpop.f32.mrb[1].mxu1 }
 0x275   :  { %v10876_v14 = vadd.f32 %v12545_v60, %v2019_v8 }
 0x276   :  { %vm2091_vm9 = vcmp.gt.f32.partialorder %v10875_v51, 0.0  ;;  %v2103_v46 = vmul.f32 0.2, %v10875_v51 }
 0x277   :  { %vm2090_vm10 = vcmp.gt.f32.partialorder %v10876_v14, 0.0  ;;  %v2102_v39 = vmul.f32 0.2, %v10876_v14  ;;  %v9192_v19 = vpop.f32.mrb[2].mxu1 }
 0x278   :  { %v12575_v63 = vsel %vm2091_vm9, %v10875_v51, %v2103_v46  ;;  %v10877_v9 = vadd.f32 %v9192_v19, %v12545_v60  ;;  %v2029_v7 = vpop.f32.mrb[3].mxu1 }
 0x279   :  { %v2298_v61 = vrot.slane %v12575_v63, 1  ;;  %v2474_v48 = vrot.slane %v12575_v63, 2  ;;  %v15413_v55 = vrot.slane %v12575_v63, 3  ;;  %v12587_v23 = vsel %vm2090_vm10, %v10876_v14, %v2102_v39 }
 0x27a   :  { %vm2093_vm11 = vcmp.gt.f32.partialorder %v10877_v9, 0.0  ;;  %v2105_v31 = vmul.f32 0.2, %v10877_v9  ;;  %v10878_v21 = vadd.f32 %v12545_v60, %v2029_v7  ;;  %v2297_v59 = vrot.slane %v12587_v23, 1  ;;  %9222 = vmatmul.mubr.msk.f32.vlgmr.msra.gmra.mrb[12].mxu0 %vm1180_vm5, %v12587_v23 }
 0x27b   :  { %v2473_v53 = vrot.slane %v12587_v23, 2  ;;  %v2649_v41 = vrot.slane %v12587_v23, 3  ;;  %v9195_v50 = vpop.f32.mrb[4].mxu1  ;;  %10549 = vmatpush3.bf16.msra.mxu0 %v12573_v62  ;;  %9224 = vmatprep.mubr.msk.f32.mxu0 %vm11522_vm8, %v15416_v42  ;;  %v15520_v16 = vrot.slane %v12575_v63, 3 }
 0x27c   :  { %v12596_v45 = vsel %vm2093_vm11, %v10877_v9, %v2105_v31  ;;  %vm2092_vm12 = vcmp.gt.f32.partialorder %v10878_v21, 0.0  ;;  %v2104_v38 = vmul.f32 0.2, %v10878_v21  ;;  %v10879_v5 = vadd.f32 %v9195_v50, %v12545_v60  ;;  %v2039_v11 = vpop.f32.mrb[5].mxu1  ;;  %10550 = vmatprep.subr.bf16.mxu0 %v15512_v22 }
 0x27d   :  { %v10880_v58 = vadd.f32 %v12545_v60, %v2039_v11  ;;  %v12605_v56 = vsel %vm379_vm2, %v2297_v59, %v2298_v61  ;;  %v2302_v51 = vrot.slane %v12596_v45, 1  ;;  %v12609_v8 = vsel %vm569_vm4, %v2473_v53, %v2474_v48 }
 0x27e   :  { %v12611_v28 = vsel %vm2092_vm12, %v10878_v21, %v2104_v38  ;;  %vm2095_vm13 = vcmp.gt.f32.partialorder %v10879_v5, 0.0  ;;  %v2107_v57 = vmul.f32 0.2, %v10879_v5  ;;  %v2478_v20 = vrot.slane %v12596_v45, 2  ;;  %9225 = vmatmul.mubr.msk.f32.gmra.mrb[14].mxu0 %vm1180_vm5, %v12575_v63 }
 0x27f   :  { %vm2094_vm14 = vcmp.gt.f32.partialorder %v10880_v58, 0.0  ;;  %v2106_v14 = vmul.f32 0.2, %v10880_v58  ;;  %v9198_v17 = vpop.f32.mrb[6].mxu1  ;;  %v2300_v32 = vrot.slane %v12611_v28, 1  ;;  %v2476_v36 = vrot.slane %v12611_v28, 2  ;;  %9227 = vmatprep.mubr.msk.f32.mxu0 %vm11522_vm8, %v15416_v42  ;;  %10552 = vmatpush3.bf16.msra.mxu0 %v12578_v0 }
 0x280   :  { %v12618_v46 = vsel %vm2095_vm13, %v10879_v5, %v2107_v57  ;;  %v10881_v29 = vadd.f32 %v9198_v17, %v12545_v60  ;;  %v2049_v43 = vpop.f32.mrb[7].mxu1  ;;  %v12627_v39 = vsel %vm759_vm3, %v2649_v41, %v15413_v55  ;;  %10553 = vmatprep.subr.bf16.mxu0 %v15512_v22 }
 0x281   :  { %v12630_v9 = vsel %vm2094_vm14, %v10880_v58, %v2106_v14  ;;  %v10882_v7 = vadd.f32 %v12545_v60, %v2049_v43  ;;  %v12635_v31 = vsel %vm379_vm2, %v2298_v61, %v2300_v32  ;;  %v12638_v21 = vsel %vm379_vm2, %v2300_v32, %v2302_v51 }
 0x282   :  { %vm2097_vm15 = vcmp.gt.f32.partialorder %v10881_v29, 0.0  ;;  %v2109_v59 = vmul.f32 0.2, %v10881_v29  ;;  %v2304_v53 = vrot.slane %v12630_v9, 1  ;;  %v2306_v41 = vrot.slane %v12618_v46, 1  ;;  %9228 = vmatmul.mubr.msk.f32.gmra.mrb[16].mxu0 %vm1180_vm5, %v12611_v28 }
 0x283   :  { %vm2096_vm6 = vcmp.gt.f32.partialorder %v10882_v7, 0.0  ;;  %v2108_v50 = vmul.f32 0.2, %v10882_v7  ;;  %v9201_v38 = vpop.f32.mrb[8].mxu1  ;;  %v12645_v5 = vsel %vm569_vm4, %v2474_v48, %v2476_v36  ;;  %v12648_v61 = vsel %vm569_vm4, %v2476_v36, %v2478_v20  ;;  %9230 = vmatprep.mubr.msk.f32.mxu0 %vm11522_vm8, %v15416_v42  ;;  %10555 = vmatpush3.bf16.msra.mxu0 %v12580_v47 }
 0x284   :  { %v12650_v11 = vsel %vm2097_vm15, %v10881_v29, %v2109_v59  ;;  %v10883_v58 = vadd.f32 %v9201_v38, %v12545_v60  ;;  %v2059_v57 = vpop.f32.mrb[9].mxu1  ;;  %v12657_v14 = vsel %vm379_vm2, %v2302_v51, %v2304_v53  ;;  %v2480_v17 = vrot.slane %v12630_v9, 2  ;;  %10556 = vmatprep.subr.bf16.mxu0 %v15512_v22 }
 0x285   :  { %v12660_v48 = vsel %vm2096_vm6, %v10882_v7, %v2108_v50  ;;  %v10884_v32 = vadd.f32 %v12545_v60, %v2059_v57  ;;  %v12665_v36 = vsel %vm379_vm2, %v2304_v53, %v2306_v41  ;;  %v2310_v29 = vrot.slane %v12650_v11, 1 }
 0x286   :  { %vm2099_vm7 = vcmp.gt.f32.partialorder %v10883_v58, 0.0  ;;  %v2111_v43 = vmul.f32 0.2, %v10883_v58  ;;  %v2308_v59 = vrot.slane %v12660_v48, 1  ;;  %v12670_v51 = vsel %vm569_vm4, %v2478_v20, %v2480_v17  ;;  %9231 = vmatmul.mubr.msk.f32.gmra.mrb[18].mxu0 %vm1180_vm5, %v12596_v45 }
 0x287   :  { %vm2098_vm9 = vcmp.gt.f32.partialorder %v10884_v32, 0.0  ;;  %v2110_v38 = vmul.f32 0.2, %v10884_v32  ;;  %v9204_v7 = vpop.f32.mrb[10].mxu1  ;;  %v2482_v50 = vrot.slane %v12618_v46, 2  ;;  %v2484_v53 = vrot.slane %v12660_v48, 2  ;;  %9233 = vmatprep.mubr.msk.f32.mxu0 %vm11522_vm8, %v15416_v42  ;;  %10558 = vmatpush3.bf16.msra.mxu0 %v12585_v3 }
 0x288   :  { %v12676_v57 = vsel %vm2099_vm7, %v10883_v58, %v2111_v43  ;;  %v10885_v24 = vadd.f32 %v9204_v7, %v12545_v60  ;;  %v2069_v55 = vpop.f32.mrb[11].mxu1  ;;  %v12683_v20 = vsel %vm379_vm2, %v2306_v41, %v2308_v59  ;;  %v2486_v19 = vrot.slane %v12650_v11, 2  ;;  %10559 = vmatprep.subr.bf16.mxu0 %v15512_v22 }
 0x289   :  { %v12686_v47 = vsel %vm2098_vm9, %v10884_v32, %v2110_v38  ;;  %v10886_v0 = vadd.f32 %v12545_v60, %v2069_v55  ;;  %v12691_v58 = vsel %vm379_vm2, %v2308_v59, %v2310_v29  ;;  %v2314_v43 = vrot.slane %v12676_v57, 1 }
 0x28a   :  { %vm2101_vm10 = vcmp.gt.f32.partialorder %v10885_v24, 0.0  ;;  %v2113_v7 = vmul.f32 0.2, %v10885_v24  ;;  %v2312_v42 = vrot.slane %v12686_v47, 1  ;;  %v12696_v41 = vsel %vm569_vm4, %v2480_v17, %v2482_v50  ;;  %9234 = vmatmul.mubr.msk.f32.gmra.mrb[20].mxu0 %vm1180_vm5, %v12630_v9 }
 0x28b   :  { %vm2100_vm11 = vcmp.gt.f32.partialorder %v10886_v0, 0.0  ;;  %v2112_v3 = vmul.f32 0.2, %v10886_v0  ;;  %v12701_v60 = vsel %vm569_vm4, %v2482_v50, %v2484_v53  ;;  %v12704_v55 = vsel %vm569_vm4, %v2484_v53, %v2486_v19 }
 0x28c   :  { %v12706_v32 = vsel %vm2101_vm10, %v10885_v24, %v2113_v7  ;;  %v15518_v59 = vmov 0.0   ;;  %v12711_v38 = vsel %vm379_vm2, %v2310_v29, %v2312_v42  ;;  %v12714_v17 = vsel %vm379_vm2, %v2312_v42, %v2314_v43 }
 0x28d   :  { %9236 = vmatprep.mubr.msk.f32.mxu0 %vm11522_vm8, %v15518_v59  ;;  %v2488_v62 = vrot.slane %v12686_v47, 2  ;;  %v12717_v1 = vsel %vm2100_vm11, %v10886_v0, %v2112_v3  ;;  %v2318_v50 = vrot.slane %v12706_v32, 1  ;;  %v2490_v53 = vrot.slane %v12676_v57, 2 }
 0x28e   :  { %v2494_v24 = vrot.slane %v12706_v32, 2  ;;  %v2825_v7 = vrot.slane %v12587_v23, 4  ;;  %v2316_v49 = vrot.slane %v12717_v1, 1  ;;  %v2492_v42 = vrot.slane %v12717_v1, 2  ;;  %9237 = vmatmul.mubr.msk.f32.gmra.mrb[22].mxu0 %vm1180_vm5, %v12618_v46 }
 0x28f   :  { %v12725_v29 = vsel %vm569_vm4, %v2486_v19, %v2488_v62  ;;  %v12731_v0 = vsel %vm569_vm4, %v2488_v62, %v2490_v53  ;;  %v15519_v3 = vrot.slane %v12611_v28, 3  ;;  %v2654_v23 = vrot.slane %v12596_v45, 3  ;;  %9239 = vmatprep.mubr.msk.f32.mxu0 %vm11522_vm8, %v15518_v59 }
 0x290   :  { %v2656_v19 = vrot.slane %v12630_v9, 3  ;;  %v12745_v30 = vsel %vm379_vm2, %v2314_v43, %v2316_v49  ;;  %v12748_v62 = vsel %vm379_vm2, %v2316_v49, %v2318_v50  ;;  %v12751_v34 = vsel %vm569_vm4, %v2490_v53, %v2492_v42 }
 0x291   :  { %v12738_v13 = vsel %vm759_vm3, %v15520_v16, %v15519_v3  ;;  %v12754_v2 = vsel %vm569_vm4, %v2492_v42, %v2494_v24  ;;  %v15521_v16 = vmov %v15519_v3  ;;  %v2658_v43 = vrot.slane %v12618_v46, 3 }
 0x292   :  { %v12759_v3 = vsel %vm759_vm3, %v15521_v16, %v2654_v23  ;;  %v12762_v33 = vsel %vm759_vm3, %v2654_v23, %v2656_v19  ;;  %v2660_v15 = vrot.slane %v12660_v48, 3  ;;  %v2662_v49 = vrot.slane %v12650_v11, 3  ;;  %9240 = vmatmul.mubr.msk.f32.gmra.mrb[24].mxu0 %vm1180_vm5, %v12660_v48 }
 0x293   :  { %v2664_v50 = vrot.slane %v12686_v47, 3  ;;  %v2666_v53 = vrot.slane %v12676_v57, 3  ;;  %v12772_v24 = vsel %vm759_vm3, %v2656_v19, %v2658_v43  ;;  %v2668_v42 = vrot.slane %v12717_v1, 3  ;;  %9242 = vmatprep.mubr.msk.f32.mxu0 %vm11522_vm8, %v15518_v59 }
 0x294   :  { %v2670_v23 = vrot.slane %v12706_v32, 3  ;;  %v15522_v16 = vrot.slane %v12575_v63, 4  ;;  %v12784_v4 = vsel %vm759_vm3, %v2658_v43, %v2660_v15  ;;  %v12787_v12 = vsel %vm759_vm3, %v2660_v15, %v2662_v49 }
 0x295   :  { %v12790_v19 = vsel %vm759_vm3, %v2662_v49, %v2664_v50  ;;  %v12793_v10 = vsel %vm759_vm3, %v2664_v50, %v2666_v53  ;;  %v12796_v54 = vsel %vm759_vm3, %v2666_v53, %v2668_v42  ;;  %v2830_v43 = vrot.slane %v12596_v45, 4 }
 0x296   :  { %v12779_v6 = vsel %vm237_vm0, %v2825_v7, %v15522_v16  ;;  %v12799_v7 = vsel %vm759_vm3, %v2668_v42, %v2670_v23  ;;  %v2828_v16 = vrot.slane %v12611_v28, 4  ;;  %v2832_v44 = vrot.slane %v12630_v9, 4  ;;  %9243 = vmatmul.mubr.msk.f32.gmra.mrb[26].mxu0 %vm1180_vm5, %v12650_v11 }
 0x297   :  { %v2834_v15 = vrot.slane %v12618_v46, 4  ;;  %v2836_v49 = vrot.slane %v12660_v48, 4  ;;  %v15523_v50 = vrot.slane %v12575_v63, 4  ;;  %v2838_v42 = vrot.slane %v12650_v11, 4  ;;  %9245 = vmatprep.mubr.msk.f32.mxu0 %vm11522_vm8, %v15518_v59 }
 0x298   :  { %v2840_v28 = vrot.slane %v12686_v47, 4  ;;  %v2842_v45 = vrot.slane %v12676_v57, 4  ;;  %v12819_v46 = vsel %vm237_vm0, %v2828_v16, %v2830_v43  ;;  %v12822_v9 = vsel %vm237_vm0, %v2830_v43, %v2832_v44 }
 0x299   :  { %v12811_v53 = vsel %vm237_vm0, %v15523_v50, %v2828_v16  ;;  %v12825_v63 = vsel %vm237_vm0, %v2832_v44, %v2834_v15  ;;  %v12828_v48 = vsel %vm237_vm0, %v2834_v15, %v2836_v49  ;;  %v12831_v11 = vsel %vm237_vm0, %v2836_v49, %v2838_v42 }
 0x29a   :  { %v12834_v23 = vsel %vm237_vm0, %v2838_v42, %v2840_v28  ;;  %v12837_v50 = vsel %vm237_vm0, %v2840_v28, %v2842_v45  ;;  %v2844_v16 = vrot.slane %v12717_v1, 4  ;;  %v2846_v43 = vrot.slane %v12706_v32, 4  ;;  %9246 = vmatmul.mubr.msk.f32.gmra.mrb[28].mxu0 %vm1180_vm5, %v12686_v47  ;;  %v103_v32 = vld [vmem:[%s15399_s5 + $0x80] sm:$0xff]  ;;  %v104_v47 = vld [vmem:[%s15399_s5 + $0x88] sm:$0xff]  ;;  %v106_v42 = vld [vmem:[%s15399_s5 + $0x98] sm:$0xff] }
 0x29b   :  { %9248 = vmatprep.mubr.msk.f32.mxu0 %vm11522_vm8, %v15518_v59  ;;  %v12865_v49 = vpack.c.bf16 %v104_v47, %v103_v32  ;;  %v107_v28 = vld [vmem:[%s15399_s5 + $0xa0] sm:$0xff]  ;;  %v130_v47 = vld [vmem:[%s15401_s7 + $0x10] sm:$0xff] }
 0x29c   :  { %v12844_v44 = vsel %vm237_vm0, %v2842_v45, %v2844_v16  ;;  %v12849_v15 = vsel %vm237_vm0, %v2844_v16, %v2846_v43  ;;  %v108_v45 = vld [vmem:[%s15399_s5 + $0xa8] sm:$0xff]  ;;  %v109_v16 = vld [vmem:[%s15399_s5 + $0xb0] sm:$0xff]  ;;  %v110_v43 = vld [vmem:[%s15399_s5 + $0xb8] sm:$0xff] }
 0x29d   :  { %15524 = vst [vmem:[#allocation27_spill] sm:$0xff] %v12865_v49 }
 0x29e   :  { %9249 = vmatmul.mubr.msk.f32.gmra.mrb[30].mxu0 %vm1180_vm5, %v12676_v57  ;;  %v105_v57 = vld [vmem:[%s15399_s5 + $0x90] sm:$0xff] }
 0x29f   :  { %9251 = vmatprep.mubr.msk.f32.mxu0 %vm11522_vm8, %v15518_v59 }
 0x2a2   :  { %9252 = vmatmul.mubr.msk.f32.gmra.mrb[32].mxu0 %vm1180_vm5, %v12717_v1  ;;  %v12878_v1 = vpack.c.bf16 %v106_v42, %v105_v57  ;;  %v131_v57 = vld [vmem:[%s15401_s7 + $0x18] sm:$0xff] }
 0x2a3   :  { %9270 = vmatprep.mubr.msk.f32.mxu0 %vm11522_vm8, %v15518_v59 }
 0x2a4   :  { %15525 = vst [vmem:[#allocation28_spill] sm:$0xff] %v12878_v1 }
 0x2a6   :  { %9271 = vmatmul.mubr.msk.f32.vlgmr.msra.gmra.mrb[12].mxu0 %vm1180_vm5, %v12605_v56  ;;  %v12892_v56 = vpack.c.bf16 %v108_v45, %v107_v28  ;;  %v117_v28 = vld [vmem:[%s15399_s5 + $0xf0] sm:$0xff]  ;;  %v118_v45 = vld [vmem:[%s15399_s5 + $0xf8] sm:$0xff] }
 0x2a7   :  { %10561 = vmatpush3.bf16.msra.mxu0 %v12865_v49  ;;  %9273 = vmatprep.mubr.msk.f32.mxu0 %vm11522_vm8, %v15518_v59 }
 0x2a8   :  { %10562 = vmatprep.subr.bf16.mxu0 %v15512_v22  ;;  %15526 = vst [vmem:[#allocation29_spill] sm:$0xff] %v12892_v56 }
 0x2aa   :  { %9274 = vmatmul.mubr.msk.f32.gmra.mrb[14].mxu0 %vm1180_vm5, %v12635_v31  ;;  %v12906_v31 = vpack.c.bf16 %v110_v43, %v109_v16  ;;  %v132_v16 = vld [vmem:[%s15401_s7 + $0x20] sm:$0xff]  ;;  %v133_v43 = vld [vmem:[%s15401_s7 + $0x28] sm:$0xff] }
 0x2ab   :  { %9276 = vmatprep.mubr.msk.f32.mxu0 %vm11522_vm8, %v15518_v59  ;;  %10564 = vmatpush3.bf16.msra.mxu0 %v12878_v1 }
 0x2ac   :  { %10565 = vmatprep.subr.bf16.mxu0 %v15512_v22  ;;  %15527 = vst [vmem:[#allocation30_spill] sm:$0xff] %v12906_v31 }
 0x2ae   :  { %9277 = vmatmul.mubr.msk.f32.gmra.mrb[16].mxu0 %vm1180_vm5, %v12638_v21  ;;  %v111_v21 = vld [vmem:[%s15399_s5 + $0xc0] sm:$0xff] }
 0x2af   :  { %9279 = vmatprep.mubr.msk.f32.mxu0 %vm11522_vm8, %v15518_v59  ;;  %10567 = vmatpush3.bf16.msra.mxu0 %v12892_v56 }
 0x2b0   :  { %10568 = vmatprep.subr.bf16.mxu0 %v15512_v22 }
 0x2b2   :  { %9280 = vmatmul.mubr.msk.f32.gmra.mrb[18].mxu0 %vm1180_vm5, %v12657_v14  ;;  %v112_v14 = vld [vmem:[%s15399_s5 + $0xc8] sm:$0xff] }
 0x2b3   :  { %9282 = vmatprep.mubr.msk.f32.mxu0 %vm11522_vm8, %v15518_v59  ;;  %10570 = vmatpush3.bf16.msra.mxu0 %v12906_v31 }
 0x2b4   :  { %10571 = vmatprep.subr.bf16.mxu0 %v15512_v22 }
 0x2b6   :  { %9283 = vmatmul.mubr.msk.f32.gmra.mrb[20].mxu0 %vm1180_vm5, %v12665_v36  ;;  %v12949_v36 = vpack.c.bf16 %v112_v14, %v111_v21  ;;  %v13015_v21 = vpack.c.bf16 %v118_v45, %v117_v28  ;;  %v13018_v14 = vpack.c.bf16 %v133_v43, %v132_v16  ;;  %v13243_v28 = vld [vmem:[%s15396_s0 + $0x78] sm:$0xff] }
 0x2b7   :  { %9285 = vmatprep.mubr.msk.f32.mxu0 %vm11522_vm8, %v15518_v59 }
 0x2b8   :  { %15528 = vst [vmem:[#allocation31_spill] sm:$0xff] %v12949_v36  ;;  %15533 = vst [vmem:[#allocation36_spill] sm:$0xff] %v13015_v21 }
 0x2b9   :  { %15534 = vst [vmem:[#allocation37_spill] sm:$0xff] %v13018_v14 }
 0x2ba   :  { %9286 = vmatmul.mubr.msk.f32.gmra.mrb[22].mxu0 %vm1180_vm5, %v12683_v20  ;;  %v114_v20 = vld [vmem:[%s15399_s5 + $0xd8] sm:$0xff] }
 0x2bb   :  { %9288 = vmatprep.mubr.msk.f32.mxu0 %vm11522_vm8, %v15518_v59 }
 0x2be   :  { %9289 = vmatmul.mubr.msk.f32.gmra.mrb[24].mxu0 %vm1180_vm5, %v12691_v58 }
 0x2bf   :  { %9291 = vmatprep.mubr.msk.f32.mxu0 %vm11522_vm8, %v15518_v59 }
 0x2c2   :  { %9292 = vmatmul.mubr.msk.f32.gmra.mrb[26].mxu0 %vm1180_vm5, %v12711_v38  ;;  %v128_v38 = vld [vmem:[%s15401_s7] sm:$0xff] }
 0x2c3   :  { %9294 = vmatprep.mubr.msk.f32.mxu0 %vm11522_vm8, %v15518_v59 }
 0x2c6   :  { %9295 = vmatmul.mubr.msk.f32.gmra.mrb[28].mxu0 %vm1180_vm5, %v12714_v17  ;;  %v129_v17 = vld [vmem:[%s15401_s7 + $0x8] sm:$0xff] }
 0x2c7   :  { %9297 = vmatprep.mubr.msk.f32.mxu0 %vm11522_vm8, %v15518_v59  ;;  %v12977_v32 = vpack.c.bf16 %v129_v17, %v128_v38  ;;  %v125_v38 = vld [vmem:[%s15399_s5 + $0x130] sm:$0xff]  ;;  %v126_v17 = vld [vmem:[%s15399_s5 + $0x138] sm:$0xff] }
 0x2c9   :  { %15530 = vst [vmem:[#allocation33_spill] sm:$0xff] %v12977_v32  ;;  %10859 = vmatpush3.bf16.msra.mxu1 %v12977_v32 }
 0x2ca   :  { %9298 = vmatmul.mubr.msk.f32.gmra.mrb[30].mxu0 %vm1180_vm5, %v12745_v30  ;;  %v113_v30 = vld [vmem:[%s15399_s5 + $0xd0] sm:$0xff]  ;;  %10856 = vmatprep.subr.bf16.mxu1 %v15512_v22 }
 0x2cb   :  { %9300 = vmatprep.mubr.msk.f32.mxu0 %vm11522_vm8, %v15518_v59  ;;  %v12962_v58 = vpack.c.bf16 %v114_v20, %v113_v30  ;;  %v134_v30 = vld [vmem:[%s15401_s7 + $0x30] sm:$0xff] }
 0x2cd   :  { %15529 = vst [vmem:[#allocation32_spill] sm:$0xff] %v12962_v58 }
 0x2ce   :  { %9301 = vmatmul.mubr.msk.f32.gmra.mrb[32].mxu0 %vm1180_vm5, %v12748_v62  ;;  %v116_v62 = vld [vmem:[%s15399_s5 + $0xe8] sm:$0xff] }
 0x2cf   :  { %9319 = vmatprep.mubr.msk.f32.mxu0 %vm11522_vm8, %v15518_v59 }
 0x2d2   :  { %9320 = vmatmul.mubr.msk.f32.vlgmr.msra.gmra.mrb[12].mxu0 %vm1180_vm5, %v12609_v8  ;;  %v115_v8 = vld [vmem:[%s15399_s5 + $0xe0] sm:$0xff] }
 0x2d3   :  { %10573 = vmatpush3.bf16.msra.mxu0 %v12949_v36  ;;  %9322 = vmatprep.mubr.msk.f32.mxu0 %vm11522_vm8, %v15518_v59  ;;  %v12991_v42 = vpack.c.bf16 %v116_v62, %v115_v8 }
 0x2d4   :  { %10574 = vmatprep.subr.bf16.mxu0 %v15512_v22 }
 0x2d5   :  { %15531 = vst [vmem:[#allocation34_spill] sm:$0xff] %v12991_v42 }
 0x2d6   :  { %9323 = vmatmul.mubr.msk.f32.gmra.mrb[14].mxu0 %vm1180_vm5, %v12645_v5  ;;  %v13000_v5 = vpack.c.bf16 %v131_v57, %v130_v47 }
 0x2d7   :  { %9325 = vmatprep.mubr.msk.f32.mxu0 %vm11522_vm8, %v15518_v59  ;;  %10576 = vmatpush3.bf16.msra.mxu0 %v12962_v58 }
 0x2d8   :  { %10577 = vmatprep.subr.bf16.mxu0 %v15512_v22  ;;  %15532 = vst [vmem:[#allocation35_spill] sm:$0xff] %v13000_v5  ;;  %10860 = vmatpush3.bf16.msra.mxu1 %v13000_v5 }
 0x2d9   :  { %10857 = vmatprep.subr.bf16.mxu1 %v15512_v22 }
 0x2da   :  { %9326 = vmatmul.mubr.msk.f32.gmra.mrb[16].mxu0 %vm1180_vm5, %v12648_v61  ;;  %v135_v61 = vld [vmem:[%s15401_s7 + $0x38] sm:$0xff] }
 0x2db   :  { %9328 = vmatprep.mubr.msk.f32.mxu0 %vm11522_vm8, %v15518_v59  ;;  %10579 = vmatpush3.bf16.msra.mxu0 %v12991_v42  ;;  %v13034_v20 = vpack.c.bf16 %v135_v61, %v134_v30  ;;  %v138_v61 = vld [vmem:[%s15401_s7 + $0x50] sm:$0xff]  ;;  %v4163_v42 = vrot.slane %v13243_v28, 1 }
 0x2dc   :  { %10580 = vmatprep.subr.bf16.mxu0 %v15512_v22  ;;  %10861 = vmatpush3.bf16.msra.mxu1 %v13018_v14 }
 0x2dd   :  { %15535 = vst [vmem:[#allocation38_spill] sm:$0xff] %v13034_v20  ;;  %10858 = vmatprep.subr.bf16.mxu1 %v15512_v22 }
 0x2de   :  { %9329 = vmatmul.mubr.msk.f32.gmra.mrb[18].mxu0 %vm1180_vm5, %v12670_v51  ;;  %v119_v51 = vld [vmem:[%s15399_s5 + $0x100] sm:$0xff] }
 0x2df   :  { %9331 = vmatprep.mubr.msk.f32.mxu0 %vm11522_vm8, %v15518_v59  ;;  %10582 = vmatpush3.bf16.msra.mxu0 %v13015_v21 }
 0x2e0   :  { %10583 = vmatprep.subr.bf16.mxu0 %v15512_v22  ;;  %10862 = vmatpush3.bf16.msra.mxu1 %v13034_v20 }
 0x2e1   :  { %10607 = vmatprep.subr.bf16.mxu1 %v15512_v22 }
 0x2e2   :  { %9332 = vmatmul.mubr.msk.f32.gmra.mrb[20].mxu0 %vm1180_vm5, %v12696_v41  ;;  %v120_v41 = vld [vmem:[%s15399_s5 + $0x108] sm:$0xff] }
 0x2e3   :  { %9334 = vmatprep.mubr.msk.f32.mxu0 %vm11522_vm8, %v15518_v59 }
 0x2e6   :  { %9335 = vmatmul.mubr.msk.f32.gmra.mrb[22].mxu0 %vm1180_vm5, %v12701_v60  ;;  %v13073_v60 = vpack.c.bf16 %v120_v41, %v119_v51  ;;  %v139_v51 = vld [vmem:[%s15401_s7 + $0x58] sm:$0xff] }
 0x2e7   :  { %9337 = vmatprep.mubr.msk.f32.mxu0 %vm11522_vm8, %v15518_v59 }
 0x2e8   :  { %15536 = vst [vmem:[#allocation39_spill] sm:$0xff] %v13073_v60 }
 0x2ea   :  { %9338 = vmatmul.mubr.msk.f32.gmra.mrb[24].mxu0 %vm1180_vm5, %v12704_v55  ;;  %v122_v55 = vld [vmem:[%s15399_s5 + $0x118] sm:$0xff] }
 0x2eb   :  { %9340 = vmatprep.mubr.msk.f32.mxu0 %vm11522_vm8, %v15518_v59 }
 0x2ee   :  { %9341 = vmatmul.mubr.msk.f32.gmra.mrb[26].mxu0 %vm1180_vm5, %v12725_v29  ;;  %v123_v29 = vld [vmem:[%s15399_s5 + $0x120] sm:$0xff] }
 0x2ef   :  { %9343 = vmatprep.mubr.msk.f32.mxu0 %vm11522_vm8, %v15518_v59 }
 0x2f2   :  { %9344 = vmatmul.mubr.msk.f32.gmra.mrb[28].mxu0 %vm1180_vm5, %v12731_v0  ;;  %v124_v0 = vld [vmem:[%s15399_s5 + $0x128] sm:$0xff] }
 0x2f3   :  { %9346 = vmatprep.mubr.msk.f32.mxu0 %vm11522_vm8, %v15518_v59 }
 0x2f6   :  { %9347 = vmatmul.mubr.msk.f32.gmra.mrb[30].mxu0 %vm1180_vm5, %v12751_v34  ;;  %v121_v34 = vld [vmem:[%s15399_s5 + $0x110] sm:$0xff] }
 0x2f7   :  { %9349 = vmatprep.mubr.msk.f32.mxu0 %vm11522_vm8, %v15518_v59 }
 0x2fa   :  { %9350 = vmatmul.mubr.msk.f32.gmra.mrb[32].mxu0 %vm1180_vm5, %v12754_v2  ;;  %v13086_v2 = vpack.c.bf16 %v122_v55, %v121_v34  ;;  %v13260_v55 = vld [vmem:[%s15396_s0 + $0x80] sm:$0xff] }
 0x2fb   :  { %9368 = vmatprep.mubr.msk.f32.mxu0 %vm11522_vm8, %v15518_v59 }
 0x2fc   :  { %15537 = vst [vmem:[#allocation40_spill] sm:$0xff] %v13086_v2 }
 0x2fe   :  { %9369 = vmatmul.mubr.msk.f32.vlgmr.msra.gmra.mrb[12].mxu0 %vm1180_vm5, %v12627_v39  ;;  %v13100_v39 = vpack.c.bf16 %v124_v0, %v123_v29  ;;  %v13267_v0 = vld [vmem:[%s15396_s0 + $0x88] sm:$0xff] }
 0x2ff   :  { %10585 = vmatpush3.bf16.msra.mxu0 %v13073_v60  ;;  %9371 = vmatprep.mubr.msk.f32.mxu0 %vm11522_vm8, %v15518_v59 }
 0x300   :  { %10586 = vmatprep.subr.bf16.mxu0 %v15512_v22  ;;  %15538 = vst [vmem:[#allocation41_spill] sm:$0xff] %v13100_v39 }
 0x302   :  { %9372 = vmatmul.mubr.msk.f32.gmra.mrb[14].mxu0 %vm1180_vm5, %v12738_v13  ;;  %v13114_v13 = vpack.c.bf16 %v126_v17, %v125_v38  ;;  %v13272_v38 = vld [vmem:[%s15395_s1 + $0x8] sm:$0xf] }
 0x303   :  { %9374 = vmatprep.mubr.msk.f32.mxu0 %vm11522_vm8, %v15518_v59  ;;  %10588 = vmatpush3.bf16.msra.mxu0 %v13086_v2 }
 0x304   :  { %10589 = vmatprep.subr.bf16.mxu0 %v15512_v22  ;;  %15539 = vst [vmem:[#allocation42_spill] sm:$0xff] %v13114_v13 }
 0x306   :  { %9375 = vmatmul.mubr.msk.f32.gmra.mrb[16].mxu0 %vm1180_vm5, %v12759_v3 }
 0x307   :  { %9377 = vmatprep.mubr.msk.f32.mxu0 %vm11522_vm8, %v15518_v59  ;;  %10591 = vmatpush3.bf16.msra.mxu0 %v13100_v39 }
 0x308   :  { %10592 = vmatprep.subr.bf16.mxu0 %v15512_v22 }
 0x30a   :  { %9378 = vmatmul.mubr.msk.f32.gmra.mrb[18].mxu0 %vm1180_vm5, %v12762_v33 }
 0x30b   :  { %9380 = vmatprep.mubr.msk.f32.mxu0 %vm11522_vm8, %v15518_v59  ;;  %10594 = vmatpush3.bf16.msra.mxu0 %v13114_v13 }
 0x30c   :  { %10595 = vmatprep.subr.bf16.mxu0 %v15512_v22 }
 0x30e   :  { %9381 = vmatmul.mubr.msk.f32.gmra.mrb[20].mxu0 %vm1180_vm5, %v12772_v24  ;;  %v13215_v24 = vld [vmem:[%s15396_s0 + $0x68] sm:$0xff] }
 0x30f   :  { %9383 = vmatprep.mubr.msk.f32.mxu0 %vm11522_vm8, %v15518_v59 }
 0x312   :  { %9384 = vmatmul.mubr.msk.f32.gmra.mrb[22].mxu0 %vm1180_vm5, %v12784_v4 }
 0x313   :  { %9386 = vmatprep.mubr.msk.f32.mxu0 %vm11522_vm8, %v15518_v59 }
 0x316   :  { %9387 = vmatmul.mubr.msk.f32.gmra.mrb[24].mxu0 %vm1180_vm5, %v12787_v12 }
 0x317   :  { %9389 = vmatprep.mubr.msk.f32.mxu0 %vm11522_vm8, %v15518_v59 }
 0x31a   :  { %9390 = vmatmul.mubr.msk.f32.gmra.mrb[26].mxu0 %vm1180_vm5, %v12790_v19 }
 0x31b   :  { %9392 = vmatprep.mubr.msk.f32.mxu0 %vm11522_vm8, %v15518_v59 }
 0x31e   :  { %9393 = vmatmul.mubr.msk.f32.gmra.mrb[28].mxu0 %vm1180_vm5, %v12793_v10  ;;  %v13209_v10 = vld [vmem:[%s15402_s6] ss:$0 sm:$0xff] }
 0x31f   :  { %9395 = vmatprep.mubr.msk.f32.mxu0 %vm11522_vm8, %v15518_v59 }
 0x322   :  { %9396 = vmatmul.mubr.msk.f32.gmra.mrb[30].mxu0 %vm1180_vm5, %v12796_v54  ;;  %v11501_v54 = vld [vmem:[%s15395_s1] sm:$0xf] }
 0x323   :  { %9398 = vmatprep.mubr.msk.f32.mxu0 %vm11522_vm8, %v15518_v59 }
 0x326   :  { %9399 = vmatmul.mubr.msk.f32.gmra.mrb[32].mxu0 %vm1180_vm5, %v12799_v7 }
 0x327   :  { %9417 = vmatprep.mubr.msk.f32.mxu0 %vm11522_vm8, %v15518_v59 }
 0x32a   :  { %9418 = vmatmul.mubr.msk.f32.vlgmr.msra.gmra.mrb[12].mxu0 %vm1180_vm5, %v12779_v6 }
 0x32b   :  { %9420 = vmatprep.mubr.msk.f32.mxu0 %vm11522_vm8, %v15518_v59  ;;  %10597 = vmatpush3.bf16.msra.mxu0 %v12977_v32 }
 0x32c   :  { %10598 = vmatprep.subr.bf16.mxu0 %v15512_v22 }
 0x32e   :  { %9421 = vmatmul.mubr.msk.f32.gmra.mrb[14].mxu0 %vm1180_vm5, %v12811_v53 }
 0x32f   :  { %9423 = vmatprep.mubr.msk.f32.mxu0 %vm11522_vm8, %v15518_v59  ;;  %10600 = vmatpush3.bf16.msra.mxu0 %v13000_v5 }
 0x330   :  { %10601 = vmatprep.subr.bf16.mxu0 %v15512_v22 }
 0x332   :  { %9424 = vmatmul.mubr.msk.f32.gmra.mrb[16].mxu0 %vm1180_vm5, %v12819_v46  ;;  %v136_v46 = vld [vmem:[%s15401_s7 + $0x40] sm:$0xff] }
 0x333   :  { %9426 = vmatprep.mubr.msk.f32.mxu0 %vm11522_vm8, %v15518_v59  ;;  %10603 = vmatpush3.bf16.msra.mxu0 %v13018_v14 }
 0x334   :  { %10604 = vmatprep.subr.bf16.mxu0 %v15512_v22 }
 0x336   :  { %9427 = vmatmul.mubr.msk.f32.gmra.mrb[18].mxu0 %vm1180_vm5, %v12822_v9  ;;  %v137_v9 = vld [vmem:[%s15401_s7 + $0x48] sm:$0xff] }
 0x337   :  { %9429 = vmatprep.mubr.msk.f32.mxu0 %vm11522_vm8, %v15518_v59  ;;  %10606 = vmatpush3.bf16.msra.mxu0 %v13034_v20 }
 0x338   :  { %9695 = vmatprep.subr.msk.mxu0 %vm237_vm0, %v11501_v54 }
 0x33a   :  { %9430 = vmatmul.mubr.msk.f32.gmra.mrb[20].mxu0 %vm1180_vm5, %v12825_v63 }
 0x33b   :  { %9432 = vmatprep.mubr.msk.f32.mxu0 %vm11522_vm8, %v15518_v59 }
 0x33e   :  { %9433 = vmatmul.mubr.msk.f32.gmra.mrb[22].mxu0 %vm1180_vm5, %v12828_v48  ;;  %v13231_v48 = vld [vmem:[%s15396_s0 + $0x70] sm:$0xff] }
 0x33f   :  { %9435 = vmatprep.mubr.msk.f32.mxu0 %vm11522_vm8, %v15518_v59 }
 0x342   :  { %9436 = vmatmul.mubr.msk.f32.gmra.mrb[24].mxu0 %vm1180_vm5, %v12831_v11 }
 0x343   :  { %9438 = vmatprep.mubr.msk.f32.mxu0 %vm11522_vm8, %v15518_v59 }
 0x346   :  { %9439 = vmatmul.mubr.msk.f32.gmra.mrb[26].mxu0 %vm1180_vm5, %v12834_v23 }
 0x347   :  { %9441 = vmatprep.mubr.msk.f32.mxu0 %vm11522_vm8, %v15518_v59 }
 0x34a   :  { %9442 = vmatmul.mubr.msk.f32.gmra.mrb[28].mxu0 %vm1180_vm5, %v12837_v50  ;;  %v11502_v50 = vld [vmem:[%s15395_s1 + $0x4] sm:$0xf] }
 0x34b   :  { %9444 = vmatprep.mubr.msk.f32.mxu0 %vm11522_vm8, %v15518_v59 }
 0x34e   :  { %9445 = vmatmul.mubr.msk.f32.gmra.mrb[30].mxu0 %vm1180_vm5, %v12844_v44  ;;  %v13237_v44 = vpack.c.bf16 %v137_v9, %v136_v46 }
 0x34f   :  { %9447 = vmatprep.mubr.msk.f32.mxu0 %vm11522_vm8, %v15518_v59 }
 0x350   :  { %15540 = vst [vmem:[#allocation43_spill] sm:$0xff] %v13237_v44 }
 0x352   :  { %9448 = vmatmul.mubr.msk.f32.gmra.mrb[32].mxu0 %vm1180_vm5, %v12849_v15 }
 0x353   :  { %9466 = vmatprep.mubr.msk.f32.mxu0 %vm11522_vm8, %v15518_v59 }
 0x3fd   :  { %v2936_v12 = vpop.f32.mrb[12].mxu0 }
 0x3fe   :  { %v10887_v4 = vadd.f32 %v13209_v10, %v2936_v12  ;;  %v9419_v6 = vpop.f32.mrb[13].mxu0 }
 0x400   :  { %vm3001_vm12 = vcmp.gt.f32.partialorder %v10887_v4, 0.0  ;;  %v3012_v33 = vmul.f32 0.2, %v10887_v4 }
 0x401   :  { %v2941_v3 = vpop.f32.mrb[14].mxu0 }
 0x402   :  { %v3023_v19 = vsel %vm3001_vm12, %v10887_v4, %v3012_v33  ;;  %v10888_v7 = vadd.f32 %v13209_v10, %v2941_v3  ;;  %v9422_v53 = vpop.f32.mrb[15].mxu0  ;;  %v13287_v3 = vpack.c.bf16 %v139_v51, %v138_v61 }
 0x403   :  { %9467 = vmatmul.mubr.msk.f32.vlgmr.msra.gmra.mrb[34].mxu0 %vm1180_vm5, %v3023_v19  ;;  %v3204_v11 = vrot.slane %v3023_v19, 1  ;;  %v3378_v15 = vrot.slane %v3023_v19, 2  ;;  %v3552_v8 = vrot.slane %v3023_v19, 3  ;;  %v3726_v41 = vrot.slane %v3023_v19, 4  ;;  %v141_v53 = vld [vmem:[%s15401_s7 + $0x68] sm:$0xff] }
 0x404   :  { %vm3002_vm13 = vcmp.gt.f32.partialorder %v10888_v7, 0.0  ;;  %v3013_v63 = vmul.f32 0.2, %v10888_v7  ;;  %9696 = vmatpush3.msk.msra.mxu0 %vm237_vm0, %v11501_v54  ;;  %9697 = vmatprep.mubr.msk.f32.mxu0 %vm200_vm1, %v13215_v24  ;;  %15541 = vst [vmem:[#allocation44_spill] sm:$0xff] %v13287_v3 }
 0x405   :  { %v2946_v23 = vpop.f32.mrb[16].mxu0  ;;  %9715 = vmatprep.subr.msk.mxu0 %vm237_vm0, %v11502_v50 }
 0x406   :  { %v3024_v62 = vsel %vm3002_vm13, %v10888_v7, %v3013_v63  ;;  %v10889_v47 = vadd.f32 %v13209_v10, %v2946_v23  ;;  %v9425_v57 = vpop.f32.mrb[17].mxu0  ;;  %v140_v7 = vld [vmem:[%s15401_s7 + $0x60] sm:$0xff] }
 0x407   :  { %v3205_v45 = vrot.slane %v3024_v62, 1  ;;  %v3379_v16 = vrot.slane %v3024_v62, 2  ;;  %v3553_v43 = vrot.slane %v3024_v62, 3  ;;  %v3727_v30 = vrot.slane %v3024_v62, 4  ;;  %9470 = vmatmul.mubr.msk.f32.vlgmr.msra.gmra.mrb[12].mxu1 %vm1180_vm5, %v3024_v62  ;;  %9698 = vmatmul.mubr.msk.f32.vlgmr.msra.gmra.mrb[36].mxu0 %vm200_vm1, %v13231_v48 }
 0x408   :  { %vm3003_vm14 = vcmp.gt.f32.partialorder %v10889_v47, 0.0  ;;  %v3014_v34 = vmul.f32 0.2, %v10889_v47  ;;  %9716 = vmatpush3.msk.msra.mxu0 %vm237_vm0, %v11502_v50  ;;  %9472 = vmatprep.mubr.msk.f32.mxu1 %vm11522_vm8, %v15518_v59  ;;  %v13308_v50 = vld [vmem:[%s15396_s0 + $0x90] sm:$0xff] }
 0x409   :  { %v2951_v29 = vpop.f32.mrb[18].mxu0  ;;  %9700 = vmatprep.mubr.msk.f32.mxu0 %vm200_vm1, %v13243_v28  ;;  %9735 = vmatprep.subr.msk.mxu0 %vm237_vm0, %v13272_v38  ;;  %v13277_v17 = vsel %vm379_vm2, %v3204_v11, %v3205_v45  ;;  %v13280_v54 = vsel %vm569_vm4, %v3378_v15, %v3379_v16  ;;  %v13283_v12 = vsel %vm759_vm3, %v3552_v8, %v3553_v43  ;;  %v13313_v8 = vld [vmem:[%s15396_s0 + $0x98] sm:$0xff] }
 0x40a   :  { %v3025_v4 = vsel %vm3003_vm14, %v10889_v47, %v3014_v34  ;;  %v10890_v6 = vadd.f32 %v13209_v10, %v2951_v29  ;;  %v9428_v33 = vpop.f32.mrb[19].mxu0  ;;  %10609 = vmatpush3.bf16.msra.mxu1 %v13237_v44  ;;  %v13290_v19 = vsel %vm237_vm0, %v3726_v41, %v3727_v30  ;;  %v13330_v29 = vpack.c.bf16 %v141_v53, %v140_v7  ;;  %v13348_v7 = vld [vmem:[%s15396_s0 + $0xa0] sm:$0xff] }
 0x40b   :  { %15542 = vst [vmem:[#allocation45_spill] sm:$0xff] %v13290_v19  ;;  %9473 = vmatmul.mubr.msk.f32.gmra.mrb[14].mxu1 %vm1180_vm5, %v3025_v4  ;;  %9701 = vmatmul.mubr.msk.f32.gmra.mrb[38].mxu0 %vm200_vm1, %v13260_v55  ;;  %v3207_v46 = vrot.slane %v3025_v4, 1  ;;  %v3381_v9 = vrot.slane %v3025_v4, 2  ;;  %v3555_v63 = vrot.slane %v3025_v4, 3  ;;  %v3729_v11 = vrot.slane %v3025_v4, 4 }
 0x40c   :  { %vm3004_vm15 = vcmp.gt.f32.partialorder %v10890_v6, 0.0  ;;  %v3015_v23 = vmul.f32 0.2, %v10890_v6  ;;  %9475 = vmatprep.mubr.msk.f32.mxu1 %vm11522_vm8, %v15518_v59  ;;  %9703 = vmatprep.mubr.msk.f32.mxu0 %vm200_vm1, %v13267_v0  ;;  %15544 = vst [vmem:[#allocation47_spill] sm:$0xff] %v13330_v29  ;;  %v4171_v37 = vrot.slane %v13313_v8, 1 }
 0x40d   :  { %v2956_v15 = vpop.f32.mrb[20].mxu0  ;;  %10610 = vmatprep.subr.bf16.mxu1 %v15512_v22  ;;  %v13317_v62 = vsel %vm379_vm2, %v3205_v45, %v3207_v46  ;;  %v13320_v47 = vsel %vm569_vm4, %v3379_v16, %v3381_v9  ;;  %v13323_v57 = vsel %vm759_vm3, %v3553_v43, %v3555_v63  ;;  %v13326_v61 = vsel %vm237_vm0, %v3727_v30, %v3729_v11  ;;  %v142_v45 = vld [vmem:[%s15401_s7 + $0x70] sm:$0xff]  ;;  %v143_v16 = vld [vmem:[%s15401_s7 + $0x78] sm:$0xff] }
 0x40e   :  { %15543 = vst [vmem:[#allocation46_spill] sm:$0xff] %v13326_v61  ;;  %v3026_v51 = vsel %vm3004_vm15, %v10890_v6, %v3015_v23  ;;  %v10891_v41 = vadd.f32 %v13209_v10, %v2956_v15  ;;  %v9431_v34 = vpop.f32.mrb[21].mxu0  ;;  %10612 = vmatpush3.bf16.msra.mxu1 %v13287_v3  ;;  %v13353_v23 = vld [vmem:[%s15396_s0 + $0xa8] sm:$0xff]  ;;  %v13370_v2 = vpack.c.bf16 %v143_v16, %v142_v45  ;;  %v4161_v45 = vrot.slane %v13231_v48, 1 }
 0x40f   :  { %9476 = vmatmul.mubr.msk.f32.gmra.mrb[16].mxu1 %vm1180_vm5, %v3026_v51  ;;  %9704 = vmatmul.mubr.msk.f32.gmra.mrb[40].mxu0 %vm200_vm1, %v13308_v50  ;;  %v3209_v43 = vrot.slane %v3026_v51, 1  ;;  %v3383_v30 = vrot.slane %v3026_v51, 2  ;;  %v3557_v4 = vrot.slane %v3026_v51, 3  ;;  %v3731_v6 = vrot.slane %v3026_v51, 4 }
 0x410   :  { %vm3005_vm6 = vcmp.gt.f32.partialorder %v10891_v41, 0.0  ;;  %v3016_v33 = vmul.f32 0.2, %v10891_v41  ;;  %9478 = vmatprep.mubr.msk.f32.mxu1 %vm11522_vm8, %v15518_v59  ;;  %9706 = vmatprep.mubr.msk.f32.mxu0 %vm200_vm1, %v13313_v8  ;;  %15546 = vst [vmem:[#allocation49_spill] sm:$0xff] %v13370_v2  ;;  %v4164_v5 = vsel %vm379_vm2, %v4161_v45, %v4163_v42 }
 0x411   :  { %v2961_v53 = vpop.f32.mrb[22].mxu0  ;;  %10613 = vmatprep.subr.bf16.mxu1 %v15512_v22  ;;  %v13357_v15 = vsel %vm379_vm2, %v3207_v46, %v3209_v43  ;;  %v13360_v51 = vsel %vm569_vm4, %v3381_v9, %v3383_v30  ;;  %v13363_v34 = vsel %vm759_vm3, %v3555_v63, %v3557_v4  ;;  %v13366_v3 = vsel %vm237_vm0, %v3729_v11, %v3731_v6 }
 0x412   :  { %15545 = vst [vmem:[#allocation48_spill] sm:$0xff] %v13366_v3  ;;  %v3027_v44 = vsel %vm3005_vm6, %v10891_v41, %v3016_v33  ;;  %v10892_v13 = vadd.f32 %v13209_v10, %v2961_v53  ;;  %v9434_v39 = vpop.f32.mrb[23].mxu0  ;;  %10615 = vmatpush3.bf16.msra.mxu1 %v13330_v29  ;;  %v4160_v41 = vrot.slane %v13215_v24, 1 }
 0x413   :  { %9479 = vmatmul.mubr.msk.f32.gmra.mrb[18].mxu1 %vm1180_vm5, %v3027_v44  ;;  %9707 = vmatmul.mubr.msk.f32.gmra.mrb[42].mxu0 %vm200_vm1, %v13348_v7  ;;  %v3211_v46 = vrot.slane %v3027_v44, 1  ;;  %v3385_v9 = vrot.slane %v3027_v44, 2  ;;  %v3559_v63 = vrot.slane %v3027_v44, 3  ;;  %v3733_v60 = vrot.slane %v3027_v44, 4  ;;  %v13382_v39 = vld [vmem:[%s15396_s0 + $0xb0] sm:$0xff]  ;;  %v13389_v44 = vld [vmem:[%s15396_s0 + $0xb8] sm:$0xff] }
 0x414   :  { %vm3006_vm7 = vcmp.gt.f32.partialorder %v10892_v13, 0.0  ;;  %v3017_v11 = vmul.f32 0.2, %v10892_v13  ;;  %9481 = vmatprep.mubr.msk.f32.mxu1 %vm11522_vm8, %v15518_v59  ;;  %9709 = vmatprep.mubr.msk.f32.mxu0 %vm200_vm1, %v13353_v23 }
 0x415   :  { %v2966_v16 = vpop.f32.mrb[24].mxu0  ;;  %10616 = vmatprep.subr.bf16.mxu1 %v15512_v22  ;;  %v13393_v33 = vsel %vm379_vm2, %v3209_v43, %v3211_v46  ;;  %v13396_v53 = vsel %vm569_vm4, %v3383_v30, %v3385_v9  ;;  %v13399_v29 = vsel %vm759_vm3, %v3557_v4, %v3559_v63  ;;  %v13402_v21 = vsel %vm237_vm0, %v3731_v6, %v3733_v60 }
 0x416   :  { %15547 = vst [vmem:[#allocation50_spill] sm:$0xff] %v13402_v21  ;;  %v3028_v58 = vsel %vm3006_vm7, %v10892_v13, %v3017_v11  ;;  %v10893_v36 = vadd.f32 %v13209_v10, %v2966_v16  ;;  %v9437_v31 = vpop.f32.mrb[25].mxu0  ;;  %10618 = vmatpush3.bf16.msra.mxu1 %v13370_v2  ;;  %v4162_v13 = vsel %vm379_vm2, %v4160_v41, %v4161_v45  ;;  %v4165_v11 = vrot.slane %v13260_v55, 1 }
 0x417   :  { %9482 = vmatmul.mubr.msk.f32.gmra.mrb[20].mxu1 %vm1180_vm5, %v3028_v58  ;;  %9710 = vmatmul.mubr.msk.f32.gmra.mrb[44].mxu0 %vm200_vm1, %v13382_v39  ;;  %v3213_v43 = vrot.slane %v3028_v58, 1  ;;  %v3387_v30 = vrot.slane %v3028_v58, 2  ;;  %v3561_v4 = vrot.slane %v3028_v58, 3  ;;  %v3735_v56 = vrot.slane %v3028_v58, 4  ;;  %v13417_v31 = vld [vmem:[%s15396_s0 + $0xc0] sm:$0xff] }
 0x418   :  { %vm3007_vm9 = vcmp.gt.f32.partialorder %v10893_v36, 0.0  ;;  %v3018_v6 = vmul.f32 0.2, %v10893_v36  ;;  %9484 = vmatprep.mubr.msk.f32.mxu1 %vm11522_vm8, %v15518_v59  ;;  %9712 = vmatprep.mubr.msk.f32.mxu0 %vm200_vm1, %v13389_v44 }
 0x419   :  { %v2971_v16 = vpop.f32.mrb[26].mxu0  ;;  %v13422_v58 = vsel %vm379_vm2, %v3211_v46, %v3213_v43  ;;  %10619 = vmatprep.subr.bf16.mxu1 %v15512_v22  ;;  %v13426_v2 = vsel %vm569_vm4, %v3385_v9, %v3387_v30  ;;  %v13429_v1 = vsel %vm759_vm3, %v3559_v63, %v3561_v4  ;;  %v13432_v49 = vsel %vm237_vm0, %v3733_v60, %v3735_v56 }
 0x41a   :  { %15548 = vst [vmem:[#allocation51_spill] sm:$0xff] %v13429_v1  ;;  %15549 = vst [vmem:[#allocation52_spill] sm:$0xff] %v13432_v49  ;;  %v3029_v20 = vsel %vm3007_vm9, %v10893_v36, %v3018_v6  ;;  %v10894_v41 = vadd.f32 %v13209_v10, %v2971_v16  ;;  %v9440_v14 = vpop.f32.mrb[27].mxu0  ;;  %v4167_v46 = vrot.slane %v13267_v0, 1  ;;  %v4166_v36 = vsel %vm379_vm2, %v4163_v42, %v4165_v11 }
 0x41b   :  { %9485 = vmatmul.mubr.msk.f32.gmra.mrb[22].mxu1 %vm1180_vm5, %v3029_v20  ;;  %9713 = vmatmul.mubr.msk.f32.gmra.mrb[46].mxu0 %vm200_vm1, %v13417_v31  ;;  %v3215_v9 = vrot.slane %v3029_v20, 1  ;;  %v3389_v32 = vrot.slane %v3029_v20, 2  ;;  %v3563_v63 = vrot.slane %v3029_v20, 3  ;;  %v3737_v21 = vrot.slane %v3029_v20, 4 }
 0x41c   :  { %vm3008_vm10 = vcmp.gt.f32.partialorder %v10894_v41, 0.0  ;;  %v3019_v60 = vmul.f32 0.2, %v10894_v41  ;;  %9487 = vmatprep.mubr.msk.f32.mxu1 %vm11522_vm8, %v15518_v59  ;;  %9717 = vmatprep.mubr.msk.f32.mxu0 %vm200_vm1, %v4162_v13  ;;  %v4169_v14 = vrot.slane %v13308_v50, 1  ;;  %v4168_v42 = vsel %vm379_vm2, %v4165_v11, %v4167_v46 }
 0x41d   :  { %v2976_v45 = vpop.f32.mrb[28].mxu0  ;;  %v13446_v6 = vsel %vm379_vm2, %v3213_v43, %v3215_v9  ;;  %v13449_v16 = vsel %vm569_vm4, %v3387_v30, %v3389_v32  ;;  %v13452_v20 = vsel %vm759_vm3, %v3561_v4, %v3563_v63  ;;  %v13455_v49 = vsel %vm237_vm0, %v3735_v56, %v3737_v21 }
 0x41e   :  { %15550 = vst [vmem:[#allocation53_spill] sm:$0xff] %v13452_v20  ;;  %15551 = vst [vmem:[#allocation54_spill] sm:$0xff] %v13455_v49  ;;  %v3030_v40 = vsel %vm3008_vm10, %v10894_v41, %v3019_v60  ;;  %v10895_v13 = vadd.f32 %v13209_v10, %v2976_v45  ;;  %v9443_v3 = vpop.f32.mrb[29].mxu0  ;;  %v4170_v56 = vsel %vm379_vm2, %v4167_v46, %v4169_v14 }
 0x41f   :  { %9488 = vmatmul.mubr.msk.f32.gmra.mrb[24].mxu1 %vm1180_vm5, %v3030_v40  ;;  %9718 = vmatmul.mubr.msk.f32.vlgmr.msra.gmra.mrb[36].mxu0 %vm200_vm1, %v4164_v5  ;;  %v3217_v43 = vrot.slane %v3030_v40, 1  ;;  %v3391_v30 = vrot.slane %v3030_v40, 2  ;;  %v3565_v61 = vrot.slane %v3030_v40, 3  ;;  %v3739_v4 = vrot.slane %v3030_v40, 4  ;;  %v13473_v40 = vld [vmem:[%s15395_s1 + $0xc] sm:$0xf] }
 0x420   :  { %vm3009_vm11 = vcmp.gt.f32.partialorder %v10895_v13, 0.0  ;;  %v3020_v26 = vmul.f32 0.2, %v10895_v13  ;;  %9736 = vmatpush3.msk.msra.mxu0 %vm237_vm0, %v13272_v38  ;;  %9490 = vmatprep.mubr.msk.f32.mxu1 %vm11522_vm8, %v15518_v59  ;;  %v4173_v3 = vrot.slane %v13348_v7, 1  ;;  %v4175_v5 = vrot.slane %v13353_v23, 1 }
 0x421   :  { %v2981_v11 = vpop.f32.mrb[30].mxu0  ;;  %9720 = vmatprep.mubr.msk.f32.mxu0 %vm200_vm1, %v4166_v36  ;;  %9755 = vmatprep.subr.msk.mxu0 %vm237_vm0, %v13473_v40  ;;  %v13478_v38 = vsel %vm379_vm2, %v3215_v9, %v3217_v43  ;;  %v13481_v41 = vsel %vm569_vm4, %v3389_v32, %v3391_v30  ;;  %v13484_v46 = vsel %vm759_vm3, %v3563_v63, %v3565_v61 }
 0x422   :  { %15552 = vst [vmem:[#allocation55_spill] sm:$0xff] %v13484_v46  ;;  %v3031_v60 = vsel %vm3009_vm11, %v10895_v13, %v3020_v26  ;;  %v10896_v36 = vadd.f32 %v13209_v10, %v2981_v11  ;;  %v9446_v45 = vpop.f32.mrb[31].mxu0  ;;  %v4172_v49 = vsel %vm379_vm2, %v4169_v14, %v4171_v37  ;;  %v13489_v19 = vsel %vm237_vm0, %v3737_v21, %v3739_v4 }
 0x423   :  { %15553 = vst [vmem:[#allocation56_spill] sm:$0xff] %v13489_v19  ;;  %9491 = vmatmul.mubr.msk.f32.gmra.mrb[26].mxu1 %vm1180_vm5, %v3031_v60  ;;  %9721 = vmatmul.mubr.msk.f32.gmra.mrb[38].mxu0 %vm200_vm1, %v4168_v42  ;;  %v3219_v9 = vrot.slane %v3031_v60, 1  ;;  %v3393_v20 = vrot.slane %v3031_v60, 2  ;;  %v3567_v32 = vrot.slane %v3031_v60, 3  ;;  %v3741_v1 = vrot.slane %v3031_v60, 4 }
 0x424   :  { %vm3010_vm12 = vcmp.gt.f32.partialorder %v10896_v36, 0.0  ;;  %v3021_v63 = vmul.f32 0.2, %v10896_v36  ;;  %9493 = vmatprep.mubr.msk.f32.mxu1 %vm11522_vm8, %v15518_v59  ;;  %9723 = vmatprep.mubr.msk.f32.mxu0 %vm200_vm1, %v4170_v56  ;;  %v4174_v26 = vsel %vm379_vm2, %v4171_v37, %v4173_v3  ;;  %v4177_v21 = vrot.slane %v13382_v39, 1 }
 0x425   :  { %v2986_v14 = vpop.f32.mrb[32].mxu0  ;;  %v13499_v13 = vsel %vm379_vm2, %v3217_v43, %v3219_v9  ;;  %v13502_v42 = vsel %vm569_vm4, %v3391_v30, %v3393_v20  ;;  %v13505_v11 = vsel %vm759_vm3, %v3565_v61, %v3567_v32  ;;  %v13508_v60 = vsel %vm237_vm0, %v3739_v4, %v3741_v1  ;;  %v13523_v4 = vld [vmem:[%s15396_s0 + $0xc8] sm:$0xf] }
 0x426   :  { %15554 = vst [vmem:[#allocation57_spill] sm:$0xff] %v13505_v11  ;;  %15555 = vst [vmem:[#allocation58_spill] sm:$0xff] %v13508_v60  ;;  %v3032_v45 = vsel %vm3010_vm12, %v10896_v36, %v3021_v63  ;;  %v10897_v56 = vadd.f32 %v13209_v10, %v2986_v14  ;;  %v9449_v19 = vpop.f32.mrb[33].mxu0  ;;  %v4179_v37 = vrot.slane %v13389_v44, 1  ;;  %v4181_v46 = vrot.slane %v13417_v31, 1  ;;  %v145_v36 = vld [vmem:[%s15401_s7 + $0x88] sm:$0xff] }
 0x427   :  { %9494 = vmatmul.mubr.msk.f32.gmra.mrb[28].mxu1 %vm1180_vm5, %v3032_v45  ;;  %9724 = vmatmul.mubr.msk.f32.gmra.mrb[40].mxu0 %vm200_vm1, %v4172_v49  ;;  %v3221_v43 = vrot.slane %v3032_v45, 1  ;;  %v3395_v30 = vrot.slane %v3032_v45, 2  ;;  %v3569_v25 = vrot.slane %v3032_v45, 3  ;;  %v3743_v61 = vrot.slane %v3032_v45, 4  ;;  %v144_v49 = vld [vmem:[%s15401_s7 + $0x80] sm:$0xff] }
 0x428   :  { %vm3011_vm13 = vcmp.gt.f32.partialorder %v10897_v56, 0.0  ;;  %v3022_v11 = vmul.f32 0.2, %v10897_v56  ;;  %9496 = vmatprep.mubr.msk.f32.mxu1 %vm11522_vm8, %v15518_v59  ;;  %9726 = vmatprep.mubr.msk.f32.mxu0 %vm200_vm1, %v4174_v26  ;;  %v4176_v10 = vsel %vm379_vm2, %v4173_v3, %v4175_v5  ;;  %v4178_v19 = vsel %vm379_vm2, %v4175_v5, %v4177_v21 }
 0x429   :  { %v13532_v63 = vsel %vm379_vm2, %v3219_v9, %v3221_v43  ;;  %v13535_v3 = vsel %vm569_vm4, %v3393_v20, %v3395_v30  ;;  %v13538_v5 = vsel %vm759_vm3, %v3567_v32, %v3569_v25  ;;  %v13541_v26 = vsel %vm237_vm0, %v3741_v1, %v3743_v61 }
 0x42a   :  { %15556 = vst [vmem:[#allocation59_spill] sm:$0xff] %v13541_v26  ;;  %v13543_v14 = vsel %vm3011_vm13, %v10897_v56, %v3022_v11  ;;  %v4180_v45 = vsel %vm379_vm2, %v4177_v21, %v4179_v37  ;;  %v4182_v60 = vsel %vm379_vm2, %v4179_v37, %v4181_v46  ;;  %v4183_v21 = vrot.slane %v13523_v4, 1 }
 0x42b   :  { %9497 = vmatmul.mubr.msk.f32.gmra.mrb[30].mxu1 %vm1180_vm5, %v13543_v14  ;;  %9727 = vmatmul.mubr.msk.f32.gmra.mrb[42].mxu0 %vm200_vm1, %v4176_v10  ;;  %v3223_v20 = vrot.slane %v13543_v14, 1  ;;  %v3397_v9 = vrot.slane %v13543_v14, 2  ;;  %v15478_v32 = vrot.slane %v13543_v14, 3  ;;  %v4346_v11 = vrot.slane %v13215_v24, 2 }
 0x42c   :  { %9515 = vmatprep.mubr.msk.f32.mxu1 %vm11522_vm8, %v15518_v59  ;;  %9729 = vmatprep.mubr.msk.f32.mxu0 %vm200_vm1, %v4178_v19  ;;  %v4347_v56 = vrot.slane %v13231_v48, 2  ;;  %v13560_v37 = vpack.c.bf16 %v145_v36, %v144_v49  ;;  %v15557_v26 = vrot.slane %v13543_v14, 4  ;;  %v147_v36 = vld [vmem:[%s15401_s7 + $0x98] sm:$0xff] }
 0x42d   :  { %v13565_v10 = vsel %vm379_vm2, %v3221_v43, %v3223_v20  ;;  %v13570_v1 = vsel %vm569_vm4, %v3395_v30, %v3397_v9  ;;  %v13575_v19 = vsel %vm759_vm3, %v3569_v25, %v15478_v32  ;;  %v146_v43 = vld [vmem:[%s15401_s7 + $0x90] sm:$0xff]  ;;  %v4349_v25 = vrot.slane %v13243_v28, 2 }
 0x42e   :  { %v13580_v49 = vsel %vm237_vm0, %v3743_v61, %v15557_v26  ;;  %v4184_v30 = vsel %vm379_vm2, %v4181_v46, %v4183_v21  ;;  %v4348_v61 = vsel %vm569_vm4, %v4346_v11, %v4347_v56  ;;  %v13598_v26 = vpack.c.bf16 %v147_v36, %v146_v43  ;;  %v149_v46 = vld [vmem:[%s15401_s7 + $0xa8] sm:$0xff]  ;;  %v151_v43 = vld [vmem:[%s15401_s7 + $0xb8] sm:$0xff] }
 0x42f   :  { %9516 = vmatmul.mubr.msk.f32.vlgmr.msra.gmra.mrb[32].mxu1 %vm1180_vm5, %v13277_v17  ;;  %9730 = vmatmul.mubr.msk.f32.gmra.mrb[44].mxu0 %vm200_vm1, %v4180_v45  ;;  %v4351_v32 = vrot.slane %v13260_v55, 2  ;;  %v148_v17 = vld [vmem:[%s15401_s7 + $0xa0] sm:$0xff]  ;;  %v4353_v45 = vrot.slane %v13267_v0, 2 }
 0x430   :  { %9518 = vmatprep.mubr.msk.f32.mxu1 %vm11522_vm8, %v15518_v59  ;;  %9732 = vmatprep.mubr.msk.f32.mxu0 %vm200_vm1, %v4182_v60  ;;  %v4350_v60 = vsel %vm569_vm4, %v4347_v56, %v4349_v25  ;;  %v13620_v11 = vpack.c.bf16 %v149_v46, %v148_v17  ;;  %v150_v56 = vld [vmem:[%s15401_s7 + $0xb0] sm:$0xff]  ;;  %v4361_v17 = vrot.slane %v13353_v23, 2 }
 0x431   :  { %10621 = vmatpush3.bf16.msra.mxu1 %v13560_v37  ;;  %v4352_v21 = vsel %vm569_vm4, %v4349_v25, %v4351_v32  ;;  %v4354_v36 = vsel %vm569_vm4, %v4351_v32, %v4353_v45 }
 0x432   :  { %10622 = vmatprep.subr.bf16.mxu1 %v15512_v22 }
 0x433   :  { %9519 = vmatmul.mubr.msk.f32.gmra.mrb[12].mxu1 %vm1180_vm5, %v13317_v62  ;;  %9733 = vmatmul.mubr.msk.f32.gmra.mrb[46].mxu0 %vm200_vm1, %v4184_v30  ;;  %v4355_v62 = vrot.slane %v13308_v50, 2  ;;  %v4359_v30 = vrot.slane %v13348_v7, 2 }
 0x434   :  { %9521 = vmatprep.mubr.msk.f32.mxu1 %vm11522_vm8, %v15518_v59  ;;  %9737 = vmatprep.mubr.msk.f32.mxu0 %vm200_vm1, %v4348_v61  ;;  %v11505_v61 = vld [vmem:[%s15395_s1 + $0x10] sm:$0xf] }
 0x435   :  { %10624 = vmatpush3.bf16.msra.mxu1 %v13598_v26  ;;  %v4356_v25 = vsel %vm569_vm4, %v4353_v45, %v4355_v62  ;;  %v4365_v45 = vrot.slane %v13389_v44, 2 }
 0x436   :  { %10625 = vmatprep.subr.bf16.mxu1 %v15512_v22 }
 0x437   :  { %9522 = vmatmul.mubr.msk.f32.gmra.mrb[14].mxu1 %vm1180_vm5, %v13357_v15  ;;  %9738 = vmatmul.mubr.msk.f32.vlgmr.msra.gmra.mrb[36].mxu0 %vm200_vm1, %v4350_v60  ;;  %v4357_v15 = vrot.slane %v13313_v8, 2  ;;  %v4363_v60 = vrot.slane %v13382_v39, 2 }
 0x438   :  { %9756 = vmatpush3.msk.msra.mxu0 %vm237_vm0, %v13473_v40  ;;  %9524 = vmatprep.mubr.msk.f32.mxu1 %vm11522_vm8, %v15518_v59  ;;  %v13645_v40 = vpack.c.bf16 %v151_v43, %v150_v56  ;;  %v4369_v56 = vrot.slane %v13523_v4, 2 }
 0x439   :  { %9740 = vmatprep.mubr.msk.f32.mxu0 %vm200_vm1, %v4352_v21  ;;  %9775 = vmatprep.subr.msk.mxu0 %vm237_vm0, %v11505_v61  ;;  %v4358_v32 = vsel %vm569_vm4, %v4355_v62, %v4357_v15  ;;  %v4360_v46 = vsel %vm569_vm4, %v4357_v15, %v4359_v30  ;;  %v4364_v62 = vsel %vm569_vm4, %v4361_v17, %v4363_v60  ;;  %v4367_v21 = vrot.slane %v13417_v31, 2 }
 0x43a   :  { %10627 = vmatpush3.bf16.msra.mxu1 %v13620_v11  ;;  %v4533_v15 = vrot.slane %v13231_v48, 3 }
 0x43b   :  { %9525 = vmatmul.mubr.msk.f32.gmra.mrb[16].mxu1 %vm1180_vm5, %v13393_v33  ;;  %9741 = vmatmul.mubr.msk.f32.gmra.mrb[38].mxu0 %vm200_vm1, %v4354_v36  ;;  %v4362_v33 = vsel %vm569_vm4, %v4359_v30, %v4361_v17  ;;  %v4368_v43 = vsel %vm569_vm4, %v4365_v45, %v4367_v21  ;;  %v4532_v36 = vrot.slane %v13215_v24, 3  ;;  %v4539_v17 = vrot.slane %v13267_v0, 3 }
 0x43c   :  { %9527 = vmatprep.mubr.msk.f32.mxu1 %vm11522_vm8, %v15518_v59  ;;  %9743 = vmatprep.mubr.msk.f32.mxu0 %vm200_vm1, %v4356_v25  ;;  %v4370_v25 = vsel %vm569_vm4, %v4367_v21, %v4369_v56  ;;  %v152_v56 = vld [vmem:[%s15401_s7 + $0xc0] sm:$0xff] }
 0x43d   :  { %10628 = vmatprep.subr.bf16.mxu1 %v15512_v22  ;;  %v4534_v30 = vsel %vm759_vm3, %v4532_v36, %v4533_v15  ;;  %v4551_v36 = vrot.slane %v13389_v44, 3 }
 0x43e   :  { %10630 = vmatpush3.bf16.msra.mxu1 %v13645_v40 }
 0x43f   :  { %9528 = vmatmul.mubr.msk.f32.gmra.mrb[18].mxu1 %vm1180_vm5, %v13422_v58  ;;  %9744 = vmatmul.mubr.msk.f32.gmra.mrb[40].mxu0 %vm200_vm1, %v4358_v32  ;;  %v4366_v58 = vsel %vm569_vm4, %v4363_v60, %v4365_v45  ;;  %v4537_v32 = vrot.slane %v13260_v55, 3 }
 0x440   :  { %9530 = vmatprep.mubr.msk.f32.mxu1 %vm11522_vm8, %v15518_v59  ;;  %9746 = vmatprep.mubr.msk.f32.mxu0 %vm200_vm1, %v4360_v46  ;;  %v4541_v46 = vrot.slane %v13308_v50, 3 }
 0x441   :  { %10631 = vmatprep.subr.bf16.mxu1 %v15512_v22 }
 0x442   :  { %v4542_v45 = vsel %vm759_vm3, %v4539_v17, %v4541_v46 }
 0x443   :  { %9531 = vmatmul.mubr.msk.f32.gmra.mrb[20].mxu1 %vm1180_vm5, %v13446_v6  ;;  %9747 = vmatmul.mubr.msk.f32.gmra.mrb[42].mxu0 %vm200_vm1, %v4362_v33  ;;  %v4535_v6 = vrot.slane %v13243_v28, 3  ;;  %v4543_v33 = vrot.slane %v13313_v8, 3 }
 0x444   :  { %9533 = vmatprep.mubr.msk.f32.mxu1 %vm11522_vm8, %v15518_v59  ;;  %9749 = vmatprep.mubr.msk.f32.mxu0 %vm200_vm1, %v4364_v62  ;;  %v4545_v62 = vrot.slane %v13348_v7, 3 }
 0x445   :  { %v4538_v60 = vsel %vm759_vm3, %v4535_v6, %v4537_v32 }
 0x446   :  { %v4546_v21 = vsel %vm759_vm3, %v4543_v33, %v4545_v62 }
 0x447   :  { %9534 = vmatmul.mubr.msk.f32.gmra.mrb[22].mxu1 %vm1180_vm5, %v13478_v38  ;;  %9750 = vmatmul.mubr.msk.f32.gmra.mrb[44].mxu0 %vm200_vm1, %v4366_v58  ;;  %v4536_v38 = vsel %vm759_vm3, %v4533_v15, %v4535_v6  ;;  %v4549_v58 = vrot.slane %v13382_v39, 3  ;;  %v4553_v6 = vrot.slane %v13417_v31, 3 }
 0x448   :  { %9536 = vmatprep.mubr.msk.f32.mxu1 %vm11522_vm8, %v15518_v59  ;;  %9752 = vmatprep.mubr.msk.f32.mxu0 %vm200_vm1, %v4368_v43 }
 0x44b   :  { %9537 = vmatmul.mubr.msk.f32.gmra.mrb[24].mxu1 %vm1180_vm5, %v13499_v13  ;;  %9753 = vmatmul.mubr.msk.f32.gmra.mrb[46].mxu0 %vm200_vm1, %v4370_v25  ;;  %v4540_v13 = vsel %vm759_vm3, %v4537_v32, %v4539_v17  ;;  %v4552_v32 = vsel %vm759_vm3, %v4549_v58, %v4551_v36  ;;  %v4554_v17 = vsel %vm759_vm3, %v4551_v36, %v4553_v6  ;;  %v166_v36 = vld [vmem:[%s15401_s7 + $0x130] sm:$0xff] }
 0x44c   :  { %9539 = vmatprep.mubr.msk.f32.mxu1 %vm11522_vm8, %v15518_v59  ;;  %9757 = vmatprep.mubr.msk.f32.mxu0 %vm200_vm1, %v4534_v30  ;;  %v155_v30 = vld [vmem:[%s15401_s7 + $0xd8] sm:$0xff] }
 0x44f   :  { %9540 = vmatmul.mubr.msk.f32.gmra.mrb[26].mxu1 %vm1180_vm5, %v13532_v63  ;;  %9758 = vmatmul.mubr.msk.f32.vlgmr.msra.gmra.mrb[36].mxu0 %vm200_vm1, %v4536_v38  ;;  %v4544_v63 = vsel %vm759_vm3, %v4541_v46, %v4543_v33  ;;  %v4555_v38 = vrot.slane %v13523_v4, 3  ;;  %v4718_v46 = vrot.slane %v13215_v24, 4  ;;  %v157_v33 = vld [vmem:[%s15401_s7 + $0xe8] sm:$0xff]  ;;  %v4721_v24 = vrot.slane %v13243_v28, 4  ;;  %v158_v28 = vld [vmem:[%s15401_s7 + $0xf0] sm:$0xff] }
 0x450   :  { %9776 = vmatpush3.msk.msra.mxu0 %vm237_vm0, %v11505_v61  ;;  %9542 = vmatprep.mubr.msk.f32.mxu1 %vm11522_vm8, %v15518_v59  ;;  %v4547_v61 = vrot.slane %v13353_v23, 3 }
 0x451   :  { %9760 = vmatprep.mubr.msk.f32.mxu0 %vm200_vm1, %v4538_v60  ;;  %10735 = vmatprep.subr.bf16.mxu0 %v15512_v22  ;;  %v4719_v60 = vrot.slane %v13231_v48, 4  ;;  %v4556_v48 = vsel %vm759_vm3, %v4553_v6, %v4555_v38  ;;  %v15563_v6 = vld [vmem:[#allocation3_spill] sm:$0xff]  ;;  %v15569_v38 = vld [vmem:[#allocation45_spill] sm:$0xff] }
 0x452   :  { %v4548_v43 = vsel %vm759_vm3, %v4545_v62, %v4547_v61  ;;  %v4550_v15 = vsel %vm759_vm3, %v4547_v61, %v4549_v58  ;;  %v4723_v62 = vrot.slane %v13260_v55, 4  ;;  %v4725_v61 = vrot.slane %v13267_v0, 4 }
 0x453   :  { %9543 = vmatmul.mubr.msk.f32.gmra.mrb[28].mxu1 %vm1180_vm5, %v13565_v10  ;;  %9761 = vmatmul.mubr.msk.f32.gmra.mrb[38].mxu0 %vm200_vm1, %v4540_v13  ;;  %v153_v10 = vld [vmem:[%s15401_s7 + $0xc8] sm:$0xff]  ;;  %v156_v13 = vld [vmem:[%s15401_s7 + $0xe0] sm:$0xff]  ;;  %v4722_v55 = vsel %vm237_vm0, %v4719_v60, %v4721_v24  ;;  %v4727_v58 = vrot.slane %v13308_v50, 4  ;;  %v4729_v50 = vrot.slane %v13313_v8, 4 }
 0x454   :  { %9545 = vmatprep.mubr.msk.f32.mxu1 %vm11522_vm8, %v15518_v59  ;;  %9763 = vmatprep.mubr.msk.f32.mxu0 %vm200_vm1, %v4542_v45  ;;  %v13740_v25 = vpack.c.bf16 %v153_v10, %v152_v56  ;;  %v4720_v45 = vsel %vm237_vm0, %v4718_v46, %v4719_v60  ;;  %v4726_v0 = vsel %vm237_vm0, %v4723_v62, %v4725_v61  ;;  %v4731_v10 = vrot.slane %v13348_v7, 4  ;;  %v15573_v46 = vld [vmem:[#allocation48_spill] sm:$0xff]  ;;  %v15574_v60 = vld [vmem:[#allocation6_spill] sm:$0xff] }
 0x455   :  { %v4730_v8 = vsel %vm237_vm0, %v4727_v58, %v4729_v50  ;;  %v4733_v7 = vrot.slane %v13353_v23, 4  ;;  %v4737_v23 = vrot.slane %v13389_v44, 4 }
 0x457   :  { %9546 = vmatmul.mubr.msk.f32.gmra.mrb[30].mxu1 %vm1180_vm5, %v3223_v20  ;;  %9764 = vmatmul.mubr.msk.f32.gmra.mrb[40].mxu0 %vm200_vm1, %v4544_v63  ;;  %v154_v20 = vld [vmem:[%s15401_s7 + $0xd0] sm:$0xff]  ;;  %v13780_v63 = vpack.c.bf16 %v157_v33, %v156_v13  ;;  %v15575_v13 = vld [vmem:[#allocation50_spill] sm:$0xff]  ;;  %v15576_v33 = vld [vmem:[#allocation7_spill] sm:$0xff] }
 0x458   :  { %9564 = vmatprep.mubr.msk.f32.mxu1 %vm11522_vm8, %v15518_v59  ;;  %9766 = vmatprep.mubr.msk.f32.mxu0 %vm200_vm1, %v4546_v21  ;;  %v4724_v21 = vsel %vm237_vm0, %v4721_v24, %v4723_v62  ;;  %v15577_v24 = vld [vmem:[#allocation52_spill] sm:$0xff]  ;;  %v15580_v62 = vld [vmem:[#allocation58_spill] sm:$0xff] }
 0x45b   :  { %9565 = vmatmul.mubr.msk.f32.vlgmr.msra.gmra.mrb[32].mxu1 %vm1180_vm5, %v13280_v54  ;;  %9767 = vmatmul.mubr.msk.f32.gmra.mrb[42].mxu0 %vm200_vm1, %v4548_v43  ;;  %v13760_v54 = vpack.c.bf16 %v155_v30, %v154_v20  ;;  %v165_v43 = vld [vmem:[%s15401_s7 + $0x128] sm:$0xff]  ;;  %v15565_v20 = vld [vmem:[#allocation53_spill] sm:$0xff] }
 0x45c   :  { %9567 = vmatprep.mubr.msk.f32.mxu1 %vm11522_vm8, %v15518_v59  ;;  %9769 = vmatprep.mubr.msk.f32.mxu0 %vm200_vm1, %v4550_v15  ;;  %v167_v15 = vld [vmem:[%s15401_s7 + $0x138] sm:$0xff] }
 0x45d   :  { %10633 = vmatpush3.bf16.msra.mxu1 %v13740_v25  ;;  %v15567_v30 = vld [vmem:[#allocation57_spill] sm:$0xff] }
 0x45e   :  { %10634 = vmatprep.subr.bf16.mxu1 %v15512_v22 }
 0x45f   :  { %9568 = vmatmul.mubr.msk.f32.gmra.mrb[12].mxu1 %vm1180_vm5, %v13320_v47  ;;  %9770 = vmatmul.mubr.msk.f32.gmra.mrb[44].mxu0 %vm200_vm1, %v4552_v32  ;;  %v159_v47 = vld [vmem:[%s15401_s7 + $0xf8] sm:$0xff]  ;;  %v15568_v32 = vrot.slane %v13543_v14, 3 }
 0x460   :  { %9570 = vmatprep.mubr.msk.f32.mxu1 %vm11522_vm8, %v15518_v59  ;;  %9772 = vmatprep.mubr.msk.f32.mxu0 %vm200_vm1, %v4554_v17  ;;  %v13800_v56 = vpack.c.bf16 %v159_v47, %v158_v28  ;;  %v15572_v17 = vld [vmem:[#allocation5_spill] sm:$0xff]  ;;  %v15581_v28 = vld [vmem:[#allocation59_spill] sm:$0xff] }
 0x461   :  { %10636 = vmatpush3.bf16.msra.mxu1 %v13760_v54 }
 0x462   :  { %10637 = vmatprep.subr.bf16.mxu1 %v15512_v22  ;;  %15558 = vst [vmem:[#allocation60_spill] sm:$0xff] %v13800_v56 }
 0x463   :  { %9571 = vmatmul.mubr.msk.f32.gmra.mrb[14].mxu1 %vm1180_vm5, %v13360_v51  ;;  %9773 = vmatmul.mubr.msk.f32.gmra.mrb[46].mxu0 %vm200_vm1, %v4556_v48  ;;  %v4728_v51 = vsel %vm237_vm0, %v4725_v61, %v4727_v58  ;;  %v15578_v48 = vld [vmem:[#allocation54_spill] sm:$0xff]  ;;  %v15582_v61 = vrot.slane %v13543_v14, 4 }
 0x464   :  { %9573 = vmatprep.mubr.msk.f32.mxu1 %vm11522_vm8, %v15518_v59  ;;  %9777 = vmatprep.mubr.msk.f32.mxu0 %vm200_vm1, %v4720_v45  ;;  %v15579_v45 = vld [vmem:[#allocation56_spill] sm:$0xff]  ;;  %v14016_v58 = vld [vmem:[%s15398_s2] ss:$0 sm:$0xff] }
 0x465   :  { %10639 = vmatpush3.bf16.msra.mxu1 %v13780_v63 }
 0x466   :  { %10640 = vmatprep.subr.bf16.mxu1 %v15512_v22 }
 0x467   :  { %9574 = vmatmul.mubr.msk.f32.gmra.mrb[16].mxu1 %vm1180_vm5, %v13396_v53  ;;  %9778 = vmatmul.mubr.msk.f32.vlgmr.msra.gmra.mrb[36].mxu0 %vm200_vm1, %v4722_v55  ;;  %v4735_v53 = vrot.slane %v13382_v39, 4 }
 0x468   :  { %9576 = vmatprep.mubr.msk.f32.mxu1 %vm11522_vm8, %v15518_v59  ;;  %9780 = vmatprep.mubr.msk.f32.mxu0 %vm200_vm1, %v4724_v21 }
 0x469   :  { %10642 = vmatpush3.bf16.msra.mxu1 %v13800_v56  ;;  %10737 = vmatpush3.bf16.msra.mxu0 %v12014_v18  ;;  %v4732_v18 = vsel %vm237_vm0, %v4729_v50, %v4731_v10  ;;  %v4736_v39 = vsel %vm237_vm0, %v4733_v7, %v4735_v53  ;;  %v4738_v44 = vsel %vm237_vm0, %v4735_v53, %v4737_v23 }
 0x46a   :  { %10643 = vmatprep.subr.bf16.mxu1 %v15512_v22  ;;  %10738 = vmatprep.subr.bf16.mxu0 %v15512_v22 }
 0x46b   :  { %9577 = vmatmul.mubr.msk.f32.gmra.mrb[18].mxu1 %vm1180_vm5, %v13426_v2  ;;  %9781 = vmatmul.mubr.msk.f32.gmra.mrb[38].mxu0 %vm200_vm1, %v4726_v0  ;;  %v4734_v2 = vsel %vm237_vm0, %v4731_v10, %v4733_v7 }
 0x46c   :  { %9579 = vmatprep.mubr.msk.f32.mxu1 %vm11522_vm8, %v15518_v59  ;;  %9783 = vmatprep.mubr.msk.f32.mxu0 %vm200_vm1, %v4728_v51 }
 0x46d   :  { %10740 = vmatpush3.bf16.msra.mxu0 %v12039_v52  ;;  %v4739_v52 = vrot.slane %v13417_v31, 4 }
 0x46e   :  { %10741 = vmatprep.subr.bf16.mxu0 %v15512_v22 }
 0x46f   :  { %9580 = vmatmul.mubr.msk.f32.gmra.mrb[20].mxu1 %vm1180_vm5, %v13449_v16  ;;  %9784 = vmatmul.mubr.msk.f32.gmra.mrb[40].mxu0 %vm200_vm1, %v4730_v8  ;;  %v4741_v16 = vrot.slane %v13523_v4, 4  ;;  %v4740_v31 = vsel %vm237_vm0, %v4737_v23, %v4739_v52  ;;  %v162_v4 = vld [vmem:[%s15401_s7 + $0x110] sm:$0xff] }
 0x470   :  { %9582 = vmatprep.mubr.msk.f32.mxu1 %vm11522_vm8, %v15518_v59  ;;  %9786 = vmatprep.mubr.msk.f32.mxu0 %vm200_vm1, %v4732_v18 }
 0x471   :  { %10743 = vmatpush3.bf16.msra.mxu0 %v12068_v35  ;;  %v4742_v35 = vsel %vm237_vm0, %v4739_v52, %v4741_v16 }
 0x472   :  { %10744 = vmatprep.subr.bf16.mxu0 %v15512_v22 }
 0x473   :  { %9583 = vmatmul.mubr.msk.f32.gmra.mrb[22].mxu1 %vm1180_vm5, %v13481_v41  ;;  %9787 = vmatmul.mubr.msk.f32.gmra.mrb[42].mxu0 %vm200_vm1, %v4734_v2  ;;  %v161_v41 = vld [vmem:[%s15401_s7 + $0x108] sm:$0xff] }
 0x474   :  { %9585 = vmatprep.mubr.msk.f32.mxu1 %vm11522_vm8, %v15518_v59  ;;  %9789 = vmatprep.mubr.msk.f32.mxu0 %vm200_vm1, %v4736_v39 }
 0x475   :  { %10746 = vmatpush3.bf16.msra.mxu0 %v12534_v27  ;;  %v160_v27 = vld [vmem:[%s15401_s7 + $0x100] sm:$0xff] }
 0x476   :  { %10747 = vmatprep.subr.bf16.mxu0 %v15512_v22 }
 0x477   :  { %9586 = vmatmul.mubr.msk.f32.gmra.mrb[24].mxu1 %vm1180_vm5, %v13502_v42  ;;  %9790 = vmatmul.mubr.msk.f32.gmra.mrb[44].mxu0 %vm200_vm1, %v4738_v44  ;;  %v13881_v42 = vpack.c.bf16 %v161_v41, %v160_v27 }
 0x478   :  { %9588 = vmatprep.mubr.msk.f32.mxu1 %vm11522_vm8, %v15518_v59  ;;  %9792 = vmatprep.mubr.msk.f32.mxu0 %vm200_vm1, %v4740_v31 }
 0x479   :  { %15559 = vst [vmem:[#allocation61_spill] sm:$0xff] %v13881_v42 }
 0x47b   :  { %9589 = vmatmul.mubr.msk.f32.gmra.mrb[26].mxu1 %vm1180_vm5, %v13535_v3  ;;  %9793 = vmatmul.mubr.msk.f32.gmra.mrb[46].mxu0 %vm200_vm1, %v4742_v35  ;;  %v163_v3 = vld [vmem:[%s15401_s7 + $0x118] sm:$0xff] }
 0x47c   :  { %9591 = vmatprep.mubr.msk.f32.mxu1 %vm11522_vm8, %v15518_v59  ;;  %9981 = vmatprep.mubr.msk.f32.mxu0 %vm11522_vm8, %v15518_v59 }
 0x47f   :  { %9592 = vmatmul.mubr.msk.f32.gmra.mrb[28].mxu1 %vm1180_vm5, %v13570_v1  ;;  %v164_v1 = vld [vmem:[%s15401_s7 + $0x120] sm:$0xff] }
 0x480   :  { %9594 = vmatprep.mubr.msk.f32.mxu1 %vm11522_vm8, %v15518_v59 }
 0x483   :  { %9595 = vmatmul.mubr.msk.f32.gmra.mrb[30].mxu1 %vm1180_vm5, %v3397_v9  ;;  %v13894_v9 = vpack.c.bf16 %v163_v3, %v162_v4 }
 0x484   :  { %9613 = vmatprep.mubr.msk.f32.mxu1 %vm11522_vm8, %v15518_v59 }
 0x485   :  { %15560 = vst [vmem:[#allocation62_spill] sm:$0xff] %v13894_v9 }
 0x487   :  { %9614 = vmatmul.mubr.msk.f32.vlgmr.msra.gmra.mrb[32].mxu1 %vm1180_vm5, %v13283_v12  ;;  %v13908_v12 = vpack.c.bf16 %v165_v43, %v164_v1 }
 0x488   :  { %9616 = vmatprep.mubr.msk.f32.mxu1 %vm11522_vm8, %v15518_v59  ;;  %10645 = vmatpush3.bf16.msra.mxu1 %v13881_v42 }
 0x489   :  { %10646 = vmatprep.subr.bf16.mxu1 %v15512_v22  ;;  %15561 = vst [vmem:[#allocation63_spill] sm:$0xff] %v13908_v12 }
 0x48b   :  { %9617 = vmatmul.mubr.msk.f32.gmra.mrb[12].mxu1 %vm1180_vm5, %v13323_v57  ;;  %v13922_v57 = vpack.c.bf16 %v167_v15, %v166_v36 }
 0x48c   :  { %9619 = vmatprep.mubr.msk.f32.mxu1 %vm11522_vm8, %v15518_v59  ;;  %10648 = vmatpush3.bf16.msra.mxu1 %v13894_v9 }
 0x48d   :  { %10649 = vmatprep.subr.bf16.mxu1 %v15512_v22  ;;  %15562 = vst [vmem:[#allocation64_spill] sm:$0xff] %v13922_v57 }
 0x48f   :  { %9620 = vmatmul.mubr.msk.f32.gmra.mrb[14].mxu1 %vm1180_vm5, %v13363_v34  ;;  %v15564_v34 = vld [vmem:[#allocation51_spill] sm:$0xff] }
 0x490   :  { %9622 = vmatprep.mubr.msk.f32.mxu1 %vm11522_vm8, %v15518_v59  ;;  %10651 = vmatpush3.bf16.msra.mxu1 %v13908_v12 }
 0x491   :  { %10652 = vmatprep.subr.bf16.mxu1 %v15512_v22 }
 0x493   :  { %9623 = vmatmul.mubr.msk.f32.gmra.mrb[16].mxu1 %vm1180_vm5, %v13399_v29  ;;  %v15566_v29 = vld [vmem:[#allocation55_spill] sm:$0xff] }
 0x494   :  { %9625 = vmatprep.mubr.msk.f32.mxu1 %vm11522_vm8, %v15518_v59  ;;  %10654 = vmatpush3.bf16.msra.mxu1 %v13922_v57 }
 0x495   :  { %10656 = vmatprep.subr.bf16.mxu1 %v15563_v6 }
 0x497   :  { %9626 = vmatmul.mubr.msk.f32.gmra.mrb[18].mxu1 %vm1180_vm5, %v15564_v34  ;;  %v15583_v34 = vld [vmem:[#allocation8_spill] sm:$0xff] }
 0x498   :  { %9628 = vmatprep.mubr.msk.f32.mxu1 %vm11522_vm8, %v15518_v59 }
 0x49b   :  { %9629 = vmatmul.mubr.msk.f32.gmra.mrb[20].mxu1 %vm1180_vm5, %v15565_v20 }
 0x49c   :  { %9631 = vmatprep.mubr.msk.f32.mxu1 %vm11522_vm8, %v15518_v59 }
 0x49f   :  { %9632 = vmatmul.mubr.msk.f32.gmra.mrb[22].mxu1 %vm1180_vm5, %v15566_v29 }
 0x4a0   :  { %9634 = vmatprep.mubr.msk.f32.mxu1 %vm11522_vm8, %v15518_v59 }
 0x4a3   :  { %9635 = vmatmul.mubr.msk.f32.gmra.mrb[24].mxu1 %vm1180_vm5, %v15567_v30 }
 0x4a4   :  { %9637 = vmatprep.mubr.msk.f32.mxu1 %vm11522_vm8, %v15518_v59 }
 0x4a7   :  { %9638 = vmatmul.mubr.msk.f32.gmra.mrb[26].mxu1 %vm1180_vm5, %v13538_v5  ;;  %v15570_v5 = vld [vmem:[#allocation4_spill] sm:$0xff] }
 0x4a8   :  { %9640 = vmatprep.mubr.msk.f32.mxu1 %vm11522_vm8, %v15518_v59 }
 0x4ab   :  { %9641 = vmatmul.mubr.msk.f32.gmra.mrb[28].mxu1 %vm1180_vm5, %v13575_v19  ;;  %v15571_v19 = vld [vmem:[#allocation46_spill] sm:$0xff] }
 0x4ac   :  { %9643 = vmatprep.mubr.msk.f32.mxu1 %vm11522_vm8, %v15518_v59 }
 0x4af   :  { %9644 = vmatmul.mubr.msk.f32.gmra.mrb[30].mxu1 %vm1180_vm5, %v15568_v32 }
 0x4b0   :  { %9662 = vmatprep.mubr.msk.f32.mxu1 %vm11522_vm8, %v15518_v59 }
 0x4b3   :  { %9663 = vmatmul.mubr.msk.f32.vlgmr.msra.gmra.mrb[32].mxu1 %vm1180_vm5, %v15569_v38 }
 0x4b4   :  { %9665 = vmatprep.mubr.msk.f32.mxu1 %vm11522_vm8, %v15518_v59  ;;  %10658 = vmatpush3.bf16.msra.mxu1 %v15563_v6 }
 0x4b5   :  { %10660 = vmatprep.subr.bf16.mxu1 %v15570_v5 }
 0x4b7   :  { %9666 = vmatmul.mubr.msk.f32.gmra.mrb[12].mxu1 %vm1180_vm5, %v15571_v19 }
 0x4b8   :  { %9668 = vmatprep.mubr.msk.f32.mxu1 %vm11522_vm8, %v15518_v59  ;;  %10662 = vmatpush3.bf16.msra.mxu1 %v15570_v5 }
 0x4b9   :  { %10664 = vmatprep.subr.bf16.mxu1 %v15572_v17 }
 0x4bb   :  { %9669 = vmatmul.mubr.msk.f32.gmra.mrb[14].mxu1 %vm1180_vm5, %v15573_v46 }
 0x4bc   :  { %9671 = vmatprep.mubr.msk.f32.mxu1 %vm11522_vm8, %v15518_v59  ;;  %10666 = vmatpush3.bf16.msra.mxu1 %v15572_v17 }
 0x4bd   :  { %10668 = vmatprep.subr.bf16.mxu1 %v15574_v60 }
 0x4bf   :  { %9672 = vmatmul.mubr.msk.f32.gmra.mrb[16].mxu1 %vm1180_vm5, %v15575_v13 }
 0x4c0   :  { %9674 = vmatprep.mubr.msk.f32.mxu1 %vm11522_vm8, %v15518_v59  ;;  %10670 = vmatpush3.bf16.msra.mxu1 %v15574_v60 }
 0x4c1   :  { %10672 = vmatprep.subr.bf16.mxu1 %v15576_v33 }
 0x4c3   :  { %9675 = vmatmul.mubr.msk.f32.gmra.mrb[18].mxu1 %vm1180_vm5, %v15577_v24 }
 0x4c4   :  { %9677 = vmatprep.mubr.msk.f32.mxu1 %vm11522_vm8, %v15518_v59 }
 0x4c7   :  { %9678 = vmatmul.mubr.msk.f32.gmra.mrb[20].mxu1 %vm1180_vm5, %v15578_v48 }
 0x4c8   :  { %9680 = vmatprep.mubr.msk.f32.mxu1 %vm11522_vm8, %v15518_v59 }
 0x4cb   :  { %9681 = vmatmul.mubr.msk.f32.gmra.mrb[22].mxu1 %vm1180_vm5, %v15579_v45 }
 0x4cc   :  { %9683 = vmatprep.mubr.msk.f32.mxu1 %vm11522_vm8, %v15518_v59 }
 0x4cf   :  { %9684 = vmatmul.mubr.msk.f32.gmra.mrb[24].mxu1 %vm1180_vm5, %v15580_v62 }
 0x4d0   :  { %9686 = vmatprep.mubr.msk.f32.mxu1 %vm11522_vm8, %v15518_v59 }
 0x4d3   :  { %9687 = vmatmul.mubr.msk.f32.gmra.mrb[26].mxu1 %vm1180_vm5, %v15581_v28 }
 0x4d4   :  { %9689 = vmatprep.mubr.msk.f32.mxu1 %vm11522_vm8, %v15518_v59 }
 0x4d6   :  { %v14004_v47 = vpop.f32.mrb[34].mxu0 }
 0x4d7   :  { %v9468_v55 = vpop.f32.mrb[35].mxu0  ;;  %9690 = vmatmul.mubr.msk.f32.gmra.mrb[28].mxu1 %vm1180_vm5, %v13580_v49 }
 0x4d8   :  { %9692 = vmatprep.mubr.msk.f32.mxu1 %vm11522_vm8, %v15518_v59  ;;  %v15584_v55 = vld [vmem:[#allocation9_spill] sm:$0xff] }
 0x4db   :  { %9693 = vmatmul.mubr.msk.f32.gmra.mrb[30].mxu1 %vm1180_vm5, %v15582_v61 }
 0x53a   :  { %v9779_v21 = vpop.f32.mrb[36].mxu0 }
 0x53b   :  { %v10910_v0 = vadd.f32 %v14016_v58, %v9779_v21  ;;  %v4833_v50 = vpop.f32.mrb[37].mxu0 }
 0x53c   :  { %v10911_v51 = vadd.f32 %v14016_v58, %v4833_v50 }
 0x53d   :  { %vm4905_vm1 = vcmp.gt.f32.partialorder %v10910_v0, 0.0  ;;  %v4917_v49 = vmul.f32 0.2, %v10910_v0 }
 0x53e   :  { %vm4904_vm14 = vcmp.gt.f32.partialorder %v10911_v51, 0.0  ;;  %v4916_v10 = vmul.f32 0.2, %v10911_v51  ;;  %v9782_v8 = vpop.f32.mrb[38].mxu0 }
 0x53f   :  { %v14020_v7 = vsel %vm4905_vm1, %v10910_v0, %v4917_v49  ;;  %v10912_v14 = vadd.f32 %v14016_v58, %v9782_v8  ;;  %v4843_v18 = vpop.f32.mrb[39].mxu0 }
 0x540   :  { %v14023_v53 = vsel %vm4904_vm14, %v10911_v51, %v4916_v10  ;;  %v10913_v2 = vadd.f32 %v14016_v58, %v4843_v18  ;;  %v5114_v23 = vrot.slane %v14020_v7, 1  ;;  %v5298_v39 = vrot.slane %v14020_v7, 2 }
 0x541   :  { %vm4907_vm15 = vcmp.gt.f32.partialorder %v10912_v14, 0.0  ;;  %v4919_v52 = vmul.f32 0.2, %v10912_v14  ;;  %9811 = vmatprep.mubr.msk.f32.mxu1 %vm1180_vm5, %v14023_v53  ;;  %v5113_v44 = vrot.slane %v14023_v53, 1  ;;  %v5297_v16 = vrot.slane %v14023_v53, 2 }
 0x542   :  { %vm4906_vm6 = vcmp.gt.f32.partialorder %v10913_v2, 0.0  ;;  %v4918_v31 = vmul.f32 0.2, %v10913_v2  ;;  %v9785_v35 = vpop.f32.mrb[40].mxu0  ;;  %9812 = vmatmul.mubr.msk.f32.vlgmr.msra.gmra.mrb[34].mxu1 %vm1180_vm5, %v14020_v7  ;;  %v5481_v27 = vrot.slane %v14023_v53, 3  ;;  %v5482_v41 = vrot.slane %v14020_v7, 3 }
 0x543   :  { %v14036_v4 = vsel %vm4907_vm15, %v10912_v14, %v4919_v52  ;;  %v10914_v3 = vadd.f32 %v14016_v58, %v9785_v35  ;;  %v4853_v1 = vpop.f32.mrb[41].mxu0  ;;  %10674 = vmatpush3.bf16.msra.mxu1 %v15576_v33  ;;  %v14041_v43 = vsel %vm379_vm2, %v5113_v44, %v5114_v23  ;;  %v14044_v36 = vsel %vm569_vm4, %v5297_v16, %v5298_v39  ;;  %v15585_v16 = vld [vmem:[#allocation10_spill] sm:$0xff] }
 0x544   :  { %v14046_v15 = vsel %vm4906_vm6, %v10913_v2, %v4918_v31  ;;  %v10915_v6 = vadd.f32 %v14016_v58, %v4853_v1  ;;  %10676 = vmatprep.subr.bf16.mxu1 %v15583_v34  ;;  %v5118_v20 = vrot.slane %v14036_v4, 1  ;;  %v5302_v29 = vrot.slane %v14036_v4, 2 }
 0x545   :  { %v5116_v30 = vrot.slane %v14046_v15, 1  ;;  %v5300_v32 = vrot.slane %v14046_v15, 2  ;;  %v5484_v38 = vrot.slane %v14046_v15, 3  ;;  %9814 = vmatprep.mubr.msk.f32.mxu1 %vm1180_vm5, %v14046_v15  ;;  %vm4909_vm7 = vcmp.gt.f32.partialorder %v10914_v3, 0.0 }
 0x546   :  { %v4921_v19 = vmul.f32 0.2, %v10914_v3  ;;  %vm4908_vm9 = vcmp.gt.f32.partialorder %v10915_v6, 0.0  ;;  %v4920_v17 = vmul.f32 0.2, %v10915_v6  ;;  %9815 = vmatmul.mubr.msk.f32.gmra.mrb[36].mxu1 %vm1180_vm5, %v14036_v4  ;;  %v9788_v46 = vpop.f32.mrb[42].mxu0  ;;  %v14080_v61 = vsel %vm759_vm3, %v5481_v27, %v5482_v41 }
 0x547   :  { %10678 = vmatpush3.bf16.msra.mxu1 %v15583_v34  ;;  %v14062_v60 = vsel %vm379_vm2, %v5114_v23, %v5116_v30  ;;  %v14065_v13 = vsel %vm379_vm2, %v5116_v30, %v5118_v20  ;;  %v14068_v33 = vsel %vm569_vm4, %v5298_v39, %v5300_v32  ;;  %v14071_v24 = vsel %vm569_vm4, %v5300_v32, %v5302_v29  ;;  %v4863_v28 = vpop.f32.mrb[43].mxu0 }
 0x548   :  { %v14073_v48 = vsel %vm4909_vm7, %v10914_v3, %v4921_v19  ;;  %v14075_v45 = vsel %vm4908_vm9, %v10915_v6, %v4920_v17  ;;  %v10916_v62 = vadd.f32 %v14016_v58, %v9788_v46  ;;  %10680 = vmatprep.subr.bf16.mxu1 %v15584_v55  ;;  %v10917_v21 = vadd.f32 %v14016_v58, %v4863_v28 }
 0x549   :  { %9817 = vmatprep.mubr.msk.f32.mxu1 %vm1180_vm5, %v14075_v45  ;;  %v5120_v0 = vrot.slane %v14075_v45, 1  ;;  %v5122_v50 = vrot.slane %v14073_v48, 1  ;;  %v5304_v51 = vrot.slane %v14075_v45, 2  ;;  %v5306_v8 = vrot.slane %v14073_v48, 2 }
 0x54a   :  { %vm4911_vm10 = vcmp.gt.f32.partialorder %v10916_v62, 0.0  ;;  %v4923_v49 = vmul.f32 0.2, %v10916_v62  ;;  %v9791_v10 = vpop.f32.mrb[44].mxu0  ;;  %9818 = vmatmul.mubr.msk.f32.gmra.mrb[38].mxu1 %vm1180_vm5, %v14073_v48  ;;  %v14094_v14 = vsel %vm759_vm3, %v5482_v41, %v5484_v38  ;;  %vm4910_vm11 = vcmp.gt.f32.partialorder %v10917_v21, 0.0 }
 0x54b   :  { %v4922_v18 = vmul.f32 0.2, %v10917_v21  ;;  %v10918_v2 = vadd.f32 %v14016_v58, %v9791_v10  ;;  %v4873_v23 = vpop.f32.mrb[45].mxu0  ;;  %10682 = vmatpush3.bf16.msra.mxu1 %v15584_v55  ;;  %v14099_v39 = vsel %vm379_vm2, %v5118_v20, %v5120_v0  ;;  %v14106_v31 = vsel %vm379_vm2, %v5120_v0, %v5122_v50  ;;  %v15586_v0 = vld [vmem:[#allocation11_spill] sm:$0xff] }
 0x54c   :  { %v14101_v52 = vsel %vm4911_vm10, %v10916_v62, %v4923_v49  ;;  %v10919_v44 = vadd.f32 %v14016_v58, %v4873_v23  ;;  %10684 = vmatprep.subr.bf16.mxu1 %v15585_v16  ;;  %v14109_v35 = vsel %vm569_vm4, %v5302_v29, %v5304_v51  ;;  %v14118_v20 = vsel %vm569_vm4, %v5304_v51, %v5306_v8 }
 0x54d   :  { %v14111_v27 = vsel %vm4910_vm11, %v10917_v21, %v4922_v18  ;;  %vm4913_vm12 = vcmp.gt.f32.partialorder %v10918_v2, 0.0  ;;  %v4925_v41 = vmul.f32 0.2, %v10918_v2  ;;  %v5126_v3 = vrot.slane %v14101_v52, 1 }
 0x54e   :  { %vm4912_vm13 = vcmp.gt.f32.partialorder %v10919_v44, 0.0  ;;  %v4924_v1 = vmul.f32 0.2, %v10919_v44  ;;  %9820 = vmatprep.mubr.msk.f32.mxu1 %vm1180_vm5, %v14111_v27  ;;  %v9794_v6 = vpop.f32.mrb[46].mxu0  ;;  %v5124_v34 = vrot.slane %v14111_v27, 1  ;;  %v5308_v19 = vrot.slane %v14111_v27, 2 }
 0x54f   :  { %v14120_v30 = vsel %vm4913_vm12, %v10918_v2, %v4925_v41  ;;  %v10920_v29 = vadd.f32 %v14016_v58, %v9794_v6  ;;  %9821 = vmatmul.mubr.msk.f32.gmra.mrb[40].mxu1 %vm1180_vm5, %v14101_v52  ;;  %v4883_v32 = vpop.f32.mrb[47].mxu0  ;;  %v5310_v17 = vrot.slane %v14101_v52, 2  ;;  %v5665_v57 = vrot.slane %v14023_v53, 4 }
 0x550   :  { %v14127_v46 = vsel %vm4912_vm13, %v10919_v44, %v4924_v1  ;;  %v10921_v62 = vadd.f32 %v14016_v58, %v4883_v32  ;;  %10686 = vmatpush3.bf16.msra.mxu1 %v15585_v16  ;;  %v14132_v28 = vsel %vm379_vm2, %v5122_v50, %v5124_v34  ;;  %v14135_v55 = vsel %vm379_vm2, %v5124_v34, %v5126_v3 }
 0x551   :  { %vm4915_vm1 = vcmp.gt.f32.partialorder %v10920_v29, 0.0  ;;  %v4927_v21 = vmul.f32 0.2, %v10920_v29  ;;  %9823 = vmatprep.mubr.msk.f32.mxu1 %vm1180_vm5, %v14127_v46  ;;  %10688 = vmatprep.subr.bf16.mxu1 %v15586_v0  ;;  %v5128_v51 = vrot.slane %v14127_v46, 1  ;;  %v5130_v49 = vrot.slane %v14120_v30, 1 }
 0x552   :  { %vm4914_vm14 = vcmp.gt.f32.partialorder %v10921_v62, 0.0  ;;  %v4926_v58 = vmul.f32 0.2, %v10921_v62  ;;  %v14143_v10 = vsel %vm569_vm4, %v5306_v8, %v5308_v19  ;;  %v14146_v50 = vsel %vm569_vm4, %v5308_v19, %v5310_v17 }
 0x553   :  { %v14148_v18 = vsel %vm4915_vm1, %v10920_v29, %v4927_v21  ;;  %9824 = vmatmul.mubr.msk.f32.gmra.mrb[42].mxu1 %vm1180_vm5, %v14120_v30  ;;  %v14153_v2 = vsel %vm379_vm2, %v5126_v3, %v5128_v51  ;;  %v14156_v23 = vsel %vm379_vm2, %v5128_v51, %v5130_v49  ;;  %v5312_v44 = vrot.slane %v14127_v46, 2 }
 0x554   :  { %v14159_v16 = vsel %vm4914_vm14, %v10921_v62, %v4926_v58  ;;  %v15480_v8 = vrot.slane %v14148_v18, 1  ;;  %v5314_v41 = vrot.slane %v14120_v30, 2  ;;  %v15479_v1 = vrot.slane %v14148_v18, 2 }
 0x555   :  { %9826 = vmatprep.mubr.msk.f32.mxu1 %vm1180_vm5, %v14159_v16  ;;  %v5132_v6 = vrot.slane %v14159_v16, 1  ;;  %v14168_v3 = vsel %vm569_vm4, %v5310_v17, %v5312_v44  ;;  %v5316_v34 = vrot.slane %v14159_v16, 2  ;;  %v5486_v29 = vrot.slane %v14036_v4, 3 }
 0x556   :  { %v14173_v32 = vsel %vm569_vm4, %v5312_v44, %v5314_v41  ;;  %v5488_v19 = vrot.slane %v14075_v45, 3  ;;  %v5490_v62 = vrot.slane %v14073_v48, 3  ;;  %v5492_v21 = vrot.slane %v14111_v27, 3 }
 0x557   :  { %9827 = vmatmul.mubr.msk.f32.gmra.mrb[44].mxu1 %vm1180_vm5, %v14148_v18  ;;  %v5133_v51 = vsel %vm379_vm2, %v5130_v49, %v5132_v6  ;;  %v5135_v17 = vsel %vm379_vm2, %v5132_v6, %v15480_v8  ;;  %v14185_v58 = vsel %vm569_vm4, %v5314_v41, %v5316_v34  ;;  %v14190_v44 = vsel %vm569_vm4, %v5316_v34, %v15479_v1 }
 0x558   :  { %9845 = vmatprep.mubr.msk.f32.mxu1 %vm1180_vm5, %v14041_v43  ;;  %v14197_v5 = vsel %vm759_vm3, %v5484_v38, %v5486_v29  ;;  %v14200_v49 = vsel %vm759_vm3, %v5486_v29, %v5488_v19  ;;  %v14203_v6 = vsel %vm759_vm3, %v5488_v19, %v5490_v62  ;;  %v14206_v41 = vsel %vm759_vm3, %v5490_v62, %v5492_v21 }
 0x559   :  { %v5494_v34 = vrot.slane %v14101_v52, 3  ;;  %v5496_v1 = vrot.slane %v14127_v46, 3  ;;  %v5498_v43 = vrot.slane %v14120_v30, 3  ;;  %v5500_v8 = vrot.slane %v14159_v16, 3 }
 0x55a   :  { %v5666_v29 = vrot.slane %v14020_v7, 4  ;;  %v5670_v19 = vrot.slane %v14036_v4, 4  ;;  %v15587_v7 = vrot.slane %v14148_v18, 3 }
 0x55b   :  { %9846 = vmatmul.mubr.msk.f32.vlgmr.msra.gmra.mrb[34].mxu1 %vm1180_vm5, %v14062_v60  ;;  %v14219_v62 = vsel %vm759_vm3, %v5492_v21, %v5494_v34  ;;  %v14222_v12 = vsel %vm759_vm3, %v5494_v34, %v5496_v1  ;;  %v14225_v9 = vsel %vm759_vm3, %v5496_v1, %v5498_v43  ;;  %v14228_v38 = vsel %vm759_vm3, %v5498_v43, %v5500_v8  ;;  %v15589_v34 = vld [vmem:[#allocation12_spill] sm:$0xff] }
 0x55c   :  { %9848 = vmatprep.mubr.msk.f32.mxu1 %vm1180_vm5, %v14065_v13  ;;  %10690 = vmatpush3.bf16.msra.mxu1 %v15586_v0  ;;  %v14236_v53 = vsel %vm759_vm3, %v5500_v8, %v15587_v7  ;;  %v14239_v4 = vsel %vm237_vm0, %v5665_v57, %v5666_v29  ;;  %v15588_v60 = vrot.slane %v14046_v15, 4  ;;  %v5672_v21 = vrot.slane %v14075_v45, 4 }
 0x55d   :  { %10692 = vmatprep.subr.bf16.mxu1 %v15589_v34  ;;  %v5674_v8 = vrot.slane %v14073_v48, 4  ;;  %v5676_v43 = vrot.slane %v14111_v27, 4  ;;  %v5678_v57 = vrot.slane %v14101_v52, 4  ;;  %v5682_v45 = vrot.slane %v14120_v30, 4 }
 0x55e   :  { %v14244_v1 = vsel %vm237_vm0, %v5666_v29, %v15588_v60  ;;  %v15590_v13 = vmov %v15588_v60  ;;  %v14257_v7 = vsel %vm237_vm0, %v5670_v19, %v5672_v21  ;;  %v5680_v29 = vrot.slane %v14127_v46, 4 }
 0x55f   :  { %v14251_v0 = vsel %vm237_vm0, %v15590_v13, %v5670_v19  ;;  %v5684_v60 = vrot.slane %v14159_v16, 4  ;;  %9849 = vmatmul.mubr.msk.f32.gmra.mrb[36].mxu1 %vm1180_vm5, %v14099_v39  ;;  %v14265_v15 = vsel %vm237_vm0, %v5672_v21, %v5674_v8  ;;  %v14268_v48 = vsel %vm237_vm0, %v5674_v8, %v5676_v43  ;;  %v15591_v16 = vld [vmem:[#allocation13_spill] sm:$0xff]  ;;  %v15593_v21 = vld [vmem:[#allocation15_spill] sm:$0xff] }
 0x560   :  { %v14271_v52 = vsel %vm237_vm0, %v5676_v43, %v5678_v57  ;;  %v5686_v27 = vrot.slane %v14148_v18, 4  ;;  %9851 = vmatprep.mubr.msk.f32.mxu1 %vm1180_vm5, %v14106_v31  ;;  %10694 = vmatpush3.bf16.msra.mxu1 %v15589_v34  ;;  %v14278_v30 = vsel %vm237_vm0, %v5678_v57, %v5680_v29  ;;  %v14281_v39 = vsel %vm237_vm0, %v5680_v29, %v5682_v45  ;;  %v15592_v31 = vld [vmem:[#allocation14_spill] sm:$0xff]  ;;  %v15600_v34 = vld [vmem:[#allocation20_spill] sm:$0xff] }
 0x561   :  { %v14284_v46 = vsel %vm237_vm0, %v5682_v45, %v5684_v60  ;;  %10696 = vmatprep.subr.bf16.mxu1 %v15591_v16  ;;  %v171_v29 = vld [vmem:[%s15404_s9 + $0x10] sm:$0xff] }
 0x562   :  { %v14290_v19 = vsel %vm237_vm0, %v5684_v60, %v5686_v27  ;;  %v15601_v60 = vld [vmem:[#allocation21_spill] sm:$0xff] }
 0x563   :  { %9852 = vmatmul.mubr.msk.f32.gmra.mrb[38].mxu1 %vm1180_vm5, %v14132_v28  ;;  %v15594_v28 = vrot.slane %v14148_v18, 1 }
 0x564   :  { %9854 = vmatprep.mubr.msk.f32.mxu1 %vm1180_vm5, %v14135_v55  ;;  %10698 = vmatpush3.bf16.msra.mxu1 %v15591_v16  ;;  %v15595_v55 = vld [vmem:[#allocation16_spill] sm:$0xff] }
 0x565   :  { %10700 = vmatprep.subr.bf16.mxu1 %v15592_v31 }
 0x567   :  { %9855 = vmatmul.mubr.msk.f32.gmra.mrb[40].mxu1 %vm1180_vm5, %v14153_v2  ;;  %v15596_v2 = vld [vmem:[#allocation17_spill] sm:$0xff] }
 0x568   :  { %9857 = vmatprep.mubr.msk.f32.mxu1 %vm1180_vm5, %v14156_v23  ;;  %10702 = vmatpush3.bf16.msra.mxu1 %v15592_v31 }
 0x569   :  { %10704 = vmatprep.subr.bf16.mxu1 %v15593_v21 }
 0x56b   :  { %9858 = vmatmul.mubr.msk.f32.gmra.mrb[42].mxu1 %vm1180_vm5, %v5133_v51  ;;  %v169_v51 = vld [vmem:[%s15404_s9] sm:$0xff] }
 0x56c   :  { %9860 = vmatprep.mubr.msk.f32.mxu1 %vm1180_vm5, %v5135_v17 }
 0x56f   :  { %9861 = vmatmul.mubr.msk.f32.gmra.mrb[44].mxu1 %vm1180_vm5, %v15594_v28 }
 0x570   :  { %9879 = vmatprep.mubr.msk.f32.mxu1 %vm1180_vm5, %v14044_v36  ;;  %v15597_v36 = vld [vmem:[#allocation18_spill] sm:$0xff] }
 0x573   :  { %9880 = vmatmul.mubr.msk.f32.vlgmr.msra.gmra.mrb[34].mxu1 %vm1180_vm5, %v14068_v33  ;;  %v15598_v33 = vld [vmem:[#allocation19_spill] sm:$0xff] }
 0x574   :  { %9882 = vmatprep.mubr.msk.f32.mxu1 %vm1180_vm5, %v14071_v24  ;;  %10706 = vmatpush3.bf16.msra.mxu1 %v15593_v21  ;;  %v14338_v24 = vld [vmem:[%s15403_s8] ss:$0 sm:$0xff] }
 0x575   :  { %10708 = vmatprep.subr.bf16.mxu1 %v15595_v55 }
 0x577   :  { %9883 = vmatmul.mubr.msk.f32.gmra.mrb[36].mxu1 %vm1180_vm5, %v14109_v35  ;;  %v3193_v35 = vadd.f32 %v14338_v24, %v14004_v47 }
 0x578   :  { %9885 = vmatprep.mubr.msk.f32.mxu1 %vm1180_vm5, %v14118_v20  ;;  %10710 = vmatpush3.bf16.msra.mxu1 %v15595_v55 }
 0x579   :  { %10712 = vmatprep.subr.bf16.mxu1 %v15596_v2 }
 0x57b   :  { %9886 = vmatmul.mubr.msk.f32.gmra.mrb[38].mxu1 %vm1180_vm5, %v14143_v10 }
 0x57c   :  { %9888 = vmatprep.mubr.msk.f32.mxu1 %vm1180_vm5, %v14146_v50  ;;  %10714 = vmatpush3.bf16.msra.mxu1 %v15596_v2  ;;  %v15599_v50 = vrot.slane %v14148_v18, 2 }
 0x57d   :  { %10716 = vmatprep.subr.bf16.mxu1 %v15597_v36 }
 0x57f   :  { %9889 = vmatmul.mubr.msk.f32.gmra.mrb[40].mxu1 %vm1180_vm5, %v14168_v3 }
 0x580   :  { %9891 = vmatprep.mubr.msk.f32.mxu1 %vm1180_vm5, %v14173_v32  ;;  %10718 = vmatpush3.bf16.msra.mxu1 %v15597_v36  ;;  %v172_v36 = vld [vmem:[%s15404_s9 + $0x18] sm:$0xff] }
 0x581   :  { %10720 = vmatprep.subr.bf16.mxu1 %v15598_v33 }
 0x583   :  { %9892 = vmatmul.mubr.msk.f32.gmra.mrb[42].mxu1 %vm1180_vm5, %v14185_v58 }
 0x584   :  { %9894 = vmatprep.mubr.msk.f32.mxu1 %vm1180_vm5, %v14190_v44 }
 0x586   :  { %v3835_v20 = vpop.f32.mrb[32].mxu1 }
 0x587   :  { %v10899_v10 = vadd.f32 %v3835_v20, %v3193_v35  ;;  %9895 = vmatmul.mubr.msk.f32.gmra.mrb[44].mxu1 %vm1180_vm5, %v15599_v50  ;;  %v9664_v23 = vpop.f32.mrb[33].mxu1  ;;  %v15602_v35 = vld [vmem:[#allocation22_spill] sm:$0xff] }
 0x588   :  { %9913 = vmatprep.mubr.msk.f32.mxu1 %vm1180_vm5, %v14080_v61  ;;  %v170_v61 = vld [vmem:[%s15404_s9 + $0x8] sm:$0xff] }
 0x589   :  { %vm3900_vm15 = vcmp.gt.f32.partialorder %v10899_v10, 0.0  ;;  %v3911_v3 = vmul.f32 0.2, %v10899_v10 }
 0x58a   :  { %v3840_v32 = vpop.f32.mrb[12].mxu1 }
 0x58b   :  { %v3922_v17 = vsel %vm3900_vm15, %v10899_v10, %v3911_v3  ;;  %v10900_v47 = vadd.f32 %v14338_v24, %v3840_v32  ;;  %9914 = vmatmul.mubr.msk.f32.vlgmr.msra.gmra.mrb[34].mxu1 %vm1180_vm5, %v14094_v14  ;;  %v9667_v58 = vpop.f32.mrb[13].mxu1  ;;  %v173_v32 = vld [vmem:[%s15404_s9 + $0x20] sm:$0xff] }
 0x58c   :  { %9916 = vmatprep.mubr.msk.f32.mxu1 %vm1180_vm5, %v14197_v5  ;;  %10722 = vmatpush3.bf16.msra.mxu1 %v15598_v33  ;;  %v3933_v13 = vmul.f32 %v3922_v17, %v169_v51 }
 0x58d   :  { %vm3901_vm6 = vcmp.gt.f32.partialorder %v10900_v47, 0.0  ;;  %v3912_v44 = vmul.f32 0.2, %v10900_v47  ;;  %10724 = vmatprep.subr.bf16.mxu1 %v15600_v34 }
 0x58e   :  { %v3845_v8 = vpop.f32.mrb[14].mxu1  ;;  %v3944_v16 = vsel %vm1180_vm5, %v3933_v13, 0.0 }
 0x58f   :  { %v3923_v43 = vsel %vm3901_vm6, %v10900_v47, %v3912_v44  ;;  %v10901_v57 = vadd.f32 %v14338_v24, %v3845_v8  ;;  %9917 = vmatmul.mubr.msk.f32.gmra.mrb[36].mxu1 %vm1180_vm5, %v14200_v49  ;;  %v9670_v14 = vpop.f32.mrb[15].mxu1  ;;  %vm3963_vm6 = vcmask 519168  }
 0x590   :  { %v3934_v5 = vmul.f32 %v3923_v43, %v170_v61  ;;  %9919 = vmatprep.mubr.msk.f32.mxu1 %vm1180_vm5, %v14203_v6  ;;  %10726 = vmatpush3.bf16.msra.mxu1 %v15600_v34  ;;  %v174_v34 = vld [vmem:[%s15404_s9 + $0x28] sm:$0xff] }
 0x591   :  { %vm3902_vm7 = vcmp.gt.f32.partialorder %v10901_v57, 0.0  ;;  %v3913_v45 = vmul.f32 0.2, %v10901_v57  ;;  %10728 = vmatprep.subr.bf16.mxu1 %v15601_v60 }
 0x592   :  { %v3945_v31 = vsel %vm1180_vm5, %v3934_v5, 0.0  ;;  %v3850_v49 = vpop.f32.mrb[16].mxu1 }
 0x593   :  { %v3946_v21 = vadd.f32 %v3945_v31, %v3944_v16  ;;  %v3924_v28 = vsel %vm3902_vm7, %v10901_v57, %v3913_v45  ;;  %v10902_v55 = vadd.f32 %v14338_v24, %v3850_v49  ;;  %9920 = vmatmul.mubr.msk.f32.gmra.mrb[38].mxu1 %vm1180_vm5, %v14206_v41  ;;  %v9673_v6 = vpop.f32.mrb[17].mxu1 }
 0x594   :  { %v3935_v2 = vmul.f32 %v3924_v28, %v171_v29  ;;  %9922 = vmatprep.mubr.msk.f32.mxu1 %vm1180_vm5, %v14219_v62  ;;  %10730 = vmatpush3.bf16.msra.mxu1 %v15601_v60 }
 0x595   :  { %vm3903_vm9 = vcmp.gt.f32.partialorder %v10902_v55, 0.0  ;;  %v3914_v33 = vmul.f32 0.2, %v10902_v55  ;;  %10732 = vmatprep.subr.bf16.mxu1 %v15602_v35 }
 0x596   :  { %v3947_v20 = vsel %vm1180_vm5, %v3935_v2, 0.0  ;;  %v3855_v10 = vpop.f32.mrb[18].mxu1  ;;  %v176_v2 = vld [vmem:[%s15404_s9 + $0x38] sm:$0xff] }
 0x597   :  { %v3948_v50 = vadd.f32 %v3947_v20, %v3946_v21  ;;  %v3925_v41 = vsel %vm3903_vm9, %v10902_v55, %v3914_v33  ;;  %v10903_v23 = vadd.f32 %v14338_v24, %v3855_v10  ;;  %9923 = vmatmul.mubr.msk.f32.gmra.mrb[40].mxu1 %vm1180_vm5, %v14222_v12  ;;  %v9676_v62 = vpop.f32.mrb[19].mxu1 }
 0x598   :  { %v3936_v3 = vmul.f32 %v3925_v41, %v172_v36  ;;  %9925 = vmatprep.mubr.msk.f32.mxu1 %vm1180_vm5, %v14225_v9  ;;  %10734 = vmatpush3.bf16.msra.mxu1 %v15602_v35  ;;  %v15605_v41 = vld [vmem:[#allocation35_spill] sm:$0xff] }
 0x599   :  { %vm3904_vm10 = vcmp.gt.f32.partialorder %v10903_v23, 0.0  ;;  %v3915_v51 = vmul.f32 0.2, %v10903_v23  ;;  %10795 = vmatprep.subr.bf16.mxu1 %v15512_v22 }
 0x59a   :  { %v3949_v17 = vsel %vm1180_vm5, %v3936_v3, 0.0  ;;  %v3860_v47 = vpop.f32.mrb[20].mxu1 }
 0x59b   :  { %v3950_v58 = vadd.f32 %v3949_v17, %v3948_v50  ;;  %v3926_v12 = vsel %vm3904_vm10, %v10903_v23, %v3915_v51  ;;  %v10904_v61 = vadd.f32 %v14338_v24, %v3860_v47  ;;  %9926 = vmatmul.mubr.msk.f32.gmra.mrb[42].mxu1 %vm1180_vm5, %v14228_v38  ;;  %v9679_v9 = vpop.f32.mrb[21].mxu1  ;;  %v15603_v38 = vrot.slane %v14148_v18, 3  ;;  %v177_v23 = vld [vmem:[%s15404_s9 + $0x40] sm:$0xff] }
 0x59c   :  { %v3937_v44 = vmul.f32 %v3926_v12, %v173_v32  ;;  %9928 = vmatprep.mubr.msk.f32.mxu1 %vm1180_vm5, %v14236_v53  ;;  %v175_v53 = vld [vmem:[%s15404_s9 + $0x30] sm:$0xff]  ;;  %v178_v12 = vld [vmem:[%s15404_s9 + $0x48] sm:$0xff] }
 0x59d   :  { %vm3905_vm11 = vcmp.gt.f32.partialorder %v10904_v61, 0.0  ;;  %v3916_v13 = vmul.f32 0.2, %v10904_v61 }
 0x59e   :  { %v3951_v8 = vsel %vm1180_vm5, %v3937_v44, 0.0  ;;  %v3865_v43 = vpop.f32.mrb[22].mxu1 }
 0x59f   :  { %v3952_v57 = vadd.f32 %v3951_v8, %v3950_v58  ;;  %v3927_v14 = vsel %vm3905_vm11, %v10904_v61, %v3916_v13  ;;  %v10905_v5 = vadd.f32 %v14338_v24, %v3865_v43  ;;  %9929 = vmatmul.mubr.msk.f32.gmra.mrb[44].mxu1 %vm1180_vm5, %v15603_v38  ;;  %v9682_v29 = vpop.f32.mrb[23].mxu1  ;;  %v15606_v58 = vld [vmem:[#allocation37_spill] sm:$0xff]  ;;  %v15607_v43 = vld [vmem:[#allocation38_spill] sm:$0xff] }
 0x5a0   :  { %v3938_v45 = vmul.f32 %v3927_v14, %v174_v34  ;;  %9947 = vmatprep.mubr.msk.f32.mxu1 %vm1180_vm5, %v14239_v4  ;;  %v15604_v4 = vld [vmem:[#allocation33_spill] sm:$0xff] }
 0x5a1   :  { %vm3906_vm12 = vcmp.gt.f32.partialorder %v10905_v5, 0.0  ;;  %v3917_v60 = vmul.f32 0.2, %v10905_v5 }
 0x5a2   :  { %v3953_v16 = vsel %vm1180_vm5, %v3938_v45, 0.0  ;;  %v3870_v31 = vpop.f32.mrb[24].mxu1 }
 0x5a3   :  { %v3954_v49 = vadd.f32 %v3953_v16, %v3952_v57  ;;  %v3928_v21 = vsel %vm3906_vm12, %v10905_v5, %v3917_v60  ;;  %v10906_v28 = vadd.f32 %v14338_v24, %v3870_v31  ;;  %9948 = vmatmul.mubr.msk.f32.vlgmr.msra.gmra.mrb[34].mxu1 %vm1180_vm5, %v14244_v1  ;;  %v9685_v55 = vpop.f32.mrb[25].mxu1  ;;  %v179_v57 = vld [vmem:[%s15404_s9 + $0x50] sm:$0xf] }
 0x5a4   :  { %v3939_v6 = vmul.f32 %v3928_v21, %v175_v53  ;;  %9950 = vmatprep.mubr.msk.f32.mxu1 %vm1180_vm5, %v14251_v0  ;;  %10797 = vmatpush3.bf16.msra.mxu1 %v15604_v4 }
 0x5a5   :  { %vm3907_vm13 = vcmp.gt.f32.partialorder %v10906_v28, 0.0  ;;  %v3918_v36 = vmul.f32 0.2, %v10906_v28  ;;  %10798 = vmatprep.subr.bf16.mxu1 %v15512_v22 }
 0x5a6   :  { %v3955_v33 = vsel %vm1180_vm5, %v3939_v6, 0.0  ;;  %v3875_v35 = vpop.f32.mrb[26].mxu1 }
 0x5a7   :  { %v3956_v20 = vadd.f32 %v3955_v33, %v3954_v49  ;;  %v3929_v1 = vsel %vm3907_vm13, %v10906_v28, %v3918_v36  ;;  %v10907_v10 = vadd.f32 %v14338_v24, %v3875_v35  ;;  %9951 = vmatmul.mubr.msk.f32.gmra.mrb[36].mxu1 %vm1180_vm5, %v14257_v7  ;;  %v9688_v0 = vpop.f32.mrb[27].mxu1 }
 0x5a8   :  { %v3940_v50 = vmul.f32 %v3929_v1, %v176_v2  ;;  %9953 = vmatprep.mubr.msk.f32.mxu1 %vm1180_vm5, %v14265_v15  ;;  %10800 = vmatpush3.bf16.msra.mxu1 %v15605_v41 }
 0x5a9   :  { %vm3908_vm1 = vcmp.gt.f32.partialorder %v10907_v10, 0.0  ;;  %v3919_v62 = vmul.f32 0.2, %v10907_v10  ;;  %10801 = vmatprep.subr.bf16.mxu1 %v15512_v22 }
 0x5aa   :  { %v3957_v3 = vsel %vm1180_vm5, %v3940_v50, 0.0  ;;  %v3880_v32 = vpop.f32.mrb[28].mxu1 }
 0x5ab   :  { %v3958_v51 = vadd.f32 %v3957_v3, %v3956_v20  ;;  %v3930_v7 = vsel %vm3908_vm1, %v10907_v10, %v3919_v62  ;;  %v10908_v17 = vadd.f32 %v14338_v24, %v3880_v32  ;;  %9954 = vmatmul.mubr.msk.f32.gmra.mrb[38].mxu1 %vm1180_vm5, %v14268_v48  ;;  %v9691_v15 = vpop.f32.mrb[29].mxu1  ;;  %v15609_v62 = vld [vmem:[#allocation23_spill] sm:$0xff] }
 0x5ac   :  { %v3941_v47 = vmul.f32 %v3930_v7, %v177_v23  ;;  %9956 = vmatprep.mubr.msk.f32.mxu1 %vm1180_vm5, %v14271_v52  ;;  %10803 = vmatpush3.bf16.msra.mxu1 %v15606_v58 }
 0x5ad   :  { %vm3909_vm14 = vcmp.gt.f32.partialorder %v10908_v17, 0.0  ;;  %v3920_v61 = vmul.f32 0.2, %v10908_v17  ;;  %10804 = vmatprep.subr.bf16.mxu1 %v15512_v22 }
 0x5ae   :  { %v3959_v9 = vsel %vm1180_vm5, %v3941_v47, 0.0  ;;  %v3885_v44 = vpop.f32.mrb[30].mxu1 }
 0x5af   :  { %v3960_v34 = vadd.f32 %v3959_v9, %v3958_v51  ;;  %v3931_v48 = vsel %vm3909_vm14, %v10908_v17, %v3920_v61  ;;  %v10909_v13 = vadd.f32 %v14338_v24, %v3885_v44  ;;  %9957 = vmatmul.mubr.msk.f32.gmra.mrb[40].mxu1 %vm1180_vm5, %v14278_v30  ;;  %v9694_v52 = vpop.f32.mrb[31].mxu1 }
 0x5b0   :  { %v3942_v8 = vmul.f32 %v3931_v48, %v178_v12  ;;  %9959 = vmatprep.mubr.msk.f32.mxu1 %vm1180_vm5, %v14281_v39  ;;  %10806 = vmatpush3.bf16.msra.mxu1 %v15607_v43  ;;  %v15610_v52 = vld [vmem:[#allocation24_spill] sm:$0xff] }
 0x5b1   :  { %vm3910_vm15 = vcmp.gt.f32.partialorder %v10909_v13, 0.0  ;;  %v3921_v14 = vmul.f32 0.2, %v10909_v13  ;;  %10807 = vmatprep.subr.bf16.mxu1 %v15512_v22 }
 0x5b2   :  { %v3961_v24 = vsel %vm1180_vm5, %v3942_v8, 0.0 }
 0x5b3   :  { %v3962_v5 = vadd.f32 %v3961_v24, %v3960_v34  ;;  %v3932_v38 = vsel %vm3910_vm15, %v10909_v13, %v3921_v14  ;;  %9960 = vmatmul.mubr.msk.f32.gmra.mrb[42].mxu1 %vm1180_vm5, %v14284_v46  ;;  %v14476_v46 = vld [vmem:[%s15400_s4] ss:$0 sm:$0xff] }
 0x5b4   :  { %v3943_v30 = vmul.f32 %v3932_v38, %v179_v57  ;;  %9962 = vmatprep.mubr.msk.f32.mxu1 %vm1180_vm5, %v14290_v19 }
 0x5b6   :  { %v3964_v39 = vsel %vm3963_vm6, %v3943_v30, 0.0 }
 0x5b7   :  { %v14466_v29 = vadd.f32 %v3964_v39, %v3962_v5  ;;  %9963 = vmatmul.mubr.msk.f32.gmra.mrb[44].mxu1 %vm1180_vm5, %v5686_v27 }
 0x5b8   :  { %10226 = vmatprep.mubr.msk.f32.mxu1 %vm11522_vm8, %v15518_v59 }
 0x5b9   :  { %15608 = vst [vmem:[#allocation3_spill] sm:$0xff] %v14466_v29 }
 0x676   :  { %v9949_v45 = vpop.f32.mrb[34].mxu1 }
 0x677   :  { %v10922_v53 = vadd.f32 %v14476_v46, %v9949_v45  ;;  %v5778_v19 = vpop.f32.mrb[35].mxu1 }
 0x678   :  { %v10923_v60 = vadd.f32 %v14476_v46, %v5778_v19 }
 0x679   :  { %vm5850_vm7 = vcmp.gt.f32.partialorder %v10922_v53, 0.0  ;;  %v5862_v16 = vmul.f32 0.2, %v10922_v53 }
 0x67a   :  { %vm5849_vm9 = vcmp.gt.f32.partialorder %v10923_v60, 0.0  ;;  %v5861_v18 = vmul.f32 0.2, %v10923_v60  ;;  %v9952_v31 = vpop.f32.mrb[36].mxu1 }
 0x67b   :  { %v14480_v27 = vsel %vm5850_vm7, %v10922_v53, %v5862_v16  ;;  %v10924_v49 = vadd.f32 %v14476_v46, %v9952_v31  ;;  %v5788_v21 = vpop.f32.mrb[37].mxu1 }
 0x67c   :  { %v6051_v28 = vrot.slane %v14480_v27, 1  ;;  %v6227_v55 = vrot.slane %v14480_v27, 2  ;;  %v6403_v6 = vrot.slane %v14480_v27, 3  ;;  %v6579_v4 = vrot.slane %v14480_v27, 4 }
 0x67d   :  { %v14487_v2 = vsel %vm5849_vm9, %v10923_v60, %v5861_v18  ;;  %vm5852_vm10 = vcmp.gt.f32.partialorder %v10924_v49, 0.0  ;;  %v5864_v36 = vmul.f32 0.2, %v10924_v49  ;;  %v10925_v33 = vadd.f32 %v14476_v46, %v5788_v21 }
 0x67e   :  { %v6050_v35 = vrot.slane %v14487_v2, 1  ;;  %v6226_v20 = vrot.slane %v14487_v2, 2  ;;  %v6402_v1 = vrot.slane %v14487_v2, 3  ;;  %v6578_v10 = vrot.slane %v14487_v2, 4  ;;  %9982 = vmatmul.mubr.msk.f32.vlgmr.msra.gmra.mrb[48].mxu0 %vm1180_vm5, %v14487_v2  ;;  %v9955_v0 = vpop.f32.mrb[38].mxu1 }
 0x67f   :  { %v14496_v50 = vsel %vm5852_vm10, %v10924_v49, %v5864_v36  ;;  %vm5851_vm11 = vcmp.gt.f32.partialorder %v10925_v33, 0.0  ;;  %v5863_v41 = vmul.f32 0.2, %v10925_v33  ;;  %v10926_v23 = vadd.f32 %v14476_v46, %v9955_v0  ;;  %10749 = vmatpush3.bf16.msra.mxu0 %v15609_v62  ;;  %v5798_v3 = vpop.f32.mrb[39].mxu1  ;;  %9984 = vmatprep.mubr.msk.f32.mxu0 %vm11522_vm8, %v15518_v59  ;;  %v15611_v49 = vld [vmem:[#allocation25_spill] sm:$0xff] }
 0x680   :  { %v10927_v32 = vadd.f32 %v14476_v46, %v5798_v3  ;;  %10750 = vmatprep.subr.bf16.mxu0 %v15512_v22  ;;  %v14505_v51 = vsel %vm379_vm2, %v6050_v35, %v6051_v28  ;;  %v6055_v7 = vrot.slane %v14496_v50, 1  ;;  %v14509_v17 = vsel %vm569_vm4, %v6226_v20, %v6227_v55 }
 0x681   :  { %v14511_v15 = vsel %vm5851_vm11, %v10925_v33, %v5863_v41  ;;  %vm5854_vm12 = vcmp.gt.f32.partialorder %v10926_v23, 0.0  ;;  %v5866_v47 = vmul.f32 0.2, %v10926_v23  ;;  %v6231_v58 = vrot.slane %v14496_v50, 2 }
 0x682   :  { %vm5853_vm13 = vcmp.gt.f32.partialorder %v10927_v32, 0.0  ;;  %v5865_v12 = vmul.f32 0.2, %v10927_v32  ;;  %9985 = vmatmul.mubr.msk.f32.gmra.mrb[50].mxu0 %vm1180_vm5, %v14480_v27  ;;  %v9958_v61 = vpop.f32.mrb[40].mxu1  ;;  %v6053_v9 = vrot.slane %v14511_v15, 1  ;;  %v6229_v44 = vrot.slane %v14511_v15, 2 }
 0x683   :  { %v14518_v34 = vsel %vm5854_vm12, %v10926_v23, %v5866_v47  ;;  %v10928_v48 = vadd.f32 %v14476_v46, %v9958_v61  ;;  %v5808_v13 = vpop.f32.mrb[41].mxu1  ;;  %9987 = vmatprep.mubr.msk.f32.mxu0 %vm11522_vm8, %v15518_v59  ;;  %10752 = vmatpush3.bf16.msra.mxu0 %v15610_v52  ;;  %v14527_v8 = vsel %vm759_vm3, %v6402_v1, %v6403_v6  ;;  %v6405_v43 = vrot.slane %v14511_v15, 3 }
 0x684   :  { %v14530_v57 = vsel %vm5853_vm13, %v10927_v32, %v5865_v12  ;;  %v10929_v14 = vadd.f32 %v14476_v46, %v5808_v13  ;;  %10753 = vmatprep.subr.bf16.mxu0 %v15512_v22  ;;  %v14535_v24 = vsel %vm379_vm2, %v6051_v28, %v6053_v9  ;;  %v14538_v5 = vsel %vm379_vm2, %v6053_v9, %v6055_v7 }
 0x685   :  { %vm5856_vm1 = vcmp.gt.f32.partialorder %v10928_v48, 0.0  ;;  %v5868_v38 = vmul.f32 0.2, %v10928_v48  ;;  %v6057_v30 = vrot.slane %v14530_v57, 1  ;;  %v6059_v39 = vrot.slane %v14518_v34, 1 }
 0x686   :  { %vm5855_vm14 = vcmp.gt.f32.partialorder %v10929_v14, 0.0  ;;  %v5867_v45 = vmul.f32 0.2, %v10929_v14  ;;  %9988 = vmatmul.mubr.msk.f32.gmra.mrb[52].mxu0 %vm1180_vm5, %v14511_v15  ;;  %v9961_v53 = vpop.f32.mrb[42].mxu1  ;;  %v14545_v19 = vsel %vm569_vm4, %v6227_v55, %v6229_v44  ;;  %v14548_v60 = vsel %vm569_vm4, %v6229_v44, %v6231_v58 }
 0x687   :  { %v14550_v16 = vsel %vm5856_vm1, %v10928_v48, %v5868_v38  ;;  %v10930_v18 = vadd.f32 %v14476_v46, %v9961_v53  ;;  %v5818_v31 = vpop.f32.mrb[43].mxu1  ;;  %9990 = vmatprep.mubr.msk.f32.mxu0 %vm11522_vm8, %v15518_v59  ;;  %10755 = vmatpush3.bf16.msra.mxu0 %v15611_v49  ;;  %v14557_v21 = vsel %vm379_vm2, %v6055_v7, %v6057_v30  ;;  %v6233_v28 = vrot.slane %v14530_v57, 2 }
 0x688   :  { %v14560_v55 = vsel %vm5855_vm14, %v10929_v14, %v5867_v45  ;;  %v10931_v36 = vadd.f32 %v14476_v46, %v5818_v31  ;;  %10756 = vmatprep.subr.bf16.mxu0 %v15512_v22  ;;  %v14565_v33 = vsel %vm379_vm2, %v6057_v30, %v6059_v39  ;;  %v6063_v35 = vrot.slane %v14550_v16, 1 }
 0x689   :  { %vm5858_vm15 = vcmp.gt.f32.partialorder %v10930_v18, 0.0  ;;  %v5870_v20 = vmul.f32 0.2, %v10930_v18  ;;  %v6061_v1 = vrot.slane %v14560_v55, 1  ;;  %v14570_v0 = vsel %vm569_vm4, %v6231_v58, %v6233_v28  ;;  %v15612_v58 = vld [vmem:[#allocation26_spill] sm:$0xff] }
 0x68a   :  { %vm5857_vm7 = vcmp.gt.f32.partialorder %v10931_v36, 0.0  ;;  %v5869_v41 = vmul.f32 0.2, %v10931_v36  ;;  %9991 = vmatmul.mubr.msk.f32.gmra.mrb[54].mxu0 %vm1180_vm5, %v14496_v50  ;;  %v9964_v23 = vpop.f32.mrb[44].mxu1  ;;  %v6235_v62 = vrot.slane %v14518_v34, 2  ;;  %v6237_v3 = vrot.slane %v14560_v55, 2 }
 0x68b   :  { %v14576_v32 = vsel %vm5858_vm15, %v10930_v18, %v5870_v20  ;;  %v10932_v7 = vadd.f32 %v14476_v46, %v9964_v23  ;;  %v5828_v47 = vpop.f32.mrb[45].mxu1  ;;  %9993 = vmatprep.mubr.msk.f32.mxu0 %vm11522_vm8, %v15518_v59  ;;  %10758 = vmatpush3.bf16.msra.mxu0 %v15612_v58  ;;  %v14583_v12 = vsel %vm379_vm2, %v6059_v39, %v6061_v1  ;;  %v6239_v61 = vrot.slane %v14550_v16, 2 }
 0x68c   :  { %v14586_v9 = vsel %vm5857_vm7, %v10931_v36, %v5869_v41  ;;  %v10933_v44 = vadd.f32 %v14476_v46, %v5828_v47  ;;  %10759 = vmatprep.subr.bf16.mxu0 %v15512_v22  ;;  %v14591_v48 = vsel %vm379_vm2, %v6061_v1, %v6063_v35  ;;  %v6067_v13 = vrot.slane %v14576_v32, 1 }
 0x68d   :  { %vm5860_vm9 = vcmp.gt.f32.partialorder %v10932_v7, 0.0  ;;  %v5872_v52 = vmul.f32 0.2, %v10932_v7  ;;  %v6065_v14 = vrot.slane %v14586_v9, 1  ;;  %v14596_v38 = vsel %vm569_vm4, %v6233_v28, %v6235_v62 }
 0x68e   :  { %vm5859_vm10 = vcmp.gt.f32.partialorder %v10933_v44, 0.0  ;;  %v5871_v30 = vmul.f32 0.2, %v10933_v44  ;;  %9994 = vmatmul.mubr.msk.f32.gmra.mrb[56].mxu0 %vm1180_vm5, %v14530_v57  ;;  %v14601_v46 = vsel %vm569_vm4, %v6235_v62, %v6237_v3  ;;  %v14604_v39 = vsel %vm569_vm4, %v6237_v3, %v6239_v61 }
 0x68f   :  { %v14606_v45 = vsel %vm5860_vm9, %v10932_v7, %v5872_v52  ;;  %9996 = vmatprep.mubr.msk.f32.mxu0 %vm11522_vm8, %v15518_v59  ;;  %v14611_v53 = vsel %vm379_vm2, %v6063_v35, %v6065_v14  ;;  %v14614_v18 = vsel %vm379_vm2, %v6065_v14, %v6067_v13  ;;  %v6241_v31 = vrot.slane %v14586_v9, 2 }
 0x690   :  { %v5883_v49 = vsel %vm5859_vm10, %v10933_v44, %v5871_v30  ;;  %v6071_v28 = vrot.slane %v14606_v45, 1  ;;  %v6243_v36 = vrot.slane %v14576_v32, 2  ;;  %v6247_v20 = vrot.slane %v14606_v45, 2 }
 0x691   :  { %v6069_v1 = vrot.slane %v5883_v49, 1  ;;  %v14621_v41 = vsel %vm569_vm4, %v6239_v61, %v6241_v31  ;;  %v6245_v23 = vrot.slane %v5883_v49, 2  ;;  %v14628_v35 = vsel %vm759_vm3, %v6403_v6, %v6405_v43 }
 0x692   :  { %9997 = vmatmul.mubr.msk.f32.gmra.mrb[58].mxu0 %vm1180_vm5, %v14518_v34  ;;  %v14633_v62 = vsel %vm569_vm4, %v6241_v31, %v6243_v36  ;;  %v6407_v3 = vrot.slane %v14496_v50, 3  ;;  %v6409_v7 = vrot.slane %v14530_v57, 3  ;;  %v6411_v47 = vrot.slane %v14518_v34, 3 }
 0x693   :  { %9999 = vmatprep.mubr.msk.f32.mxu0 %vm11522_vm8, %v15518_v59  ;;  %v14641_v58 = vsel %vm379_vm2, %v6067_v13, %v6069_v1  ;;  %v14644_v6 = vsel %vm379_vm2, %v6069_v1, %v6071_v28  ;;  %v14647_v61 = vsel %vm569_vm4, %v6243_v36, %v6245_v23  ;;  %v14650_v44 = vsel %vm569_vm4, %v6245_v23, %v6247_v20 }
 0x694   :  { %v14655_v52 = vsel %vm759_vm3, %v6405_v43, %v6407_v3  ;;  %v14658_v14 = vsel %vm759_vm3, %v6407_v3, %v6409_v7  ;;  %v14661_v13 = vsel %vm759_vm3, %v6409_v7, %v6411_v47  ;;  %v6413_v30 = vrot.slane %v14560_v55, 3 }
 0x695   :  { %v6415_v31 = vrot.slane %v14550_v16, 3  ;;  %v6417_v28 = vrot.slane %v14586_v9, 3  ;;  %v6419_v36 = vrot.slane %v14576_v32, 3  ;;  %v6421_v20 = vrot.slane %v5883_v49, 3 }
 0x696   :  { %10000 = vmatmul.mubr.msk.f32.gmra.mrb[60].mxu0 %vm1180_vm5, %v14560_v55  ;;  %v14670_v43 = vsel %vm759_vm3, %v6411_v47, %v6413_v30  ;;  %v6423_v1 = vrot.slane %v14606_v45, 3  ;;  %v14678_v23 = vsel %vm237_vm0, %v6578_v10, %v6579_v4  ;;  %v6581_v3 = vrot.slane %v14511_v15, 4 }
 0x697   :  { %10002 = vmatprep.mubr.msk.f32.mxu0 %vm11522_vm8, %v15518_v59  ;;  %v14684_v7 = vsel %vm759_vm3, %v6413_v30, %v6415_v31  ;;  %v14687_v47 = vsel %vm759_vm3, %v6415_v31, %v6417_v28  ;;  %v14690_v29 = vsel %vm759_vm3, %v6417_v28, %v6419_v36  ;;  %v14693_v42 = vsel %vm759_vm3, %v6419_v36, %v6421_v20 }
 0x698   :  { %v14696_v2 = vsel %vm759_vm3, %v6421_v20, %v6423_v1  ;;  %v14701_v10 = vsel %vm237_vm0, %v6579_v4, %v6581_v3  ;;  %v6583_v15 = vrot.slane %v14496_v50, 4  ;;  %v6585_v30 = vrot.slane %v14530_v57, 4 }
 0x699   :  { %v6587_v31 = vrot.slane %v14518_v34, 4  ;;  %v6589_v28 = vrot.slane %v14560_v55, 4  ;;  %v6591_v56 = vrot.slane %v14550_v16, 4  ;;  %v6593_v36 = vrot.slane %v14586_v9, 4 }
 0x69a   :  { %10003 = vmatmul.mubr.msk.f32.gmra.mrb[62].mxu0 %vm1180_vm5, %v14550_v16  ;;  %v14712_v27 = vsel %vm237_vm0, %v6581_v3, %v6583_v15  ;;  %v14715_v4 = vsel %vm237_vm0, %v6583_v15, %v6585_v30  ;;  %v6595_v50 = vrot.slane %v14576_v32, 4  ;;  %v6597_v57 = vrot.slane %v5883_v49, 4 }
 0x69b   :  { %10005 = vmatprep.mubr.msk.f32.mxu0 %vm11522_vm8, %v15518_v59  ;;  %v14721_v34 = vsel %vm237_vm0, %v6585_v30, %v6587_v31  ;;  %v14724_v55 = vsel %vm237_vm0, %v6587_v31, %v6589_v28  ;;  %v14727_v16 = vsel %vm237_vm0, %v6589_v28, %v6591_v56  ;;  %v14730_v20 = vsel %vm237_vm0, %v6591_v56, %v6593_v36  ;;  %v15613_v56 = vld [vmem:[#allocation27_spill] sm:$0xff] }
 0x69c   :  { %v14733_v1 = vsel %vm237_vm0, %v6593_v36, %v6595_v50  ;;  %v14736_v3 = vsel %vm237_vm0, %v6595_v50, %v6597_v57  ;;  %v6599_v15 = vrot.slane %v14606_v45, 4 }
 0x69e   :  { %10006 = vmatmul.mubr.msk.f32.gmra.mrb[64].mxu0 %vm1180_vm5, %v14586_v9  ;;  %v14742_v30 = vsel %vm237_vm0, %v6597_v57, %v6599_v15 }
 0x69f   :  { %10008 = vmatprep.mubr.msk.f32.mxu0 %vm11522_vm8, %v15518_v59 }
 0x6a2   :  { %10009 = vmatmul.mubr.msk.f32.gmra.mrb[66].mxu0 %vm1180_vm5, %v14576_v32  ;;  %v15614_v32 = vld [vmem:[#allocation28_spill] sm:$0xff] }
 0x6a3   :  { %10011 = vmatprep.mubr.msk.f32.mxu0 %vm11522_vm8, %v15518_v59 }
 0x6a6   :  { %10012 = vmatmul.mubr.msk.f32.gmra.mrb[68].mxu0 %vm1180_vm5, %v5883_v49 }
 0x6a7   :  { %10030 = vmatprep.mubr.msk.f32.mxu0 %vm11522_vm8, %v15518_v59 }
 0x6aa   :  { %10031 = vmatmul.mubr.msk.f32.vlgmr.msra.gmra.mrb[48].mxu0 %vm1180_vm5, %v14505_v51  ;;  %v15615_v51 = vld [vmem:[#allocation29_spill] sm:$0xff] }
 0x6ab   :  { %10761 = vmatpush3.bf16.msra.mxu0 %v15613_v56  ;;  %10033 = vmatprep.mubr.msk.f32.mxu0 %vm11522_vm8, %v15518_v59 }
 0x6ac   :  { %10762 = vmatprep.subr.bf16.mxu0 %v15512_v22 }
 0x6ae   :  { %10034 = vmatmul.mubr.msk.f32.gmra.mrb[50].mxu0 %vm1180_vm5, %v14535_v24  ;;  %v15616_v24 = vld [vmem:[#allocation30_spill] sm:$0xff] }
 0x6af   :  { %10036 = vmatprep.mubr.msk.f32.mxu0 %vm11522_vm8, %v15518_v59  ;;  %10764 = vmatpush3.bf16.msra.mxu0 %v15614_v32 }
 0x6b0   :  { %10765 = vmatprep.subr.bf16.mxu0 %v15512_v22 }
 0x6b2   :  { %10037 = vmatmul.mubr.msk.f32.gmra.mrb[52].mxu0 %vm1180_vm5, %v14538_v5  ;;  %v15617_v5 = vld [vmem:[#allocation31_spill] sm:$0xff] }
 0x6b3   :  { %10039 = vmatprep.mubr.msk.f32.mxu0 %vm11522_vm8, %v15518_v59  ;;  %10767 = vmatpush3.bf16.msra.mxu0 %v15615_v51 }
 0x6b4   :  { %10768 = vmatprep.subr.bf16.mxu0 %v15512_v22 }
 0x6b6   :  { %10040 = vmatmul.mubr.msk.f32.gmra.mrb[54].mxu0 %vm1180_vm5, %v14557_v21  ;;  %v15618_v21 = vld [vmem:[#allocation32_spill] sm:$0xff] }
 0x6b7   :  { %10042 = vmatprep.mubr.msk.f32.mxu0 %vm11522_vm8, %v15518_v59  ;;  %10770 = vmatpush3.bf16.msra.mxu0 %v15616_v24 }
 0x6b8   :  { %10771 = vmatprep.subr.bf16.mxu0 %v15512_v22 }
 0x6ba   :  { %10043 = vmatmul.mubr.msk.f32.gmra.mrb[56].mxu0 %vm1180_vm5, %v14565_v33  ;;  %v15622_v33 = vld [vmem:[#allocation40_spill] sm:$0xff] }
 0x6bb   :  { %10045 = vmatprep.mubr.msk.f32.mxu0 %vm11522_vm8, %v15518_v59 }
 0x6be   :  { %10046 = vmatmul.mubr.msk.f32.gmra.mrb[58].mxu0 %vm1180_vm5, %v14583_v12 }
 0x6bf   :  { %10048 = vmatprep.mubr.msk.f32.mxu0 %vm11522_vm8, %v15518_v59 }
 0x6c2   :  { %10049 = vmatmul.mubr.msk.f32.gmra.mrb[60].mxu0 %vm1180_vm5, %v14591_v48 }
 0x6c3   :  { %10051 = vmatprep.mubr.msk.f32.mxu0 %vm11522_vm8, %v15518_v59 }
 0x6c6   :  { %10052 = vmatmul.mubr.msk.f32.gmra.mrb[62].mxu0 %vm1180_vm5, %v14611_v53 }
 0x6c7   :  { %10054 = vmatprep.mubr.msk.f32.mxu0 %vm11522_vm8, %v15518_v59 }
 0x6ca   :  { %10055 = vmatmul.mubr.msk.f32.gmra.mrb[64].mxu0 %vm1180_vm5, %v14614_v18  ;;  %v15625_v18 = vld [vmem:[#allocation43_spill] sm:$0xff] }
 0x6cb   :  { %10057 = vmatprep.mubr.msk.f32.mxu0 %vm11522_vm8, %v15518_v59 }
 0x6ce   :  { %10058 = vmatmul.mubr.msk.f32.gmra.mrb[66].mxu0 %vm1180_vm5, %v14641_v58 }
 0x6cf   :  { %10060 = vmatprep.mubr.msk.f32.mxu0 %vm11522_vm8, %v15518_v59 }
 0x6d2   :  { %10061 = vmatmul.mubr.msk.f32.gmra.mrb[68].mxu0 %vm1180_vm5, %v14644_v6 }
 0x6d3   :  { %10079 = vmatprep.mubr.msk.f32.mxu0 %vm11522_vm8, %v15518_v59 }
 0x6d6   :  { %10080 = vmatmul.mubr.msk.f32.vlgmr.msra.gmra.mrb[48].mxu0 %vm1180_vm5, %v14509_v17  ;;  %v15619_v17 = vld [vmem:[#allocation34_spill] sm:$0xff] }
 0x6d7   :  { %10773 = vmatpush3.bf16.msra.mxu0 %v15617_v5  ;;  %10082 = vmatprep.mubr.msk.f32.mxu0 %vm11522_vm8, %v15518_v59 }
 0x6d8   :  { %10774 = vmatprep.subr.bf16.mxu0 %v15512_v22 }
 0x6da   :  { %10083 = vmatmul.mubr.msk.f32.gmra.mrb[50].mxu0 %vm1180_vm5, %v14545_v19  ;;  %v15620_v19 = vld [vmem:[#allocation36_spill] sm:$0xff] }
 0x6db   :  { %10085 = vmatprep.mubr.msk.f32.mxu0 %vm11522_vm8, %v15518_v59  ;;  %10776 = vmatpush3.bf16.msra.mxu0 %v15618_v21 }
 0x6dc   :  { %10777 = vmatprep.subr.bf16.mxu0 %v15512_v22 }
 0x6de   :  { %10086 = vmatmul.mubr.msk.f32.gmra.mrb[52].mxu0 %vm1180_vm5, %v14548_v60  ;;  %v15621_v60 = vld [vmem:[#allocation39_spill] sm:$0xff] }
 0x6df   :  { %10088 = vmatprep.mubr.msk.f32.mxu0 %vm11522_vm8, %v15518_v59  ;;  %10779 = vmatpush3.bf16.msra.mxu0 %v15619_v17 }
 0x6e0   :  { %10780 = vmatprep.subr.bf16.mxu0 %v15512_v22 }
 0x6e2   :  { %10089 = vmatmul.mubr.msk.f32.gmra.mrb[54].mxu0 %vm1180_vm5, %v14570_v0  ;;  %v15624_v0 = vld [vmem:[#allocation42_spill] sm:$0xff] }
 0x6e3   :  { %10091 = vmatprep.mubr.msk.f32.mxu0 %vm11522_vm8, %v15518_v59  ;;  %10782 = vmatpush3.bf16.msra.mxu0 %v15620_v19 }
 0x6e4   :  { %10783 = vmatprep.subr.bf16.mxu0 %v15512_v22 }
 0x6e6   :  { %10092 = vmatmul.mubr.msk.f32.gmra.mrb[56].mxu0 %vm1180_vm5, %v14596_v38 }
 0x6e7   :  { %10094 = vmatprep.mubr.msk.f32.mxu0 %vm11522_vm8, %v15518_v59 }
 0x6ea   :  { %10095 = vmatmul.mubr.msk.f32.gmra.mrb[58].mxu0 %vm1180_vm5, %v14601_v46 }
 0x6eb   :  { %10097 = vmatprep.mubr.msk.f32.mxu0 %vm11522_vm8, %v15518_v59 }
 0x6ee   :  { %10098 = vmatmul.mubr.msk.f32.gmra.mrb[60].mxu0 %vm1180_vm5, %v14604_v39 }
 0x6ef   :  { %10100 = vmatprep.mubr.msk.f32.mxu0 %vm11522_vm8, %v15518_v59 }
 0x6f2   :  { %10101 = vmatmul.mubr.msk.f32.gmra.mrb[62].mxu0 %vm1180_vm5, %v14621_v41 }
 0x6f3   :  { %10103 = vmatprep.mubr.msk.f32.mxu0 %vm11522_vm8, %v15518_v59 }
 0x6f6   :  { %10104 = vmatmul.mubr.msk.f32.gmra.mrb[64].mxu0 %vm1180_vm5, %v14633_v62 }
 0x6f7   :  { %10106 = vmatprep.mubr.msk.f32.mxu0 %vm11522_vm8, %v15518_v59 }
 0x6fa   :  { %10107 = vmatmul.mubr.msk.f32.gmra.mrb[66].mxu0 %vm1180_vm5, %v14647_v61 }
 0x6fb   :  { %10109 = vmatprep.mubr.msk.f32.mxu0 %vm11522_vm8, %v15518_v59 }
 0x6fe   :  { %10110 = vmatmul.mubr.msk.f32.gmra.mrb[68].mxu0 %vm1180_vm5, %v14650_v44 }
 0x6ff   :  { %10128 = vmatprep.mubr.msk.f32.mxu0 %vm11522_vm8, %v15518_v59 }
 0x702   :  { %10129 = vmatmul.mubr.msk.f32.vlgmr.msra.gmra.mrb[48].mxu0 %vm1180_vm5, %v14527_v8  ;;  %v15623_v8 = vld [vmem:[#allocation41_spill] sm:$0xff] }
 0x703   :  { %10785 = vmatpush3.bf16.msra.mxu0 %v15621_v60  ;;  %10131 = vmatprep.mubr.msk.f32.mxu0 %vm11522_vm8, %v15518_v59 }
 0x704   :  { %10786 = vmatprep.subr.bf16.mxu0 %v15512_v22 }
 0x706   :  { %10132 = vmatmul.mubr.msk.f32.gmra.mrb[50].mxu0 %vm1180_vm5, %v14628_v35 }
 0x707   :  { %10134 = vmatprep.mubr.msk.f32.mxu0 %vm11522_vm8, %v15518_v59  ;;  %10788 = vmatpush3.bf16.msra.mxu0 %v15622_v33  ;;  %v15628_v33 = vld [vmem:[#allocation49_spill] sm:$0xff] }
 0x708   :  { %10789 = vmatprep.subr.bf16.mxu0 %v15512_v22 }
 0x70a   :  { %10135 = vmatmul.mubr.msk.f32.gmra.mrb[52].mxu0 %vm1180_vm5, %v14655_v52 }
 0x70b   :  { %10137 = vmatprep.mubr.msk.f32.mxu0 %vm11522_vm8, %v15518_v59  ;;  %10791 = vmatpush3.bf16.msra.mxu0 %v15623_v8 }
 0x70c   :  { %10792 = vmatprep.subr.bf16.mxu0 %v15512_v22 }
 0x70e   :  { %10138 = vmatmul.mubr.msk.f32.gmra.mrb[54].mxu0 %vm1180_vm5, %v14658_v14 }
 0x70f   :  { %10140 = vmatprep.mubr.msk.f32.mxu0 %vm11522_vm8, %v15518_v59  ;;  %10794 = vmatpush3.bf16.msra.mxu0 %v15624_v0 }
 0x712   :  { %10141 = vmatmul.mubr.msk.f32.gmra.mrb[56].mxu0 %vm1180_vm5, %v14661_v13 }
 0x713   :  { %10143 = vmatprep.mubr.msk.f32.mxu0 %vm11522_vm8, %v15518_v59 }
 0x716   :  { %10144 = vmatmul.mubr.msk.f32.gmra.mrb[58].mxu0 %vm1180_vm5, %v14670_v43 }
 0x717   :  { %10146 = vmatprep.mubr.msk.f32.mxu0 %vm11522_vm8, %v15518_v59 }
 0x71a   :  { %10147 = vmatmul.mubr.msk.f32.gmra.mrb[60].mxu0 %vm1180_vm5, %v14684_v7  ;;  %v15626_v7 = vld [vmem:[#allocation44_spill] sm:$0xff] }
 0x71b   :  { %10149 = vmatprep.mubr.msk.f32.mxu0 %vm11522_vm8, %v15518_v59 }
 0x71e   :  { %10150 = vmatmul.mubr.msk.f32.gmra.mrb[62].mxu0 %vm1180_vm5, %v14687_v47 }
 0x71f   :  { %10152 = vmatprep.mubr.msk.f32.mxu0 %vm11522_vm8, %v15518_v59 }
 0x722   :  { %10153 = vmatmul.mubr.msk.f32.gmra.mrb[64].mxu0 %vm1180_vm5, %v14690_v29  ;;  %v14953_v29 = vld [vmem:[%s15402_s6] ss:$0 sm:$0xff] }
 0x723   :  { %10155 = vmatprep.mubr.msk.f32.mxu0 %vm11522_vm8, %v15518_v59 }
 0x726   :  { %10156 = vmatmul.mubr.msk.f32.gmra.mrb[66].mxu0 %vm1180_vm5, %v14693_v42 }
 0x727   :  { %10158 = vmatprep.mubr.msk.f32.mxu0 %vm11522_vm8, %v15518_v59 }
 0x72a   :  { %10159 = vmatmul.mubr.msk.f32.gmra.mrb[68].mxu0 %vm1180_vm5, %v14696_v2 }
 0x72b   :  { %10177 = vmatprep.mubr.msk.f32.mxu0 %vm11522_vm8, %v15518_v59 }
 0x72e   :  { %10178 = vmatmul.mubr.msk.f32.vlgmr.msra.gmra.mrb[48].mxu0 %vm1180_vm5, %v14678_v23 }
 0x72f   :  { %10180 = vmatprep.mubr.msk.f32.mxu0 %vm11522_vm8, %v15518_v59 }
 0x732   :  { %10181 = vmatmul.mubr.msk.f32.gmra.mrb[50].mxu0 %vm1180_vm5, %v14701_v10 }
 0x733   :  { %10183 = vmatprep.mubr.msk.f32.mxu0 %vm11522_vm8, %v15518_v59 }
 0x736   :  { %10184 = vmatmul.mubr.msk.f32.gmra.mrb[52].mxu0 %vm1180_vm5, %v14712_v27 }
 0x737   :  { %10186 = vmatprep.mubr.msk.f32.mxu0 %vm11522_vm8, %v15518_v59 }
 0x73a   :  { %10187 = vmatmul.mubr.msk.f32.gmra.mrb[54].mxu0 %vm1180_vm5, %v14715_v4 }
 0x73b   :  { %10189 = vmatprep.mubr.msk.f32.mxu0 %vm11522_vm8, %v15518_v59 }
 0x73e   :  { %10190 = vmatmul.mubr.msk.f32.gmra.mrb[56].mxu0 %vm1180_vm5, %v14721_v34 }
 0x73f   :  { %10192 = vmatprep.mubr.msk.f32.mxu0 %vm11522_vm8, %v15518_v59 }
 0x742   :  { %10193 = vmatmul.mubr.msk.f32.gmra.mrb[58].mxu0 %vm1180_vm5, %v14724_v55 }
 0x743   :  { %10195 = vmatprep.mubr.msk.f32.mxu0 %vm11522_vm8, %v15518_v59 }
 0x746   :  { %10196 = vmatmul.mubr.msk.f32.gmra.mrb[60].mxu0 %vm1180_vm5, %v14727_v16 }
 0x747   :  { %10198 = vmatprep.mubr.msk.f32.mxu0 %vm11522_vm8, %v15518_v59 }
 0x74a   :  { %10199 = vmatmul.mubr.msk.f32.gmra.mrb[62].mxu0 %vm1180_vm5, %v14730_v20  ;;  %v15627_v20 = vld [vmem:[#allocation47_spill] sm:$0xff] }
 0x74b   :  { %10201 = vmatprep.mubr.msk.f32.mxu0 %vm11522_vm8, %v15518_v59 }
 0x74e   :  { %10202 = vmatmul.mubr.msk.f32.gmra.mrb[64].mxu0 %vm1180_vm5, %v14733_v1 }
 0x74f   :  { %10204 = vmatprep.mubr.msk.f32.mxu0 %vm11522_vm8, %v15518_v59 }
 0x752   :  { %10205 = vmatmul.mubr.msk.f32.gmra.mrb[66].mxu0 %vm1180_vm5, %v14736_v3 }
 0x753   :  { %10207 = vmatprep.mubr.msk.f32.mxu0 %vm11522_vm8, %v15518_v59 }
 0x756   :  { %10208 = vmatmul.mubr.msk.f32.gmra.mrb[68].mxu0 %vm1180_vm5, %v14742_v30 }
 0x801   :  { %v6689_v42 = vpop.f32.mrb[48].mxu0 }
 0x802   :  { %v10934_v12 = vadd.f32 %v14953_v29, %v6689_v42  ;;  %v10179_v9 = vpop.f32.mrb[49].mxu0 }
 0x804   :  { %vm6754_vm11 = vcmp.gt.f32.partialorder %v10934_v12, 0.0  ;;  %v6765_v48 = vmul.f32 0.2, %v10934_v12 }
 0x805   :  { %v6694_v38 = vpop.f32.mrb[50].mxu0 }
 0x806   :  { %v6776_v46 = vsel %vm6754_vm11, %v10934_v12, %v6765_v48  ;;  %v10935_v39 = vadd.f32 %v14953_v29, %v6694_v38  ;;  %v10182_v45 = vpop.f32.mrb[51].mxu0 }
 0x807   :  { %10227 = vmatmul.mubr.msk.f32.vlgmr.msra.gmra.mrb[46].mxu1 %vm1180_vm5, %v6776_v46  ;;  %v6951_v49 = vrot.slane %v6776_v46, 1  ;;  %v7125_v41 = vrot.slane %v6776_v46, 2  ;;  %v7299_v62 = vrot.slane %v6776_v46, 3  ;;  %v7473_v58 = vrot.slane %v6776_v46, 4 }
 0x808   :  { %vm6755_vm12 = vcmp.gt.f32.partialorder %v10935_v39, 0.0  ;;  %v6766_v53 = vmul.f32 0.2, %v10935_v39  ;;  %10809 = vmatpush3.bf16.msra.mxu1 %v15625_v18  ;;  %10229 = vmatprep.mubr.msk.f32.mxu1 %vm11522_vm8, %v15518_v59 }
 0x809   :  { %v6699_v35 = vpop.f32.mrb[52].mxu0  ;;  %10810 = vmatprep.subr.bf16.mxu1 %v15512_v22 }
 0x80a   :  { %v6777_v6 = vsel %vm6755_vm12, %v10935_v39, %v6766_v53  ;;  %v10936_v61 = vadd.f32 %v14953_v29, %v6699_v35  ;;  %v10185_v44 = vpop.f32.mrb[53].mxu0 }
 0x80b   :  { %v6952_v52 = vrot.slane %v6777_v6, 1  ;;  %v7126_v14 = vrot.slane %v6777_v6, 2  ;;  %v7300_v13 = vrot.slane %v6777_v6, 3  ;;  %v7474_v43 = vrot.slane %v6777_v6, 4  ;;  %10230 = vmatmul.mubr.msk.f32.gmra.mrb[48].mxu1 %vm1180_vm5, %v6777_v6 }
 0x80c   :  { %vm6756_vm13 = vcmp.gt.f32.partialorder %v10936_v61, 0.0  ;;  %v6767_v23 = vmul.f32 0.2, %v10936_v61  ;;  %10232 = vmatprep.mubr.msk.f32.mxu1 %vm11522_vm8, %v15518_v59  ;;  %10812 = vmatpush3.bf16.msra.mxu1 %v15626_v7 }
 0x80d   :  { %v6704_v47 = vpop.f32.mrb[54].mxu0  ;;  %10813 = vmatprep.subr.bf16.mxu1 %v15512_v22  ;;  %v14969_v2 = vsel %vm379_vm2, %v6951_v49, %v6952_v52  ;;  %v14972_v10 = vsel %vm569_vm4, %v7125_v41, %v7126_v14  ;;  %v14975_v31 = vsel %vm759_vm3, %v7299_v62, %v7300_v13  ;;  %v14978_v28 = vsel %vm237_vm0, %v7473_v58, %v7474_v43 }
 0x80e   :  { %v6778_v36 = vsel %vm6756_vm13, %v10936_v61, %v6767_v23  ;;  %v10937_v27 = vadd.f32 %v14953_v29, %v6704_v47  ;;  %v10188_v4 = vpop.f32.mrb[55].mxu0 }
 0x80f   :  { %10233 = vmatmul.mubr.msk.f32.gmra.mrb[50].mxu1 %vm1180_vm5, %v6778_v36  ;;  %v6954_v50 = vrot.slane %v6778_v36, 1  ;;  %v7128_v57 = vrot.slane %v6778_v36, 2  ;;  %v7302_v34 = vrot.slane %v6778_v36, 3  ;;  %v7476_v55 = vrot.slane %v6778_v36, 4 }
 0x810   :  { %vm6757_vm1 = vcmp.gt.f32.partialorder %v10937_v27, 0.0  ;;  %v6768_v16 = vmul.f32 0.2, %v10937_v27  ;;  %10235 = vmatprep.mubr.msk.f32.mxu1 %vm11522_vm8, %v15518_v59  ;;  %10815 = vmatpush3.bf16.msra.mxu1 %v15627_v20 }
 0x811   :  { %v6709_v1 = vpop.f32.mrb[56].mxu0  ;;  %10816 = vmatprep.subr.bf16.mxu1 %v15512_v22  ;;  %v14987_v3 = vsel %vm379_vm2, %v6952_v52, %v6954_v50  ;;  %v14990_v15 = vsel %vm569_vm4, %v7126_v14, %v7128_v57  ;;  %v14993_v30 = vsel %vm759_vm3, %v7300_v13, %v7302_v34  ;;  %v14996_v56 = vsel %vm237_vm0, %v7474_v43, %v7476_v55 }
 0x812   :  { %v6779_v32 = vsel %vm6757_vm1, %v10937_v27, %v6768_v16  ;;  %v10938_v51 = vadd.f32 %v14953_v29, %v6709_v1  ;;  %v10191_v24 = vpop.f32.mrb[57].mxu0 }
 0x813   :  { %10236 = vmatmul.mubr.msk.f32.gmra.mrb[52].mxu1 %vm1180_vm5, %v6779_v32  ;;  %v6956_v5 = vrot.slane %v6779_v32, 1  ;;  %v7130_v21 = vrot.slane %v6779_v32, 2  ;;  %v7304_v17 = vrot.slane %v6779_v32, 3  ;;  %v7478_v19 = vrot.slane %v6779_v32, 4 }
 0x814   :  { %vm6758_vm14 = vcmp.gt.f32.partialorder %v10938_v51, 0.0  ;;  %v6769_v60 = vmul.f32 0.2, %v10938_v51  ;;  %10238 = vmatprep.mubr.msk.f32.mxu1 %vm11522_vm8, %v15518_v59  ;;  %10818 = vmatpush3.bf16.msra.mxu1 %v15628_v33 }
 0x815   :  { %v6714_v8 = vpop.f32.mrb[58].mxu0  ;;  %10819 = vmatprep.subr.bf16.mxu1 %v15512_v22  ;;  %v15005_v0 = vsel %vm379_vm2, %v6954_v50, %v6956_v5  ;;  %v15008_v42 = vsel %vm569_vm4, %v7128_v57, %v7130_v21  ;;  %v15011_v12 = vsel %vm759_vm3, %v7302_v34, %v7304_v17  ;;  %v15014_v9 = vsel %vm237_vm0, %v7476_v55, %v7478_v19 }
 0x816   :  { %v6780_v48 = vsel %vm6758_vm14, %v10938_v51, %v6769_v60  ;;  %v10939_v38 = vadd.f32 %v14953_v29, %v6714_v8  ;;  %v10194_v46 = vpop.f32.mrb[59].mxu0 }
 0x817   :  { %10239 = vmatmul.mubr.msk.f32.gmra.mrb[54].mxu1 %vm1180_vm5, %v6780_v48  ;;  %v6958_v39 = vrot.slane %v6780_v48, 1  ;;  %v7132_v45 = vrot.slane %v6780_v48, 2  ;;  %v7306_v53 = vrot.slane %v6780_v48, 3  ;;  %v7480_v18 = vrot.slane %v6780_v48, 4 }
 0x818   :  { %vm6759_vm15 = vcmp.gt.f32.partialorder %v10939_v38, 0.0  ;;  %v6770_v49 = vmul.f32 0.2, %v10939_v38  ;;  %10241 = vmatprep.mubr.msk.f32.mxu1 %vm11522_vm8, %v15518_v59 }
 0x819   :  { %v6719_v41 = vpop.f32.mrb[60].mxu0  ;;  %v15021_v35 = vsel %vm379_vm2, %v6956_v5, %v6958_v39  ;;  %v15024_v62 = vsel %vm569_vm4, %v7130_v21, %v7132_v45  ;;  %v15027_v58 = vsel %vm759_vm3, %v7304_v17, %v7306_v53  ;;  %v15030_v6 = vsel %vm237_vm0, %v7478_v19, %v7480_v18 }
 0x81a   :  { %v6781_v61 = vsel %vm6759_vm15, %v10939_v38, %v6770_v49  ;;  %v10940_v44 = vadd.f32 %v14953_v29, %v6719_v41  ;;  %v10197_v52 = vpop.f32.mrb[61].mxu0 }
 0x81b   :  { %10242 = vmatmul.mubr.msk.f32.gmra.mrb[56].mxu1 %vm1180_vm5, %v6781_v61  ;;  %v6960_v14 = vrot.slane %v6781_v61, 1  ;;  %v7134_v13 = vrot.slane %v6781_v61, 2  ;;  %v7308_v43 = vrot.slane %v6781_v61, 3  ;;  %v7482_v23 = vrot.slane %v6781_v61, 4 }
 0x81c   :  { %vm6760_vm7 = vcmp.gt.f32.partialorder %v10940_v44, 0.0  ;;  %v6771_v7 = vmul.f32 0.2, %v10940_v44  ;;  %10244 = vmatprep.mubr.msk.f32.mxu1 %vm11522_vm8, %v15518_v59 }
 0x81d   :  { %v6724_v47 = vpop.f32.mrb[62].mxu0  ;;  %v15037_v36 = vsel %vm379_vm2, %v6958_v39, %v6960_v14  ;;  %v15040_v27 = vsel %vm569_vm4, %v7132_v45, %v7134_v13  ;;  %v15043_v4 = vsel %vm759_vm3, %v7306_v53, %v7308_v43  ;;  %v15046_v50 = vsel %vm237_vm0, %v7480_v18, %v7482_v23 }
 0x81e   :  { %v6782_v57 = vsel %vm6760_vm7, %v10940_v44, %v6771_v7  ;;  %v10941_v34 = vadd.f32 %v14953_v29, %v6724_v47  ;;  %v10200_v55 = vpop.f32.mrb[63].mxu0 }
 0x81f   :  { %10245 = vmatmul.mubr.msk.f32.gmra.mrb[58].mxu1 %vm1180_vm5, %v6782_v57  ;;  %v6962_v16 = vrot.slane %v6782_v57, 1  ;;  %v7136_v20 = vrot.slane %v6782_v57, 2  ;;  %v7310_v1 = vrot.slane %v6782_v57, 3  ;;  %v7484_v32 = vrot.slane %v6782_v57, 4 }
 0x820   :  { %vm6761_vm9 = vcmp.gt.f32.partialorder %v10941_v34, 0.0  ;;  %v6772_v51 = vmul.f32 0.2, %v10941_v34  ;;  %10247 = vmatprep.mubr.msk.f32.mxu1 %vm11522_vm8, %v15518_v59 }
 0x821   :  { %v6729_v24 = vpop.f32.mrb[64].mxu0  ;;  %v15053_v5 = vsel %vm379_vm2, %v6960_v14, %v6962_v16  ;;  %v15056_v21 = vsel %vm569_vm4, %v7134_v13, %v7136_v20  ;;  %v15059_v17 = vsel %vm759_vm3, %v7308_v43, %v7310_v1  ;;  %v15062_v19 = vsel %vm237_vm0, %v7482_v23, %v7484_v32 }
 0x822   :  { %v6783_v60 = vsel %vm6761_vm9, %v10941_v34, %v6772_v51  ;;  %v10942_v33 = vadd.f32 %v14953_v29, %v6729_v24  ;;  %v10203_v8 = vpop.f32.mrb[65].mxu0 }
 0x823   :  { %10248 = vmatmul.mubr.msk.f32.gmra.mrb[60].mxu1 %vm1180_vm5, %v6783_v60  ;;  %v6964_v48 = vrot.slane %v6783_v60, 1  ;;  %v7138_v38 = vrot.slane %v6783_v60, 2  ;;  %v7312_v46 = vrot.slane %v6783_v60, 3  ;;  %v7486_v39 = vrot.slane %v6783_v60, 4 }
 0x824   :  { %vm6762_vm10 = vcmp.gt.f32.partialorder %v10942_v33, 0.0  ;;  %v6773_v45 = vmul.f32 0.2, %v10942_v33  ;;  %10250 = vmatprep.mubr.msk.f32.mxu1 %vm11522_vm8, %v15518_v59 }
 0x825   :  { %v6734_v53 = vpop.f32.mrb[66].mxu0  ;;  %v15069_v18 = vsel %vm379_vm2, %v6962_v16, %v6964_v48  ;;  %v15072_v49 = vsel %vm569_vm4, %v7136_v20, %v7138_v38  ;;  %v15075_v41 = vsel %vm759_vm3, %v7310_v1, %v7312_v46  ;;  %v15078_v61 = vsel %vm237_vm0, %v7484_v32, %v7486_v39 }
 0x826   :  { %v6784_v44 = vsel %vm6762_vm10, %v10942_v33, %v6773_v45  ;;  %v10943_v52 = vadd.f32 %v14953_v29, %v6734_v53  ;;  %v10206_v14 = vpop.f32.mrb[67].mxu0  ;;  %vm7720_vm10 = vcmask 517120  }
 0x827   :  { %10251 = vmatmul.mubr.msk.f32.gmra.mrb[62].mxu1 %vm1180_vm5, %v6784_v44  ;;  %v6966_v13 = vrot.slane %v6784_v44, 1  ;;  %v7140_v43 = vrot.slane %v6784_v44, 2  ;;  %v7314_v23 = vrot.slane %v6784_v44, 3  ;;  %v7488_v7 = vrot.slane %v6784_v44, 4 }
 0x828   :  { %vm6763_vm11 = vcmp.gt.f32.partialorder %v10943_v52, 0.0  ;;  %v6774_v47 = vmul.f32 0.2, %v10943_v52  ;;  %10253 = vmatprep.mubr.msk.f32.mxu1 %vm11522_vm8, %v15518_v59 }
 0x829   :  { %v6739_v57 = vpop.f32.mrb[68].mxu0  ;;  %v6967_v34 = vsel %vm379_vm2, %v6964_v48, %v6966_v13  ;;  %v15086_v55 = vsel %vm569_vm4, %v7138_v38, %v7140_v43  ;;  %v15089_v16 = vsel %vm759_vm3, %v7312_v46, %v7314_v23  ;;  %v15092_v20 = vsel %vm237_vm0, %v7486_v39, %v7488_v7 }
 0x82a   :  { %v6785_v1 = vsel %vm6763_vm11, %v10943_v52, %v6774_v47  ;;  %v10944_v32 = vadd.f32 %v14953_v29, %v6739_v57  ;;  %v10209_v51 = vpop.f32.mrb[69].mxu0  ;;  %vm7731_vm11 = vcmask 1024  }
 0x82b   :  { %10254 = vmatmul.mubr.msk.f32.gmra.mrb[64].mxu1 %vm1180_vm5, %v6785_v1  ;;  %v6968_v24 = vrot.slane %v6785_v1, 1  ;;  %v7142_v60 = vrot.slane %v6785_v1, 2  ;;  %v7316_v33 = vrot.slane %v6785_v1, 3  ;;  %v7490_v8 = vrot.slane %v6785_v1, 4 }
 0x82c   :  { %vm6764_vm12 = vcmp.gt.f32.partialorder %v10944_v32, 0.0  ;;  %v6775_v48 = vmul.f32 0.2, %v10944_v32  ;;  %10256 = vmatprep.mubr.msk.f32.mxu1 %vm11522_vm8, %v15518_v59 }
 0x82d   :  { %v6969_v38 = vsel %vm379_vm2, %v6966_v13, %v6968_v24  ;;  %v15100_v46 = vsel %vm569_vm4, %v7140_v43, %v7142_v60  ;;  %v15103_v39 = vsel %vm759_vm3, %v7314_v23, %v7316_v33  ;;  %v15106_v29 = vsel %vm237_vm0, %v7488_v7, %v7490_v8 }
 0x82e   :  { %v15108_v45 = vsel %vm6764_vm12, %v10944_v32, %v6775_v48  ;;  %v11514_v48 = vld [vmem:[%s15404_s9 + $0x20] sm:$0xff] }
 0x82f   :  { %10257 = vmatmul.mubr.msk.f32.gmra.mrb[66].mxu1 %vm1180_vm5, %v15108_v45  ;;  %v6970_v53 = vrot.slane %v15108_v45, 1  ;;  %v7144_v44 = vrot.slane %v15108_v45, 2  ;;  %v7318_v52 = vrot.slane %v15108_v45, 3  ;;  %v7492_v14 = vrot.slane %v15108_v45, 4 }
 0x830   :  { %10275 = vmatprep.mubr.msk.f32.mxu1 %vm11522_vm8, %v15518_v59 }
 0x831   :  { %v6971_v13 = vsel %vm379_vm2, %v6968_v24, %v6970_v53  ;;  %v7145_v43 = vsel %vm569_vm4, %v7142_v60, %v7144_v44  ;;  %v15125_v23 = vsel %vm759_vm3, %v7316_v33, %v7318_v52  ;;  %v15130_v7 = vsel %vm237_vm0, %v7490_v8, %v7492_v14 }
 0x833   :  { %10276 = vmatmul.mubr.msk.f32.vlgmr.msra.gmra.mrb[46].mxu1 %vm1180_vm5, %v14969_v2 }
 0x834   :  { %10821 = vmatpush3.bf16.msra.mxu1 %v13560_v37  ;;  %10278 = vmatprep.mubr.msk.f32.mxu1 %vm11522_vm8, %v15518_v59  ;;  %v15629_v37 = vld [vmem:[#allocation60_spill] sm:$0xff] }
 0x835   :  { %10822 = vmatprep.subr.bf16.mxu1 %v15512_v22 }
 0x837   :  { %10279 = vmatmul.mubr.msk.f32.gmra.mrb[48].mxu1 %vm1180_vm5, %v14987_v3 }
 0x838   :  { %10281 = vmatprep.mubr.msk.f32.mxu1 %vm11522_vm8, %v15518_v59  ;;  %10824 = vmatpush3.bf16.msra.mxu1 %v13598_v26  ;;  %v15630_v26 = vld [vmem:[#allocation61_spill] sm:$0xff] }
 0x839   :  { %10825 = vmatprep.subr.bf16.mxu1 %v15512_v22 }
 0x83b   :  { %10282 = vmatmul.mubr.msk.f32.gmra.mrb[50].mxu1 %vm1180_vm5, %v15005_v0 }
 0x83c   :  { %10284 = vmatprep.mubr.msk.f32.mxu1 %vm11522_vm8, %v15518_v59  ;;  %10827 = vmatpush3.bf16.msra.mxu1 %v13620_v11  ;;  %v15631_v11 = vld [vmem:[#allocation62_spill] sm:$0xff] }
 0x83d   :  { %10828 = vmatprep.subr.bf16.mxu1 %v15512_v22 }
 0x83f   :  { %10285 = vmatmul.mubr.msk.f32.gmra.mrb[52].mxu1 %vm1180_vm5, %v15021_v35 }
 0x840   :  { %10287 = vmatprep.mubr.msk.f32.mxu1 %vm11522_vm8, %v15518_v59  ;;  %10830 = vmatpush3.bf16.msra.mxu1 %v13645_v40  ;;  %v15632_v40 = vld [vmem:[#allocation63_spill] sm:$0xff] }
 0x841   :  { %10831 = vmatprep.subr.bf16.mxu1 %v15512_v22 }
 0x843   :  { %10288 = vmatmul.mubr.msk.f32.gmra.mrb[54].mxu1 %vm1180_vm5, %v15037_v36 }
 0x844   :  { %10290 = vmatprep.mubr.msk.f32.mxu1 %vm11522_vm8, %v15518_v59 }
 0x847   :  { %10291 = vmatmul.mubr.msk.f32.gmra.mrb[56].mxu1 %vm1180_vm5, %v15053_v5 }
 0x848   :  { %10293 = vmatprep.mubr.msk.f32.mxu1 %vm11522_vm8, %v15518_v59 }
 0x84b   :  { %10294 = vmatmul.mubr.msk.f32.gmra.mrb[58].mxu1 %vm1180_vm5, %v15069_v18 }
 0x84c   :  { %10296 = vmatprep.mubr.msk.f32.mxu1 %vm11522_vm8, %v15518_v59 }
 0x84f   :  { %10297 = vmatmul.mubr.msk.f32.gmra.mrb[60].mxu1 %vm1180_vm5, %v6967_v34 }
 0x850   :  { %10299 = vmatprep.mubr.msk.f32.mxu1 %vm11522_vm8, %v15518_v59 }
 0x853   :  { %10300 = vmatmul.mubr.msk.f32.gmra.mrb[62].mxu1 %vm1180_vm5, %v6969_v38 }
 0x854   :  { %10302 = vmatprep.mubr.msk.f32.mxu1 %vm11522_vm8, %v15518_v59 }
 0x857   :  { %10303 = vmatmul.mubr.msk.f32.gmra.mrb[64].mxu1 %vm1180_vm5, %v6971_v13 }
 0x858   :  { %10305 = vmatprep.mubr.msk.f32.mxu1 %vm11522_vm8, %v15518_v59 }
 0x85b   :  { %10306 = vmatmul.mubr.msk.f32.gmra.mrb[66].mxu1 %vm1180_vm5, %v6970_v53 }
 0x85c   :  { %10324 = vmatprep.mubr.msk.f32.mxu1 %vm11522_vm8, %v15518_v59 }
 0x85f   :  { %10325 = vmatmul.mubr.msk.f32.vlgmr.msra.gmra.mrb[46].mxu1 %vm1180_vm5, %v14972_v10 }
 0x860   :  { %10833 = vmatpush3.bf16.msra.mxu1 %v13740_v25  ;;  %10327 = vmatprep.mubr.msk.f32.mxu1 %vm11522_vm8, %v15518_v59  ;;  %v15633_v25 = vld [vmem:[#allocation64_spill] sm:$0xff] }
 0x861   :  { %10834 = vmatprep.subr.bf16.mxu1 %v15512_v22 }
 0x863   :  { %10328 = vmatmul.mubr.msk.f32.gmra.mrb[48].mxu1 %vm1180_vm5, %v14990_v15 }
 0x864   :  { %10330 = vmatprep.mubr.msk.f32.mxu1 %vm11522_vm8, %v15518_v59  ;;  %10836 = vmatpush3.bf16.msra.mxu1 %v13760_v54 }
 0x865   :  { %10837 = vmatprep.subr.bf16.mxu1 %v15512_v22 }
 0x867   :  { %10331 = vmatmul.mubr.msk.f32.gmra.mrb[50].mxu1 %vm1180_vm5, %v15008_v42 }
 0x868   :  { %10333 = vmatprep.mubr.msk.f32.mxu1 %vm11522_vm8, %v15518_v59  ;;  %10839 = vmatpush3.bf16.msra.mxu1 %v13780_v63  ;;  %v15333_v63 = vld [vmem:[%s15403_s8] ss:$0 sm:$0xff] }
 0x869   :  { %10840 = vmatprep.subr.bf16.mxu1 %v15512_v22 }
 0x86b   :  { %10334 = vmatmul.mubr.msk.f32.gmra.mrb[52].mxu1 %vm1180_vm5, %v15024_v62  ;;  %v11511_v62 = vld [vmem:[%s15404_s9 + $0x8] sm:$0xff] }
 0x86c   :  { %10336 = vmatprep.mubr.msk.f32.mxu1 %vm11522_vm8, %v15518_v59  ;;  %10842 = vmatpush3.bf16.msra.mxu1 %v15629_v37 }
 0x86d   :  { %10843 = vmatprep.subr.bf16.mxu1 %v15512_v22 }
 0x86f   :  { %10337 = vmatmul.mubr.msk.f32.gmra.mrb[54].mxu1 %vm1180_vm5, %v15040_v27 }
 0x870   :  { %10339 = vmatprep.mubr.msk.f32.mxu1 %vm11522_vm8, %v15518_v59 }
 0x873   :  { %10340 = vmatmul.mubr.msk.f32.gmra.mrb[56].mxu1 %vm1180_vm5, %v15056_v21 }
 0x874   :  { %10342 = vmatprep.mubr.msk.f32.mxu1 %vm11522_vm8, %v15518_v59 }
 0x877   :  { %10343 = vmatmul.mubr.msk.f32.gmra.mrb[58].mxu1 %vm1180_vm5, %v15072_v49 }
 0x878   :  { %10345 = vmatprep.mubr.msk.f32.mxu1 %vm11522_vm8, %v15518_v59 }
 0x87b   :  { %10346 = vmatmul.mubr.msk.f32.gmra.mrb[60].mxu1 %vm1180_vm5, %v15086_v55 }
 0x87c   :  { %10348 = vmatprep.mubr.msk.f32.mxu1 %vm11522_vm8, %v15518_v59 }
 0x87f   :  { %10349 = vmatmul.mubr.msk.f32.gmra.mrb[62].mxu1 %vm1180_vm5, %v15100_v46 }
 0x880   :  { %10351 = vmatprep.mubr.msk.f32.mxu1 %vm11522_vm8, %v15518_v59 }
 0x883   :  { %10352 = vmatmul.mubr.msk.f32.gmra.mrb[64].mxu1 %vm1180_vm5, %v7145_v43 }
 0x884   :  { %10354 = vmatprep.mubr.msk.f32.mxu1 %vm11522_vm8, %v15518_v59 }
 0x887   :  { %10355 = vmatmul.mubr.msk.f32.gmra.mrb[66].mxu1 %vm1180_vm5, %v7144_v44 }
 0x888   :  { %10373 = vmatprep.mubr.msk.f32.mxu1 %vm11522_vm8, %v15518_v59 }
 0x88b   :  { %10374 = vmatmul.mubr.msk.f32.vlgmr.msra.gmra.mrb[46].mxu1 %vm1180_vm5, %v14975_v31 }
 0x88c   :  { %10845 = vmatpush3.bf16.msra.mxu1 %v15630_v26  ;;  %10376 = vmatprep.mubr.msk.f32.mxu1 %vm11522_vm8, %v15518_v59 }
 0x88d   :  { %10846 = vmatprep.subr.bf16.mxu1 %v15512_v22 }
 0x88f   :  { %10377 = vmatmul.mubr.msk.f32.gmra.mrb[48].mxu1 %vm1180_vm5, %v14993_v30 }
 0x890   :  { %10379 = vmatprep.mubr.msk.f32.mxu1 %vm11522_vm8, %v15518_v59  ;;  %10848 = vmatpush3.bf16.msra.mxu1 %v15631_v11 }
 0x891   :  { %10849 = vmatprep.subr.bf16.mxu1 %v15512_v22 }
 0x893   :  { %10380 = vmatmul.mubr.msk.f32.gmra.mrb[50].mxu1 %vm1180_vm5, %v15011_v12 }
 0x894   :  { %10382 = vmatprep.mubr.msk.f32.mxu1 %vm11522_vm8, %v15518_v59  ;;  %10851 = vmatpush3.bf16.msra.mxu1 %v15632_v40 }
 0x895   :  { %10852 = vmatprep.subr.bf16.mxu1 %v15512_v22  ;;  %v16_v22 = vstv %s15405_s10 }
 0x896   :  { %17 = vst [vmem:[#allocation2] sm:$0x1] %v16_v22 }
 0x897   :  { %10383 = vmatmul.mubr.msk.f32.gmra.mrb[52].mxu1 %vm1180_vm5, %v15027_v58 }
 0x898   :  { %10385 = vmatprep.mubr.msk.f32.mxu1 %vm11522_vm8, %v15518_v59  ;;  %10854 = vmatpush3.bf16.msra.mxu1 %v15633_v25  ;;  %v11516_v25 = vld [vmem:[%s15404_s9 + $0x30] sm:$0xff] }
 0x89b   :  { %10386 = vmatmul.mubr.msk.f32.gmra.mrb[54].mxu1 %vm1180_vm5, %v15043_v4 }
 0x89c   :  { %10388 = vmatprep.mubr.msk.f32.mxu1 %vm11522_vm8, %v15518_v59 }
 0x89f   :  { %10389 = vmatmul.mubr.msk.f32.gmra.mrb[56].mxu1 %vm1180_vm5, %v15059_v17 }
 0x8a0   :  { %10391 = vmatprep.mubr.msk.f32.mxu1 %vm11522_vm8, %v15518_v59 }
 0x8a3   :  { %10392 = vmatmul.mubr.msk.f32.gmra.mrb[58].mxu1 %vm1180_vm5, %v15075_v41 }
 0x8a4   :  { %10394 = vmatprep.mubr.msk.f32.mxu1 %vm11522_vm8, %v15518_v59 }
 0x8a7   :  { %10395 = vmatmul.mubr.msk.f32.gmra.mrb[60].mxu1 %vm1180_vm5, %v15089_v16  ;;  %v11513_v16 = vld [vmem:[%s15404_s9 + $0x18] sm:$0xff] }
 0x8a8   :  { %10397 = vmatprep.mubr.msk.f32.mxu1 %vm11522_vm8, %v15518_v59 }
 0x8ab   :  { %10398 = vmatmul.mubr.msk.f32.gmra.mrb[62].mxu1 %vm1180_vm5, %v15103_v39 }
 0x8ac   :  { %10400 = vmatprep.mubr.msk.f32.mxu1 %vm11522_vm8, %v15518_v59 }
 0x8af   :  { %10401 = vmatmul.mubr.msk.f32.gmra.mrb[64].mxu1 %vm1180_vm5, %v15125_v23 }
 0x8b0   :  { %10403 = vmatprep.mubr.msk.f32.mxu1 %vm11522_vm8, %v15518_v59 }
 0x8b3   :  { %10404 = vmatmul.mubr.msk.f32.gmra.mrb[66].mxu1 %vm1180_vm5, %v7318_v52 }
 0x8b4   :  { %10422 = vmatprep.mubr.msk.f32.mxu1 %vm11522_vm8, %v15518_v59 }
 0x8b7   :  { %10423 = vmatmul.mubr.msk.f32.vlgmr.msra.gmra.mrb[46].mxu1 %vm1180_vm5, %v14978_v28 }
 0x8b8   :  { %10425 = vmatprep.mubr.msk.f32.mxu1 %vm11522_vm8, %v15518_v59 }
 0x8bb   :  { %10426 = vmatmul.mubr.msk.f32.gmra.mrb[48].mxu1 %vm1180_vm5, %v14996_v56  ;;  %v11510_v56 = vld [vmem:[%s15404_s9] sm:$0xff] }
 0x8bc   :  { %10428 = vmatprep.mubr.msk.f32.mxu1 %vm11522_vm8, %v15518_v59 }
 0x8bf   :  { %10429 = vmatmul.mubr.msk.f32.gmra.mrb[50].mxu1 %vm1180_vm5, %v15014_v9 }
 0x8c0   :  { %10431 = vmatprep.mubr.msk.f32.mxu1 %vm11522_vm8, %v15518_v59 }
 0x8c3   :  { %10432 = vmatmul.mubr.msk.f32.gmra.mrb[52].mxu1 %vm1180_vm5, %v15030_v6 }
 0x8c4   :  { %10434 = vmatprep.mubr.msk.f32.mxu1 %vm11522_vm8, %v15518_v59 }
 0x8c7   :  { %10435 = vmatmul.mubr.msk.f32.gmra.mrb[54].mxu1 %vm1180_vm5, %v15046_v50 }
 0x8c8   :  { %10437 = vmatprep.mubr.msk.f32.mxu1 %vm11522_vm8, %v15518_v59 }
 0x8cb   :  { %10438 = vmatmul.mubr.msk.f32.gmra.mrb[56].mxu1 %vm1180_vm5, %v15062_v19  ;;  %v11512_v19 = vld [vmem:[%s15404_s9 + $0x10] sm:$0xff] }
 0x8cc   :  { %10440 = vmatprep.mubr.msk.f32.mxu1 %vm11522_vm8, %v15518_v59 }
 0x8cf   :  { %10441 = vmatmul.mubr.msk.f32.gmra.mrb[58].mxu1 %vm1180_vm5, %v15078_v61 }
 0x8d0   :  { %10443 = vmatprep.mubr.msk.f32.mxu1 %vm11522_vm8, %v15518_v59 }
 0x8d3   :  { %10444 = vmatmul.mubr.msk.f32.gmra.mrb[60].mxu1 %vm1180_vm5, %v15092_v20 }
 0x8d4   :  { %10446 = vmatprep.mubr.msk.f32.mxu1 %vm11522_vm8, %v15518_v59 }
 0x8d7   :  { %10447 = vmatmul.mubr.msk.f32.gmra.mrb[62].mxu1 %vm1180_vm5, %v15106_v29 }
 0x8d8   :  { %10449 = vmatprep.mubr.msk.f32.mxu1 %vm11522_vm8, %v15518_v59 }
 0x8db   :  { %10450 = vmatmul.mubr.msk.f32.gmra.mrb[64].mxu1 %vm1180_vm5, %v15130_v7 }
 0x8dc   :  { %10452 = vmatprep.mubr.msk.f32.mxu1 %vm11522_vm8, %v15518_v59 }
 0x8df   :  { %10453 = vmatmul.mubr.msk.f32.gmra.mrb[66].mxu1 %vm1180_vm5, %v7492_v14  ;;  %v11515_v14 = vld [vmem:[%s15404_s9 + $0x28] sm:$0xff] }
 0x98a   :  { %v7582_v54 = vpop.f32.mrb[46].mxu1 }
 0x98b   :  { %v10945_v2 = vadd.f32 %v15333_v63, %v7582_v54  ;;  %v10424_v10 = vpop.f32.mrb[47].mxu1 }
 0x98d   :  { %vm7647_vm0 = vcmp.gt.f32.partialorder %v10945_v2, 0.0  ;;  %v7658_v59 = vmul.f32 0.2, %v10945_v2 }
 0x98e   :  { %v7587_v31 = vpop.f32.mrb[48].mxu1 }
 0x98f   :  { %v7669_v28 = vsel %vm7647_vm0, %v10945_v2, %v7658_v59  ;;  %v10946_v3 = vadd.f32 %v15333_v63, %v7587_v31  ;;  %v10427_v15 = vpop.f32.mrb[49].mxu1 }
 0x990   :  { %v7680_v0 = vmul.f32 %v11510_v56, %v7669_v28  ;;  %v11517_v15 = vld [vmem:[%s15404_s9 + $0x38] sm:$0xff] }
 0x991   :  { %vm7648_vm2 = vcmp.gt.f32.partialorder %v10946_v3, 0.0  ;;  %v7659_v30 = vmul.f32 0.2, %v10946_v3 }
 0x992   :  { %v7592_v42 = vpop.f32.mrb[50].mxu1  ;;  %v7691_v36 = vsel %vm1180_vm5, %v7680_v0, 0.0 }
 0x993   :  { %v7670_v12 = vsel %vm7648_vm2, %v10946_v3, %v7659_v30  ;;  %v10947_v9 = vadd.f32 %v15333_v63, %v7592_v42  ;;  %v10430_v35 = vpop.f32.mrb[51].mxu1 }
 0x994   :  { %v7681_v58 = vmul.f32 %v11511_v62, %v7670_v12 }
 0x995   :  { %vm7649_vm3 = vcmp.gt.f32.partialorder %v10947_v9, 0.0  ;;  %v7660_v6 = vmul.f32 0.2, %v10947_v9 }
 0x996   :  { %v7692_v27 = vsel %vm1180_vm5, %v7681_v58, 0.0  ;;  %v7597_v4 = vpop.f32.mrb[52].mxu1  ;;  %v11518_v58 = vld [vmem:[%s15404_s9 + $0x40] sm:$0xff] }
 0x997   :  { %v7693_v50 = vadd.f32 %v7692_v27, %v7691_v36  ;;  %v7671_v5 = vsel %vm7649_vm3, %v10947_v9, %v7660_v6  ;;  %v10948_v21 = vadd.f32 %v15333_v63, %v7597_v4  ;;  %v10433_v17 = vpop.f32.mrb[53].mxu1 }
 0x998   :  { %v7682_v18 = vmul.f32 %v11512_v19, %v7671_v5 }
 0x999   :  { %vm7650_vm4 = vcmp.gt.f32.partialorder %v10948_v21, 0.0  ;;  %v7661_v49 = vmul.f32 0.2, %v10948_v21 }
 0x99a   :  { %v7694_v41 = vsel %vm1180_vm5, %v7682_v18, 0.0  ;;  %v7602_v61 = vpop.f32.mrb[54].mxu1 }
 0x99b   :  { %v7695_v47 = vadd.f32 %v7694_v41, %v7693_v50  ;;  %v7672_v57 = vsel %vm7650_vm4, %v10948_v21, %v7661_v49  ;;  %v10949_v34 = vadd.f32 %v15333_v63, %v7602_v61  ;;  %v10436_v55 = vpop.f32.mrb[55].mxu1  ;;  %v15634_v50 = vld [vmem:[#allocation3_spill] sm:$0xff] }
 0x99c   :  { %v7683_v20 = vmul.f32 %v11513_v16, %v7672_v57  ;;  %v3966_v5 = vrot.slane %v15634_v50, 4  ;;  %v11519_v49 = vld [vmem:[%s15404_s9 + $0x48] sm:$0xff]  ;;  %v11520_v16 = vld [vmem:[%s15404_s9 + $0x50] sm:$0xf] }
 0x99d   :  { %vm7651_vm8 = vcmp.gt.f32.partialorder %v10949_v34, 0.0  ;;  %v7662_v1 = vmul.f32 0.2, %v10949_v34 }
 0x99e   :  { %v7696_v32 = vsel %vm1180_vm5, %v7683_v20, 0.0  ;;  %v7607_v51 = vpop.f32.mrb[56].mxu1  ;;  %v3967_v55 = vadd.f32 %v3966_v5, %v15634_v50 }
 0x99f   :  { %v7697_v24 = vadd.f32 %v7696_v32, %v7695_v47  ;;  %v7673_v60 = vsel %vm7651_vm8, %v10949_v34, %v7662_v1  ;;  %v10950_v33 = vadd.f32 %v15333_v63, %v7607_v51  ;;  %v10439_v8 = vpop.f32.mrb[57].mxu1 }
 0x9a0   :  { %v7684_v38 = vmul.f32 %v11514_v48, %v7673_v60  ;;  %v3968_v32 = vrot.slane %v3967_v55, 2 }
 0x9a1   :  { %vm7652_vm13 = vcmp.gt.f32.partialorder %v10950_v33, 0.0  ;;  %v7663_v46 = vmul.f32 0.2, %v10950_v33 }
 0x9a2   :  { %v7698_v39 = vsel %vm1180_vm5, %v7684_v38, 0.0  ;;  %v7612_v29 = vpop.f32.mrb[58].mxu1 }
 0x9a3   :  { %v7699_v45 = vadd.f32 %v7698_v39, %v7697_v24  ;;  %v7674_v53 = vsel %vm7652_vm13, %v10950_v33, %v7663_v46  ;;  %v10951_v44 = vadd.f32 %v15333_v63, %v7612_v29  ;;  %v10442_v52 = vpop.f32.mrb[59].mxu1  ;;  %v3969_v24 = vadd.f32 %v3968_v32, %v3967_v55 }
 0x9a4   :  { %v7685_v13 = vmul.f32 %v11515_v14, %v7674_v53  ;;  %v8224_v53 = vld [vmem:[#allocation2] ss:$0 sm:$0xff] }
 0x9a5   :  { %vm7653_vm1 = vcmp.gt.f32.partialorder %v10951_v44, 0.0  ;;  %v7664_v43 = vmul.f32 0.2, %v10951_v44  ;;  %v3970_v8 = vrot.slane %v3969_v24, 1 }
 0x9a6   :  { %v7700_v23 = vsel %vm1180_vm5, %v7685_v13, 0.0  ;;  %v7617_v7 = vpop.f32.mrb[60].mxu1 }
 0x9a7   :  { %v7701_v37 = vadd.f32 %v7700_v23, %v7699_v45  ;;  %v7675_v26 = vsel %vm7653_vm1, %v10951_v44, %v7664_v43  ;;  %v10952_v11 = vadd.f32 %v15333_v63, %v7617_v7  ;;  %v10445_v40 = vpop.f32.mrb[61].mxu1  ;;  %v3971_v46 = vadd.f32 %v3970_v8, %v3969_v24 }
 0x9a8   :  { %v7686_v22 = vmul.f32 %v11516_v25, %v7675_v26 }
 0x9a9   :  { %vm7654_vm14 = vcmp.gt.f32.partialorder %v10952_v11, 0.0  ;;  %v7665_v54 = vmul.f32 0.2, %v10952_v11 }
 0x9aa   :  { %v7702_v2 = vsel %vm1180_vm5, %v7686_v22, 0.0  ;;  %v7622_v10 = vpop.f32.mrb[62].mxu1 }
 0x9ab   :  { %v7703_v59 = vadd.f32 %v7702_v2, %v7701_v37  ;;  %v7676_v31 = vsel %vm7654_vm14, %v10952_v11, %v7665_v54  ;;  %v10953_v28 = vadd.f32 %v15333_v63, %v7622_v10  ;;  %v10448_v3 = vpop.f32.mrb[63].mxu1 }
 0x9ac   :  { %v7687_v30 = vmul.f32 %v11517_v15, %v7676_v31 }
 0x9ad   :  { %vm7655_vm15 = vcmp.gt.f32.partialorder %v10953_v28, 0.0  ;;  %v7666_v56 = vmul.f32 0.2, %v10953_v28 }
 0x9ae   :  { %v7704_v0 = vsel %vm1180_vm5, %v7687_v30, 0.0  ;;  %v7627_v42 = vpop.f32.mrb[64].mxu1 }
 0x9af   :  { %v7705_v12 = vadd.f32 %v7704_v0, %v7703_v59  ;;  %v7677_v9 = vsel %vm7655_vm15, %v10953_v28, %v7666_v56  ;;  %v10954_v35 = vadd.f32 %v15333_v63, %v7627_v42  ;;  %v10451_v62 = vpop.f32.mrb[65].mxu1 }
 0x9b0   :  { %v7688_v6 = vmul.f32 %v11518_v58, %v7677_v9 }
 0x9b1   :  { %vm7656_vm7 = vcmp.gt.f32.partialorder %v10954_v35, 0.0  ;;  %v7667_v36 = vmul.f32 0.2, %v10954_v35 }
 0x9b2   :  { %v7706_v27 = vsel %vm1180_vm5, %v7688_v6, 0.0  ;;  %v7632_v4 = vpop.f32.mrb[66].mxu1 }
 0x9b3   :  { %v7707_v21 = vadd.f32 %v7706_v27, %v7705_v12  ;;  %v7678_v17 = vsel %vm7656_vm7, %v10954_v35, %v7667_v36  ;;  %v10955_v19 = vadd.f32 %v15333_v63, %v7632_v4  ;;  %v10454_v18 = vpop.f32.mrb[67].mxu1 }
 0x9b4   :  { %v7689_v41 = vmul.f32 %v11519_v49, %v7678_v17 }
 0x9b5   :  { %vm7657_vm9 = vcmp.gt.f32.partialorder %v10955_v19, 0.0  ;;  %v7668_v61 = vmul.f32 0.2, %v10955_v19 }
 0x9b6   :  { %v7708_v47 = vsel %vm1180_vm5, %v7689_v41, 0.0  ;;  %vm7718_vm5 = vcmask 1040384  }
 0x9b7   :  { %v7709_v57 = vadd.f32 %v7708_v47, %v7707_v21  ;;  %v7679_v34 = vsel %vm7657_vm9, %v10955_v19, %v7668_v61 }
 0x9b8   :  { %v7690_v20 = vmul.f32 %v11520_v16, %v7679_v34 }
 0x9ba   :  { %v7710_v63 = vsel %vm3963_vm6, %v7690_v20, 0.0 }
 0x9bb   :  { %v7711_v1 = vadd.f32 %v7710_v63, %v7709_v57 }
 0x9bd   :  { %v7712_v51 = vrot.slane %v7711_v1, 4 }
 0x9bf   :  { %v7713_v60 = vadd.f32 %v7712_v51, %v7711_v1 }
 0x9c1   :  { %v7714_v33 = vrot.slane %v7713_v60, 2 }
 0x9c3   :  { %v7715_v48 = vadd.f32 %v7714_v33, %v7713_v60 }
 0x9c5   :  { %v7716_v38 = vrot.slane %v7715_v48, 1 }
 0x9c7   :  { %v7717_v39 = vadd.f32 %v7716_v38, %v7715_v48 }
 0x9c9   :  { %v7719_v29 = vsel %vm7718_vm5, %v3971_v46, %v7717_v39 }
 0x9ca   :  { %v7721_v45 = vsel %vm7720_vm10, %v7719_v29, 0.0 }
 0x9cb   :  { %7722 = vadd.xlane.f32.xlu0 %v7721_v45 }
 0xa58   :  { %v7723_v44 = vpop.xlane.xlu0 %7722 }
 0xa59   :  { %v7730_v52 = vadd.f32 %v8224_v53, %v7723_v44 }
 0xa5b   :  { %7732 = vst.msk [vmem:[%s15406_s11] sm:$0x3] %vm7731_vm11, %v7730_v52 }

</bundles_post_ra>
